<compile_context>
chip_gen: v7x
topology: tpu7x:2x2x1
jax: 0.10.0
libtpu: 0.0.40
codegen_flags: <defaults>
</compile_context>

<pallas_src>
import functools

import jax
import jax.numpy as jnp
from jax import lax
from jax.experimental import pallas as pl
from jax.experimental.pallas import tpu as pltpu

EPS = 1e-5
_MXU_K = 256          # v6e/v7x contraction depth (v5e is 128)


# --------------------------------------------------------------------------- #
# Kernels
# --------------------------------------------------------------------------- #
def _conv_tile(x_ref, w_ref, *, TR, W, C_in, fold_taps, full_fold):
    """3x3 'same' conv of one zero-padded row-block tile.

    x_ref : (TR+2, W+2, C_in) bf16 NHWC tile
    w_ref : (9*C_in, C_out) bf16 with rows ordered (dy, dx, c)   [fold_taps]
            (9, C_in, C_out) bf16, tap = 3*dy+dx                 [fallback]
    Returns (TR*W, C_out) f32, accumulated in values (no scratch RMW).
    """
    if fold_taps:
        # Fold the three dx windows into the contraction dim (K = 3*C_in).
        cols = jnp.concatenate([x_ref[:, dx:dx + W, :] for dx in range(3)],
                               axis=-1)                       # (TR+2, W, 3*C_in)
        C3 = 3 * C_in
        if full_fold:
            # Small C_in: fold dy as well -> single dot with K = 9*C_in.
            patch = jnp.concatenate([cols[dy:dy + TR] for dy in range(3)],
                                    axis=-1)                  # (TR, W, 9*C_in)
            return jnp.dot(patch.reshape(TR * W, 3 * C3), w_ref[...],
                           preferred_element_type=jnp.float32)
        acc = None
        for dy in range(3):                                   # 3 dots, K = 3*C_in
            p = cols[dy:dy + TR].reshape(TR * W, C3)
            d = jnp.dot(p, w_ref[dy * C3:(dy + 1) * C3, :],
                        preferred_element_type=jnp.float32)
            acc = d if acc is None else acc + d
        return acc

    # Compatibility fallback (no minor-dim concatenation): nine K=C_in dots,
    # still accumulated in values rather than VMEM.
    acc = None
    for dy in range(3):
        for dx in range(3):
            p = x_ref[dy:dy + TR, dx:dx + W, :].reshape(TR * W, C_in)
            d = jnp.dot(p, w_ref[3 * dy + dx],
                        preferred_element_type=jnp.float32)
            acc = d if acc is None else acc + d
    return acc


def _stats_kernel(x_ref, w_ref, stats_ref, *, TR, W, C_in, fold_taps, full_fold):
    """Pass 1: per-(image, row-block) channel sum + block-centred sum-of-squares."""
    acc = _conv_tile(x_ref, w_ref, TR=TR, W=W, C_in=C_in,
                     fold_taps=fold_taps, full_fold=full_fold)   # (TR*W, C_out) f32
    s = jnp.sum(acc, axis=0, keepdims=True)                      # (1, C_out)
    centred = acc - s * (1.0 / (TR * W))                         # stable variance
    stats_ref[0:1, :] = s
    stats_ref[1:2, :] = jnp.sum(centred * centred, axis=0, keepdims=True)


def _norm_kernel(x_ref, w_ref, scale_ref, shift_ref, o_ref, *, TR, W, C_in,
                 fold_taps, full_fold):
    """Pass 2: conv recompute + fused (scale*x + shift) + ReLU, single store."""
    acc = _conv_tile(x_ref, w_ref, TR=TR, W=W, C_in=C_in,
                     fold_taps=fold_taps, full_fold=full_fold)   # (TR*W, C_out) f32
    y = acc * scale_ref[...] + shift_ref[...]
    o_ref[...] = jnp.maximum(y, 0.0).reshape(o_ref.shape).astype(o_ref.dtype)


# --------------------------------------------------------------------------- #
# Planning helpers (generation-aware VMEM budget, row-block size)
# --------------------------------------------------------------------------- #
def _vmem_budget_bytes():
    phys = 64 * 2**20                       # assume the smallest (v7x) VMEM
    try:
        phys = int(pltpu.get_tpu_info().vmem_capacity_bytes)
    except Exception:
        pass
    if phys < 16 * 2**20:
        phys = 64 * 2**20
    # ~48 MiB on 64-MiB v7x, ~96 MiB on 128-MiB v5e/v6e.
    return int(max(min(0.75 * phys, 100 * 2**20), 32 * 2**20))


def _tile_vmem_bytes(TR, W, C_in, C_out, full_fold):
    k_fold = 9 if full_fold else 3
    in_tile = (TR + 2) * (W + 2) * C_in * 2        # bf16 input tile (x2 buffers)
    out_tile = TR * W * C_out * 4                  # f32 output tile (x2 buffers)
    cols = (TR + 2) * W * 3 * C_in * 2             # dx-folded window temp
    patch = TR * W * k_fold * C_in * 2             # largest matmul operand
    acc = TR * W * C_out * 4                       # f32 dot result / epilogue
    w = 9 * C_in * C_out * 2
    return 2 * in_tile + 2 * out_tile + cols + patch + 2 * acc + w


def _pick_row_block(H, W, C_in, C_out, full_fold, budget):
    cands = sorted((d for d in range(1, min(H, 128) + 1) if H % d == 0),
                   key=lambda d: (d % 8 != 0, -d))   # multiples of 8 first, big first
    for d in cands:
        if _tile_vmem_bytes(d, W, C_in, C_out, full_fold) <= 0.9 * budget:
            return d
    return cands[-1]


# --------------------------------------------------------------------------- #
# Host wrappers
# --------------------------------------------------------------------------- #
def _conv_block_nhwc(x_nhwc, w_hwio, gamma, beta, *, eps, fold_taps,
                     row_block=None):
    N, H, W, C_in = x_nhwc.shape
    C_out = w_hwio.shape[-1]
    full_fold = fold_taps and (9 * C_in <= _MXU_K)

    budget = _vmem_budget_bytes()
    if row_block is not None:
        if H % int(row_block):
            raise ValueError("row_block must divide H")
        TR = int(row_block)
    else:
        TR = _pick_row_block(H, W, C_in, C_out, full_fold, budget)
    R = H // TR

    # bf16 cast + 'same' zero pad (+ 1-row-halo gather when R > 1).  These are
    # input-activation-sized, small next to the f32 output traffic.
    x_pad = jnp.pad(x_nhwc.astype(jnp.bfloat16),
                    ((0, 0), (1, 1), (1, 1), (0, 0)))          # (N, H+2, W+2, C)
    if R == 1:
        x_halo = x_pad[:, None]                                # (N, 1, H+2, W+2, C)
    else:
        rows = jnp.arange(R)[:, None] * TR + jnp.arange(TR + 2)[None, :]
        x_halo = x_pad[:, rows]                                # (N, R, TR+2, W+2, C)

    w_bf16 = w_hwio.astype(jnp.bfloat16)
    if fold_taps:
        w_arg = w_bf16.reshape(9 * C_in, C_out)                # rows = (dy, dx, c)
        w_spec = pl.BlockSpec((9 * C_in, C_out), lambda n, r: (0, 0))
    else:
        w_arg = w_bf16.reshape(9, C_in, C_out)
        w_spec = pl.BlockSpec((9, C_in, C_out), lambda n, r: (0, 0, 0))
    x_spec = pl.BlockSpec((None, None, TR + 2, W + 2, C_in),
                          lambda n, r: (n, r, 0, 0, 0))

    cparams = pltpu.CompilerParams(
        dimension_semantics=("parallel", "parallel"),          # (batch, row blocks)
        vmem_limit_bytes=budget)
    kw = dict(TR=TR, W=W, C_in=C_in, fold_taps=fold_taps, full_fold=full_fold)

    # ---- pass 1: conv + per-block channel statistics --------------------------
    stats = pl.pallas_call(
        functools.partial(_stats_kernel, **kw),
        grid=(N, R),
        in_specs=[x_spec, w_spec],
        out_specs=pl.BlockSpec((None, None, 2, C_out), lambda n, r: (n, r, 0, 0)),
        out_shape=jax.ShapeDtypeStruct((N, R, 2, C_out), jnp.float32),
        compiler_params=cparams,
    )(x_halo, w_arg)

    # ---- BN finalize: exact merge of per-block (sum, centred SSQ) -------------
    cnt_blk = float(TR * W)
    cnt = float(N * H * W)
    sums = stats[:, :, 0, :]                                   # (N, R, C_out)
    ssds = stats[:, :, 1, :]
    mean = jnp.sum(sums, axis=(0, 1)) / cnt                    # (C_out,)
    dmean = sums / cnt_blk - mean
    var = (jnp.sum(ssds, axis=(0, 1))
           + cnt_blk * jnp.sum(dmean * dmean, axis=(0, 1))) / cnt
    var = jnp.maximum(var, 0.0)                                # biased, as PyTorch BN
    scale = gamma.astype(jnp.float32) * lax.rsqrt(var + eps)
    shift = beta.astype(jnp.float32) - mean * scale

    # ---- pass 2: conv recompute + fused BN + ReLU ------------------------------
    out_nhwc = pl.pallas_call(
        functools.partial(_norm_kernel, **kw),
        grid=(N, R),
        in_specs=[x_spec, w_spec,
                  pl.BlockSpec((1, C_out), lambda n, r: (0, 0)),
                  pl.BlockSpec((1, C_out), lambda n, r: (0, 0))],
        out_specs=pl.BlockSpec((None, TR, W, C_out), lambda n, r: (n, r, 0, 0)),
        out_shape=jax.ShapeDtypeStruct((N, H, W, C_out), jnp.float32),
        compiler_params=cparams,
    )(x_halo, w_arg, scale.reshape(1, C_out), shift.reshape(1, C_out))
    return out_nhwc


def conv_block_nhwc(x_nhwc, w_hwio, bias, gamma, beta, *, eps=EPS, row_block=None):
    """NHWC-in / NHWC-out ConvBlock forward.

    Use this directly when chaining ConvBlocks so no NCHW<->NHWC HBM
    round-trips are needed between layers.
    """
    del bias  # exactly cancelled by training-mode BN's batch-mean subtraction
    try:
        return _conv_block_nhwc(x_nhwc, w_hwio, gamma, beta, eps=eps,
                                fold_taps=True, row_block=row_block)
    except Exception:
        # Compatibility fallback if this Mosaic build cannot lower the
        # minor-dim concatenation used for K-folding: identical math, nine
        # K=C_in dots (still value-accumulated).  Same result up to f32
        # summation order.
        return _conv_block_nhwc(x_nhwc, w_hwio, gamma, beta, eps=eps,
                                fold_taps=False, row_block=row_block)


def conv_block(x_nchw, w_hwio, bias, gamma, beta, *, eps=EPS, row_block=None):
    """(N, C_in, H, W) f32 -> (N, C_out, H, W) f32  (PyTorch ConvBlock forward).

    NCHW shim kept for PyTorch interface fidelity; the transposes here are the
    only extra HBM passes and vanish when `conv_block_nhwc` is chained directly.
    """
    x_nhwc = jnp.transpose(x_nchw, (0, 2, 3, 1))
    out_nhwc = conv_block_nhwc(x_nhwc, w_hwio, bias, gamma, beta, eps=eps,
                               row_block=row_block)
    return jnp.transpose(out_nhwc, (0, 3, 1, 2))


# --------------------------------------------------------------------------- #
# Reference + self-test
# --------------------------------------------------------------------------- #
def conv_block_reference(x_nchw, w_hwio, bias, gamma, beta, *, eps=EPS,
                         matmul_dtype=None):
    """Plain-JAX reference matching the PyTorch ConvBlock forward.

    matmul_dtype=jnp.bfloat16 reproduces the kernel's MXU-input quantization
    (bf16 inputs, f32 accumulation); None gives exact f32 semantics.
    """
    x, w = x_nchw, w_hwio
    if matmul_dtype is not None:
        x = x.astype(matmul_dtype).astype(jnp.float32)
        w = w.astype(matmul_dtype).astype(jnp.float32)
    conv = lax.conv_general_dilated(
        x, w, window_strides=(1, 1), padding="SAME",
        dimension_numbers=("NCHW", "HWIO", "NCHW"))
    conv = conv + bias[None, :, None, None]
    mean = jnp.mean(conv, axis=(0, 2, 3), keepdims=True)
    var = jnp.mean((conv - mean) ** 2, axis=(0, 2, 3), keepdims=True)  # biased
    y = (conv - mean) * lax.rsqrt(var + eps)
    y = y * gamma[None, :, None, None] + beta[None, :, None, None]
    return jnp.maximum(y, 0.0)


if __name__ == "__main__":
    key = jax.random.PRNGKey(0)
    k_x, k_w, k_b, k_g, k_be = jax.random.split(key, 5)

    N, C_in, C_out, H, W = 2, 4, 8, 16, 16

    x = jax.random.normal(k_x, (N, C_in, H, W), dtype=jnp.float32)
    w = 0.1 * jax.random.normal(k_w, (3, 3, C_in, C_out), dtype=jnp.float32)
    b = 0.1 * jax.random.normal(k_b, (C_out,), dtype=jnp.float32)
    gamma = 1.0 + 0.1 * jax.random.normal(k_g, (C_out,), dtype=jnp.float32)
    beta = 0.1 * jax.random.normal(k_be, (C_out,), dtype=jnp.float32)

    out = jax.block_until_ready(conv_block(x, w, b, gamma, beta))
    ref_q = conv_block_reference(x, w, b, gamma, beta, matmul_dtype=jnp.bfloat16)
    ref_f32 = conv_block_reference(x, w, b, gamma, beta)

    assert out.shape == (N, C_out, H, W)
    # Tight check vs. a reference with the same bf16 MXU-input quantization.
    assert jnp.allclose(out, ref_q, rtol=1e-3, atol=1e-3)
    # Looser check vs. exact f32 PyTorch semantics (bf16 input rounding only).
    assert jnp.allclose(out, ref_f32, rtol=5e-2, atol=5e-2)

    # Exercise the multi-row-block path (grid=(N, R>1): halo gather, per-block
    # stat merge) by forcing 8-row blocks on the same input.
    out_rb = jax.block_until_ready(conv_block(x, w, b, gamma, beta, row_block=8))
    assert out_rb.shape == (N, C_out, H, W)
    assert jnp.allclose(out_rb, ref_q, rtol=1e-3, atol=1e-3)

    # Also exercise the non-folded compatibility path explicitly.
    out_nf = _conv_block_nhwc(jnp.transpose(x, (0, 2, 3, 1)), w, gamma, beta,
                              eps=EPS, fold_taps=False)
    out_nf = jnp.transpose(jax.block_until_ready(out_nf), (0, 3, 1, 2))
    assert jnp.allclose(out_nf, ref_q, rtol=1e-3, atol=1e-3)

    print("KERNEL_OK")
</pallas_src>

<mosaic_0001>
module attributes {stable_mosaic.version = 11 : i64} {
  func.func @_stats_kernel(%arg0: i32, %arg1: i32, %arg2: memref<1x1x18x18x4xbf16, #tpu.memory_space<vmem>>, %arg3: memref<36x8xbf16, #tpu.memory_space<vmem>>, %arg4: memref<1x1x2x8xf32, #tpu.memory_space<vmem>>) attributes {dimension_semantics = [#tpu.dimension_semantics<parallel>, #tpu.dimension_semantics<parallel>], iteration_bounds = array<i64: 2, 1>, scalar_prefetch = 0 : i64, scratch_operands = 0 : i64, tpu.core_type = #tpu.core_type<tc>, window_params = [{transform_indices = @transform_0, window_bounds = array<i64: 1, 1, 18, 18, 4>}, {pipeline_mode = #tpu.pipeline_mode<synchronous>, transform_indices = @transform_1, window_bounds = array<i64: 36, 8>}, {transform_indices = @transform_2, window_bounds = array<i64: 1, 1, 2, 8>}]} {
    %c0 = arith.constant 0 : index
    %c0_0 = arith.constant 0 : index
    %c0_1 = arith.constant 0 : index
    %c0_2 = arith.constant 0 : index
    %c0_3 = arith.constant 0 : index
    %0 = vector.load %arg2[%c0, %c0_0, %c0_1, %c0_2, %c0_3] : memref<1x1x18x18x4xbf16, #tpu.memory_space<vmem>>, vector<1x1x18x16x4xbf16>
    %1 = vector.shape_cast %0 : vector<1x1x18x16x4xbf16> to vector<18x16x4xbf16>
    %c0_4 = arith.constant 0 : index
    %c0_5 = arith.constant 0 : index
    %c0_6 = arith.constant 0 : index
    %c1 = arith.constant 1 : index
    %c0_7 = arith.constant 0 : index
    %2 = vector.load %arg2[%c0_4, %c0_5, %c0_6, %c1, %c0_7] : memref<1x1x18x18x4xbf16, #tpu.memory_space<vmem>>, vector<1x1x18x16x4xbf16>
    %3 = vector.shape_cast %2 : vector<1x1x18x16x4xbf16> to vector<18x16x4xbf16>
    %c0_8 = arith.constant 0 : index
    %c0_9 = arith.constant 0 : index
    %c0_10 = arith.constant 0 : index
    %c2 = arith.constant 2 : index
    %c0_11 = arith.constant 0 : index
    %4 = vector.load %arg2[%c0_8, %c0_9, %c0_10, %c2, %c0_11] : memref<1x1x18x18x4xbf16, #tpu.memory_space<vmem>>, vector<1x1x18x16x4xbf16>
    %5 = vector.shape_cast %4 : vector<1x1x18x16x4xbf16> to vector<18x16x4xbf16>
    %6 = tpu.concatenate %1, %3, %5 in 2 : vector<18x16x4xbf16>, vector<18x16x4xbf16>, vector<18x16x4xbf16> -> vector<18x16x12xbf16>
    %7 = vector.extract_strided_slice %6 {offsets = [0, 0, 0], sizes = [16, 16, 12], strides = [1, 1, 1]} : vector<18x16x12xbf16> to vector<16x16x12xbf16>
    %8 = vector.extract_strided_slice %6 {offsets = [1, 0, 0], sizes = [16, 16, 12], strides = [1, 1, 1]} : vector<18x16x12xbf16> to vector<16x16x12xbf16>
    %9 = vector.extract_strided_slice %6 {offsets = [2, 0, 0], sizes = [16, 16, 12], strides = [1, 1, 1]} : vector<18x16x12xbf16> to vector<16x16x12xbf16>
    %10 = tpu.concatenate %7, %8, %9 in 2 : vector<16x16x12xbf16>, vector<16x16x12xbf16>, vector<16x16x12xbf16> -> vector<16x16x36xbf16>
    %11 = vector.shape_cast %10 : vector<16x16x36xbf16> to vector<256x36xbf16>
    %c0_12 = arith.constant 0 : index
    %c0_13 = arith.constant 0 : index
    %12 = vector.load %arg3[%c0_12, %c0_13] : memref<36x8xbf16, #tpu.memory_space<vmem>>, vector<36x8xbf16>
    %cst = arith.constant dense<0.000000e+00> : vector<256x8xf32>
    %13 = tpu.matmul %11, %12, %cst {dimension_numbers = #tpu.dot_dimension_numbers<[1], [0], [0], [1], [0, 0, 1, 1], [], []>} : vector<256x36xbf16>, vector<36x8xbf16>, vector<256x8xf32> -> vector<256x8xf32>
    %cst_14 = arith.constant dense<0.000000e+00> : vector<8xf32>
    %14 = vector.multi_reduction <add>, %13, %cst_14 [0] : vector<256x8xf32> to vector<8xf32>
    %15 = vector.shape_cast %14 : vector<8xf32> to vector<1x8xf32>
    %cst_15 = arith.constant 3.906250e-03 : f32
    %16 = vector.broadcast %cst_15 : f32 to vector<1x8xf32>
    %17 = arith.mulf %15, %16 : vector<1x8xf32>
    %18 = vector.broadcast %17 : vector<1x8xf32> to vector<256x8xf32>
    %19 = arith.subf %13, %18 : vector<256x8xf32>
    %c0_16 = arith.constant 0 : index
    %c0_17 = arith.constant 0 : index
    %c0_18 = arith.constant 0 : index
    %c0_19 = arith.constant 0 : index
    %20 = vector.load %arg4[%c0_16, %c0_17, %c0_18, %c0_19] : memref<1x1x2x8xf32, #tpu.memory_space<vmem>>, vector<1x1x1x8xf32>
    %21 = vector.shape_cast %20 : vector<1x1x1x8xf32> to vector<1x8xf32>
    %22 = vector.shape_cast %15 : vector<1x8xf32> to vector<1x1x1x8xf32>
    tpu.vector_store %arg4[%c0_16, %c0_17, %c0_18, %c0_19], %22 {strides = array<i32>} : memref<1x1x2x8xf32, #tpu.memory_space<vmem>>, vector<1x1x1x8xf32>,
    %23 = arith.mulf %19, %19 : vector<256x8xf32>
    %cst_20 = arith.constant dense<0.000000e+00> : vector<8xf32>
    %24 = vector.multi_reduction <add>, %23, %cst_20 [0] : vector<256x8xf32> to vector<8xf32>
    %25 = vector.shape_cast %24 : vector<8xf32> to vector<1x8xf32>
    %c0_21 = arith.constant 0 : index
    %c0_22 = arith.constant 0 : index
    %c1_23 = arith.constant 1 : index
    %c0_24 = arith.constant 0 : index
    %26 = vector.load %arg4[%c0_21, %c0_22, %c1_23, %c0_24] : memref<1x1x2x8xf32, #tpu.memory_space<vmem>>, vector<1x1x1x8xf32>
    %27 = vector.shape_cast %26 : vector<1x1x1x8xf32> to vector<1x8xf32>
    %28 = vector.shape_cast %25 : vector<1x8xf32> to vector<1x1x1x8xf32>
    tpu.vector_store %arg4[%c0_21, %c0_22, %c1_23, %c0_24], %28 {strides = array<i32>} : memref<1x1x2x8xf32, #tpu.memory_space<vmem>>, vector<1x1x1x8xf32>,
    return
  }
  func.func @transform_0(%arg0: i32, %arg1: i32) -> (i32, i32, i32, i32, i32) {
    %c0_i32 = arith.constant 0 : i32
    %c0_i32_0 = arith.constant 0 : i32
    %c0_i32_1 = arith.constant 0 : i32
    %c0_i32_2 = arith.constant 0 : i32
    return %arg0, %arg1, %c0_i32, %c0_i32_0, %c0_i32_1 : i32, i32, i32, i32, i32
  }
  func.func @transform_1(%arg0: i32, %arg1: i32) -> (i32, i32) {
    %c0_i32 = arith.constant 0 : i32
    %c0_i32_0 = arith.constant 0 : i32
    %c0_i32_1 = arith.constant 0 : i32
    return %c0_i32, %c0_i32_0 : i32, i32
  }
  func.func @transform_2(%arg0: i32, %arg1: i32) -> (i32, i32, i32, i32) {
    %c0_i32 = arith.constant 0 : i32
    %c0_i32_0 = arith.constant 0 : i32
    %c0_i32_1 = arith.constant 0 : i32
    return %arg0, %arg1, %c0_i32, %c0_i32_0 : i32, i32, i32, i32
  }
}

module attributes {stable_mosaic.version = 11 : i64} {
  func.func @_stats_kernel(%arg0: i32, %arg1: i32, %arg2: memref<1x1x18x18x4xbf16, #tpu.memory_space<vmem>>, %arg3: memref<9x4x8xbf16, #tpu.memory_space<vmem>>, %arg4: memref<1x1x2x8xf32, #tpu.memory_space<vmem>>) attributes {dimension_semantics = [#tpu.dimension_semantics<parallel>, #tpu.dimension_semantics<parallel>], iteration_bounds = array<i64: 2, 1>, scalar_prefetch = 0 : i64, scratch_operands = 0 : i64, tpu.core_type = #tpu.core_type<tc>, window_params = [{transform_indices = @transform_0, window_bounds = array<i64: 1, 1, 18, 18, 4>}, {pipeline_mode = #tpu.pipeline_mode<synchronous>, transform_indices = @transform_1, window_bounds = array<i64: 9, 4, 8>}, {transform_indices = @transform_2, window_bounds = array<i64: 1, 1, 2, 8>}]} {
    %c0 = arith.constant 0 : index
    %c0_0 = arith.constant 0 : index
    %c0_1 = arith.constant 0 : index
    %c0_2 = arith.constant 0 : index
    %c0_3 = arith.constant 0 : index
    %0 = vector.load %arg2[%c0, %c0_0, %c0_1, %c0_2, %c0_3] : memref<1x1x18x18x4xbf16, #tpu.memory_space<vmem>>, vector<1x1x16x16x4xbf16>
    %1 = vector.shape_cast %0 : vector<1x1x16x16x4xbf16> to vector<16x16x4xbf16>
    %2 = vector.shape_cast %1 : vector<16x16x4xbf16> to vector<256x4xbf16>
    %c0_4 = arith.constant 0 : index
    %c0_5 = arith.constant 0 : index
    %c0_6 = arith.constant 0 : index
    %3 = vector.load %arg3[%c0_4, %c0_5, %c0_6] : memref<9x4x8xbf16, #tpu.memory_space<vmem>>, vector<1x4x8xbf16>
    %4 = vector.shape_cast %3 : vector<1x4x8xbf16> to vector<4x8xbf16>
    %cst = arith.constant dense<0.000000e+00> : vector<256x8xf32>
    %5 = tpu.matmul %2, %4, %cst {dimension_numbers = #tpu.dot_dimension_numbers<[1], [0], [0], [1], [0, 0, 1, 1], [], []>} : vector<256x4xbf16>, vector<4x8xbf16>, vector<256x8xf32> -> vector<256x8xf32>
    %c0_7 = arith.constant 0 : index
    %c0_8 = arith.constant 0 : index
    %c0_9 = arith.constant 0 : index
    %c1 = arith.constant 1 : index
    %c0_10 = arith.constant 0 : index
    %6 = vector.load %arg2[%c0_7, %c0_8, %c0_9, %c1, %c0_10] : memref<1x1x18x18x4xbf16, #tpu.memory_space<vmem>>, vector<1x1x16x16x4xbf16>
    %7 = vector.shape_cast %6 : vector<1x1x16x16x4xbf16> to vector<16x16x4xbf16>
    %8 = vector.shape_cast %7 : vector<16x16x4xbf16> to vector<256x4xbf16>
    %c1_11 = arith.constant 1 : index
    %c0_12 = arith.constant 0 : index
    %c0_13 = arith.constant 0 : index
    %9 = vector.load %arg3[%c1_11, %c0_12, %c0_13] : memref<9x4x8xbf16, #tpu.memory_space<vmem>>, vector<1x4x8xbf16>
    %10 = vector.shape_cast %9 : vector<1x4x8xbf16> to vector<4x8xbf16>
    %cst_14 = arith.constant dense<0.000000e+00> : vector<256x8xf32>
    %11 = tpu.matmul %8, %10, %cst_14 {dimension_numbers = #tpu.dot_dimension_numbers<[1], [0], [0], [1], [0, 0, 1, 1], [], []>} : vector<256x4xbf16>, vector<4x8xbf16>, vector<256x8xf32> -> vector<256x8xf32>
    %12 = arith.addf %5, %11 : vector<256x8xf32>
    %c0_15 = arith.constant 0 : index
    %c0_16 = arith.constant 0 : index
    %c0_17 = arith.constant 0 : index
    %c2 = arith.constant 2 : index
    %c0_18 = arith.constant 0 : index
    %13 = vector.load %arg2[%c0_15, %c0_16, %c0_17, %c2, %c0_18] : memref<1x1x18x18x4xbf16, #tpu.memory_space<vmem>>, vector<1x1x16x16x4xbf16>
    %14 = vector.shape_cast %13 : vector<1x1x16x16x4xbf16> to vector<16x16x4xbf16>
    %15 = vector.shape_cast %14 : vector<16x16x4xbf16> to vector<256x4xbf16>
    %c2_19 = arith.constant 2 : index
    %c0_20 = arith.constant 0 : index
    %c0_21 = arith.constant 0 : index
    %16 = vector.load %arg3[%c2_19, %c0_20, %c0_21] : memref<9x4x8xbf16, #tpu.memory_space<vmem>>, vector<1x4x8xbf16>
    %17 = vector.shape_cast %16 : vector<1x4x8xbf16> to vector<4x8xbf16>
    %cst_22 = arith.constant dense<0.000000e+00> : vector<256x8xf32>
    %18 = tpu.matmul %15, %17, %cst_22 {dimension_numbers = #tpu.dot_dimension_numbers<[1], [0], [0], [1], [0, 0, 1, 1], [], []>} : vector<256x4xbf16>, vector<4x8xbf16>, vector<256x8xf32> -> vector<256x8xf32>
    %19 = arith.addf %12, %18 : vector<256x8xf32>
    %c0_23 = arith.constant 0 : index
    %c0_24 = arith.constant 0 : index
    %c1_25 = arith.constant 1 : index
    %c0_26 = arith.constant 0 : index
    %c0_27 = arith.constant 0 : index
    %20 = vector.load %arg2[%c0_23, %c0_24, %c1_25, %c0_26, %c0_27] : memref<1x1x18x18x4xbf16, #tpu.memory_space<vmem>>, vector<1x1x16x16x4xbf16>
    %21 = vector.shape_cast %20 : vector<1x1x16x16x4xbf16> to vector<16x16x4xbf16>
    %22 = vector.shape_cast %21 : vector<16x16x4xbf16> to vector<256x4xbf16>
    %c3 = arith.constant 3 : index
    %c0_28 = arith.constant 0 : index
    %c0_29 = arith.constant 0 : index
    %23 = vector.load %arg3[%c3, %c0_28, %c0_29] : memref<9x4x8xbf16, #tpu.memory_space<vmem>>, vector<1x4x8xbf16>
    %24 = vector.shape_cast %23 : vector<1x4x8xbf16> to vector<4x8xbf16>
    %cst_30 = arith.constant dense<0.000000e+00> : vector<256x8xf32>
    %25 = tpu.matmul %22, %24, %cst_30 {dimension_numbers = #tpu.dot_dimension_numbers<[1], [0], [0], [1], [0, 0, 1, 1], [], []>} : vector<256x4xbf16>, vector<4x8xbf16>, vector<256x8xf32> -> vector<256x8xf32>
    %26 = arith.addf %19, %25 : vector<256x8xf32>
    %c0_31 = arith.constant 0 : index
    %c0_32 = arith.constant 0 : index
    %c1_33 = arith.constant 1 : index
    %c1_34 = arith.constant 1 : index
    %c0_35 = arith.constant 0 : index
    %27 = vector.load %arg2[%c0_31, %c0_32, %c1_33, %c1_34, %c0_35] : memref<1x1x18x18x4xbf16, #tpu.memory_space<vmem>>, vector<1x1x16x16x4xbf16>
    %28 = vector.shape_cast %27 : vector<1x1x16x16x4xbf16> to vector<16x16x4xbf16>
    %29 = vector.shape_cast %28 : vector<16x16x4xbf16> to vector<256x4xbf16>
    %c4 = arith.constant 4 : index
    %c0_36 = arith.constant 0 : index
    %c0_37 = arith.constant 0 : index
    %30 = vector.load %arg3[%c4, %c0_36, %c0_37] : memref<9x4x8xbf16, #tpu.memory_space<vmem>>, vector<1x4x8xbf16>
    %31 = vector.shape_cast %30 : vector<1x4x8xbf16> to vector<4x8xbf16>
    %cst_38 = arith.constant dense<0.000000e+00> : vector<256x8xf32>
    %32 = tpu.matmul %29, %31, %cst_38 {dimension_numbers = #tpu.dot_dimension_numbers<[1], [0], [0], [1], [0, 0, 1, 1], [], []>} : vector<256x4xbf16>, vector<4x8xbf16>, vector<256x8xf32> -> vector<256x8xf32>
    %33 = arith.addf %26, %32 : vector<256x8xf32>
    %c0_39 = arith.constant 0 : index
    %c0_40 = arith.constant 0 : index
    %c1_41 = arith.constant 1 : index
    %c2_42 = arith.constant 2 : index
    %c0_43 = arith.constant 0 : index
    %34 = vector.load %arg2[%c0_39, %c0_40, %c1_41, %c2_42, %c0_43] : memref<1x1x18x18x4xbf16, #tpu.memory_space<vmem>>, vector<1x1x16x16x4xbf16>
    %35 = vector.shape_cast %34 : vector<1x1x16x16x4xbf16> to vector<16x16x4xbf16>
    %36 = vector.shape_cast %35 : vector<16x16x4xbf16> to vector<256x4xbf16>
    %c5 = arith.constant 5 : index
    %c0_44 = arith.constant 0 : index
    %c0_45 = arith.constant 0 : index
    %37 = vector.load %arg3[%c5, %c0_44, %c0_45] : memref<9x4x8xbf16, #tpu.memory_space<vmem>>, vector<1x4x8xbf16>
    %38 = vector.shape_cast %37 : vector<1x4x8xbf16> to vector<4x8xbf16>
    %cst_46 = arith.constant dense<0.000000e+00> : vector<256x8xf32>
    %39 = tpu.matmul %36, %38, %cst_46 {dimension_numbers = #tpu.dot_dimension_numbers<[1], [0], [0], [1], [0, 0, 1, 1], [], []>} : vector<256x4xbf16>, vector<4x8xbf16>, vector<256x8xf32> -> vector<256x8xf32>
    %40 = arith.addf %33, %39 : vector<256x8xf32>
    %c0_47 = arith.constant 0 : index
    %c0_48 = arith.constant 0 : index
    %c2_49 = arith.constant 2 : index
    %c0_50 = arith.constant 0 : index
    %c0_51 = arith.constant 0 : index
    %41 = vector.load %arg2[%c0_47, %c0_48, %c2_49, %c0_50, %c0_51] : memref<1x1x18x18x4xbf16, #tpu.memory_space<vmem>>, vector<1x1x16x16x4xbf16>
    %42 = vector.shape_cast %41 : vector<1x1x16x16x4xbf16> to vector<16x16x4xbf16>
    %43 = vector.shape_cast %42 : vector<16x16x4xbf16> to vector<256x4xbf16>
    %c6 = arith.constant 6 : index
    %c0_52 = arith.constant 0 : index
    %c0_53 = arith.constant 0 : index
    %44 = vector.load %arg3[%c6, %c0_52, %c0_53] : memref<9x4x8xbf16, #tpu.memory_space<vmem>>, vector<1x4x8xbf16>
    %45 = vector.shape_cast %44 : vector<1x4x8xbf16> to vector<4x8xbf16>
    %cst_54 = arith.constant dense<0.000000e+00> : vector<256x8xf32>
    %46 = tpu.matmul %43, %45, %cst_54 {dimension_numbers = #tpu.dot_dimension_numbers<[1], [0], [0], [1], [0, 0, 1, 1], [], []>} : vector<256x4xbf16>, vector<4x8xbf16>, vector<256x8xf32> -> vector<256x8xf32>
    %47 = arith.addf %40, %46 : vector<256x8xf32>
    %c0_55 = arith.constant 0 : index
    %c0_56 = arith.constant 0 : index
    %c2_57 = arith.constant 2 : index
    %c1_58 = arith.constant 1 : index
    %c0_59 = arith.constant 0 : index
    %48 = vector.load %arg2[%c0_55, %c0_56, %c2_57, %c1_58, %c0_59] : memref<1x1x18x18x4xbf16, #tpu.memory_space<vmem>>, vector<1x1x16x16x4xbf16>
    %49 = vector.shape_cast %48 : vector<1x1x16x16x4xbf16> to vector<16x16x4xbf16>
    %50 = vector.shape_cast %49 : vector<16x16x4xbf16> to vector<256x4xbf16>
    %c7 = arith.constant 7 : index
    %c0_60 = arith.constant 0 : index
    %c0_61 = arith.constant 0 : index
    %51 = vector.load %arg3[%c7, %c0_60, %c0_61] : memref<9x4x8xbf16, #tpu.memory_space<vmem>>, vector<1x4x8xbf16>
    %52 = vector.shape_cast %51 : vector<1x4x8xbf16> to vector<4x8xbf16>
    %cst_62 = arith.constant dense<0.000000e+00> : vector<256x8xf32>
    %53 = tpu.matmul %50, %52, %cst_62 {dimension_numbers = #tpu.dot_dimension_numbers<[1], [0], [0], [1], [0, 0, 1, 1], [], []>} : vector<256x4xbf16>, vector<4x8xbf16>, vector<256x8xf32> -> vector<256x8xf32>
    %54 = arith.addf %47, %53 : vector<256x8xf32>
    %c0_63 = arith.constant 0 : index
    %c0_64 = arith.constant 0 : index
    %c2_65 = arith.constant 2 : index
    %c2_66 = arith.constant 2 : index
    %c0_67 = arith.constant 0 : index
    %55 = vector.load %arg2[%c0_63, %c0_64, %c2_65, %c2_66, %c0_67] : memref<1x1x18x18x4xbf16, #tpu.memory_space<vmem>>, vector<1x1x16x16x4xbf16>
    %56 = vector.shape_cast %55 : vector<1x1x16x16x4xbf16> to vector<16x16x4xbf16>
    %57 = vector.shape_cast %56 : vector<16x16x4xbf16> to vector<256x4xbf16>
    %c8 = arith.constant 8 : index
    %c0_68 = arith.constant 0 : index
    %c0_69 = arith.constant 0 : index
    %58 = vector.load %arg3[%c8, %c0_68, %c0_69] : memref<9x4x8xbf16, #tpu.memory_space<vmem>>, vector<1x4x8xbf16>
    %59 = vector.shape_cast %58 : vector<1x4x8xbf16> to vector<4x8xbf16>
    %cst_70 = arith.constant dense<0.000000e+00> : vector<256x8xf32>
    %60 = tpu.matmul %57, %59, %cst_70 {dimension_numbers = #tpu.dot_dimension_numbers<[1], [0], [0], [1], [0, 0, 1, 1], [], []>} : vector<256x4xbf16>, vector<4x8xbf16>, vector<256x8xf32> -> vector<256x8xf32>
    %61 = arith.addf %54, %60 : vector<256x8xf32>
    %cst_71 = arith.constant dense<0.000000e+00> : vector<8xf32>
    %62 = vector.multi_reduction <add>, %61, %cst_71 [0] : vector<256x8xf32> to vector<8xf32>
    %63 = vector.shape_cast %62 : vector<8xf32> to vector<1x8xf32>
    %cst_72 = arith.constant 3.906250e-03 : f32
    %64 = vector.broadcast %cst_72 : f32 to vector<1x8xf32>
    %65 = arith.mulf %63, %64 : vector<1x8xf32>
    %66 = vector.broadcast %65 : vector<1x8xf32> to vector<256x8xf32>
    %67 = arith.subf %61, %66 : vector<256x8xf32>
    %c0_73 = arith.constant 0 : index
    %c0_74 = arith.constant 0 : index
    %c0_75 = arith.constant 0 : index
    %c0_76 = arith.constant 0 : index
    %68 = vector.load %arg4[%c0_73, %c0_74, %c0_75, %c0_76] : memref<1x1x2x8xf32, #tpu.memory_space<vmem>>, vector<1x1x1x8xf32>
    %69 = vector.shape_cast %68 : vector<1x1x1x8xf32> to vector<1x8xf32>
    %70 = vector.shape_cast %63 : vector<1x8xf32> to vector<1x1x1x8xf32>
    tpu.vector_store %arg4[%c0_73, %c0_74, %c0_75, %c0_76], %70 {strides = array<i32>} : memref<1x1x2x8xf32, #tpu.memory_space<vmem>>, vector<1x1x1x8xf32>,
    %71 = arith.mulf %67, %67 : vector<256x8xf32>
    %cst_77 = arith.constant dense<0.000000e+00> : vector<8xf32>
    %72 = vector.multi_reduction <add>, %71, %cst_77 [0] : vector<256x8xf32> to vector<8xf32>
    %73 = vector.shape_cast %72 : vector<8xf32> to vector<1x8xf32>
    %c0_78 = arith.constant 0 : index
    %c0_79 = arith.constant 0 : index
    %c1_80 = arith.constant 1 : index
    %c0_81 = arith.constant 0 : index
    %74 = vector.load %arg4[%c0_78, %c0_79, %c1_80, %c0_81] : memref<1x1x2x8xf32, #tpu.memory_space<vmem>>, vector<1x1x1x8xf32>
    %75 = vector.shape_cast %74 : vector<1x1x1x8xf32> to vector<1x8xf32>
    %76 = vector.shape_cast %73 : vector<1x8xf32> to vector<1x1x1x8xf32>
    tpu.vector_store %arg4[%c0_78, %c0_79, %c1_80, %c0_81], %76 {strides = array<i32>} : memref<1x1x2x8xf32, #tpu.memory_space<vmem>>, vector<1x1x1x8xf32>,
    return
  }
  func.func @transform_0(%arg0: i32, %arg1: i32) -> (i32, i32, i32, i32, i32) {
    %c0_i32 = arith.constant 0 : i32
    %c0_i32_0 = arith.constant 0 : i32
    %c0_i32_1 = arith.constant 0 : i32
    %c0_i32_2 = arith.constant 0 : i32
    return %arg0, %arg1, %c0_i32, %c0_i32_0, %c0_i32_1 : i32, i32, i32, i32, i32
  }
  func.func @transform_1(%arg0: i32, %arg1: i32) -> (i32, i32, i32) {
    %c0_i32 = arith.constant 0 : i32
    %c0_i32_0 = arith.constant 0 : i32
    %c0_i32_1 = arith.constant 0 : i32
    %c0_i32_2 = arith.constant 0 : i32
    return %c0_i32, %c0_i32_0, %c0_i32_1 : i32, i32, i32
  }
  func.func @transform_2(%arg0: i32, %arg1: i32) -> (i32, i32, i32, i32) {
    %c0_i32 = arith.constant 0 : i32
    %c0_i32_0 = arith.constant 0 : i32
    %c0_i32_1 = arith.constant 0 : i32
    return %arg0, %arg1, %c0_i32, %c0_i32_0 : i32, i32, i32, i32
  }
}

</mosaic_0001>

<bundles_post_ra>
// kernel: tpu_custom_call.1
= control target key start
LH: loop header
LB: loop body
LE: loop exit
PB: predicated region body
PF: predicated region fallthrough
CT: control target
= control target key end

     0   :  { %7 = vsyncpa [#allocation3], 0  ;;  %s2714_s0 = inlined_call_operand.vmem [shape: bf16[2,1,18,18,4], index: 0, kind: input, shape index: {}]   ;;  %s2715_s1 = inlined_call_operand.vmem [shape: bf16[36,8], index: 1, kind: input, shape index: {}]   ;;  %s2716_s2 = inlined_call_operand.hbm [shape: f32[2,1,2,8], index: 2, kind: output, shape index: {}]  }
   0x1   :  { %9 = vsyncpa [#allocation3 + $0x1], 0  ;;  %s1888_s9 = smov 0   ;;  %s1890_s10 = smov 0  }
   0x2   :  { %s1892_s11 = smov 0   ;;  %s1894_s12 = smov 0  }
   0x3   :  { %s1896_s13 = smov 0   ;;  %s1898_s14 = smov 0  }
   0x4 LB: > { %s1522_s15 = sadd.s32 4294967295, %s1866_s14   ;;  %s1523_s16 = sadd.s32 4294967294, %s1866_s14   ;;  %s1866_s14 = sphi %s1898_s14, %s15_s14   ;;  %s1862_s13 = sphi %s1896_s13, %s2723_s13   ;;  %s1858_s12 = sphi %s1894_s12, %s2722_s12   ;;  %s1854_s11 = sphi %s1892_s11, %s2721_s11   ;;  %s1850_s10 = sphi %s1890_s10, %s2720_s10   ;;  %s1846_s9 = sphi %s1888_s9, %s2719_s9  }
   0x5   : > { %s27_s17 = sadd.s32 1, %s1862_s13  ;;  %s85_s18 = sadd.s32 1, %s1854_s11 }
   0x6   : > { %p29_p0 = scmp.ge.s32.totalorder %s27_s17, 2  ;;  %p95_p1 = scmp.ne.s32.totalorder %s1854_s11, %s1850_s10 }
   0x7   : > { %p96_p2 = scmp.eq.s32.totalorder %s1522_s15, 1  ;;  %p101_p3 = scmp.ne.s32.totalorder %s1850_s10, %s1846_s9 }
   0x8   : > { %s2725_s17 = smov (%p29_p0, %s27_s17), 0  ;;  %p102_p5 = scmp.eq.s32.totalorder %s1523_s16, 1 }
   0x9   : > { %p1928_p4 = por %p96_p2, %p95_p1  ;;  %s80_s20 = ssub.s32 %s1862_s13, %s2725_s17 }
   0xa   : > { %p1526_p6 = scmp.ge.s32.totalorder %s1866_s14, 1  ;;  %p83_p7 = scmp.eq.s32.totalorder %s80_s20, 0 }
   0xb   : > { %p1935_p8 = por %p102_p5, %p101_p3  ;;  %p135_p9 = scmp.lt.s32.totalorder %s1866_s14, 3 }
   0xc   : > { %s1941_s22 = scalar_select %p83_p7, %s1854_s11, %s85_s18  }
   0xd   : > { %p136_p10 = pnand %p1526_p6, %p135_p9 }
   0xe   : > { %p161_p11 = scmp.lt.s32.totalorder (!%p136_p10), %s1858_s12, 1  ;;  %vm694_vm0 = vcmask (!%p136_p10), 1046528   ;;  %s1868_s28 = smov (!%p136_p10), 8   ;;  %vm387_vm1 = vsmask.f32 (!%p136_p10), 7424  ;;  %vm1059_vm2 = vcmask (!%p136_p10), 1041408  }
   0xf   : > { %139 = sbr.rel (%p136_p10) target bundleno = 675 (0x2a3), region = 28  ;;  %s1869_s29 = smov (!%p136_p10), 4   ;;  %vm785_vm3 = vcmask (!%p136_p10), 31744   ;;  %vm822_vm4 = vcmask (!%p136_p10), 64512   ;;  %vm940_vm5 = vcmask (!%p136_p10), 97280   ;;  %vm973_vm6 = vcmask (!%p136_p10), 195584  }
  0x10   : > { %s1870_s8 = smov (!%p136_p10), 12   ;;  %s1871_s15 = smov (!%p136_p10), 24   ;;  %vm1026_vm7 = vcmask (!%p136_p10), 293888   ;;  %vm1326_vm8 = vcmask (!%p136_p10), 57344  }
  0x11   : > { %s158_s16 = sand.u32 (!%p136_p10), 1, %s1850_s10  }
  0x12   : > { %s1527_s18 = sshll.u32 (!%p136_p10), %s158_s16, 1 }
  0x13   : > { %s2541_s20 = scalar_lea.vmem (!%p136_p10), [#allocation2], %s1527_s18 }
  0x16   : > { %s162_s23 = scalar_select %p161_p11, %s1858_s12, 1 }
  0x18   : > { %s1671_s24 = smul.u32 216, %s162_s23  ;;  %s1603_s23 = sshll.u32 %s1858_s12, 5 }
  0x19   : > { %s1872_s12 = smov [#allocation2]  }
  0x1a   : > { %s1948_s27 = scalar_lea.vmem %s2714_s0, %s1671_s24  ;;  %s1445_s24 = sshll.u32 %s2541_s20, 4  ;;  %s2665_s24 = int_to_ptr.vmem [resolvable:$true] %s1445_s24 }
  0x1b   : > { %v176_v0 = vld [vmem:[%s1948_s27 + $0x1c] sm:$0xf]  ;;  %v227_v1 = vld [vmem:[%s1948_s27 + $0x18] sm:$0xe]  ;;  %v174_v4 = vld [vmem:[%s1948_s27 + $0x10] sm:$0xf] }
  0x1c   : > { %v1953_v2 = vld [vmem:[%s1948_s27 + $0x20] ss:$0 sps:$4 sm:$0x11]   ;;  %v1567_v3 = vcombine.low %v227_v1, %v176_v0  ;;  %v226_v5 = vld [vmem:[%s1948_s27 + $0xc] sm:$0xe]  ;;  %s1792_s30 = sshll.u32 %s1872_s12, 4  ;;  %s1793_s30 = int_to_ptr.vmem [resolvable:$false] %s1792_s30 }
  0x1d   : > { %v702_v7 = vrot.slane %v1953_v2, 1  ;;  %v1734_v8 = vld [vmem:[%s1948_s27 + $0x14] ss:$0 sps:$4 sm:$0x11]   ;;  %v1566_v9 = vcombine.low %v226_v5, %v174_v4  ;;  %v420_v10 = vshll.u32 %v1953_v2, 16  ;;  %s1794_s3 = scalar_lea.vmem %s1793_s30, 64  ;;  %p1795_p1 = scmp.lt.s32.totalorder %s2665_s24, %s1793_s30 }
  0x1e   : > { %v701_v6 = vrot.slane %v1567_v3, 1  ;;  %v175_v11 = vld [vmem:[%s1948_s27 + $0x18] sm:$0xf]  ;;  %v173_v12 = vld [vmem:[%s1948_s27 + $0xc] sm:$0xf]  ;;  %v699_v17 = vrot.slane %v1734_v8, 1 }
  0x1f   : > { %v179_v13 = vld [vmem:[%s1948_s27 + $0x30] sm:$0xf]  ;;  %v180_v14 = vld [vmem:[%s1948_s27 + $0x34] sm:$0xf]  ;;  %v698_v16 = vrot.slane %v1566_v9, 1  ;;  %v408_v22 = vshll.u32 %v1734_v8, 16  ;;  %v1972_v24 = vcombine.low %v173_v12, %v174_v4  ;;  %v1981_v32 = vcombine.low %v175_v11, %v176_v0 }
  0x20   : > { %v703_v15 = vsel %vm694_vm0, %v701_v6, %v702_v7  ;;  %v229_v18 = vld [vmem:[%s1948_s27 + $0x30] sm:$0xe]  ;;  %v1968_v19 = vld [vmem:[%s1948_s27 + $0x38] ss:$0 sps:$4 sm:$0x11]   ;;  %v1983_v33 = vcombine.low %v179_v13, %v180_v14  ;;  %v422_v58 = vrot.slane %v420_v10, 1 }
  0x21   : > { %753 = vrot.lane.b32.xlu0 %v703_v15, %s1868_s28  ;;  %v1569_v20 = vcombine.low %v229_v18, %v180_v14  ;;  %v177_v21 = vld [vmem:[%s1948_s27 + $0x24] sm:$0xf]  ;;  %v700_v23 = vsel %vm694_vm0, %v698_v16, %v699_v17  ;;  %v178_v25 = vld [vmem:[%s1948_s27 + $0x28] sm:$0xf]  ;;  %v708_v28 = vrot.slane %v1968_v19, 1  ;;  %v401_v43 = vshrl.u32 %v1972_v24, 16 }
  0x22   : > { %v228_v26 = vld [vmem:[%s1948_s27 + $0x24] sm:$0xe]  ;;  %751 = vrot.lane.b32.xlu1 %v700_v23, %s1868_s28  ;;  %v1978_v29 = vcombine.low %v177_v21, %v178_v25  ;;  %v1741_v30 = vld [vmem:[%s1948_s27 + $0x2c] ss:$0 sps:$4 sm:$0x11]   ;;  %v403_v44 = vshll.u32 %v1972_v24, 16 }
  0x23   : > { %v707_v27 = vrot.slane %v1569_v20, 1  ;;  %v1568_v31 = vcombine.low %v228_v26, %v178_v25  ;;  %v181_v34 = vld [vmem:[%s1948_s27 + $0x3c] sm:$0xf]  ;;  %v182_v35 = vld [vmem:[%s1948_s27 + $0x40] sm:$0xf]  ;;  %v705_v38 = vrot.slane %v1741_v30, 1 }
  0x24   : > { %v230_v39 = vld [vmem:[%s1948_s27 + $0x3c] sm:$0xe]  ;;  %v1989_v40 = vcombine.low %v181_v34, %v182_v35  ;;  %v1744_v41 = vld [vmem:[%s1948_s27 + $0x44] ss:$0 sps:$4 sm:$0x11]   ;;  %v410_v45 = vrot.slane %v408_v22, 1 }
  0x25   : > { %v709_v36 = vsel %vm694_vm0, %v707_v27, %v708_v28  ;;  %v704_v37 = vrot.slane %v1568_v31, 1  ;;  %v1570_v42 = vcombine.low %v230_v39, %v182_v35  ;;  %v425_v47 = vshrl.u32 %v1978_v29, 16  ;;  %v183_v54 = vld [vmem:[%s1948_s27 + $0x48] sm:$0xf]  ;;  %v184_v59 = vld [vmem:[%s1948_s27 + $0x4c] sm:$0xf] }
  0x26   : > { %757 = vrot.lane.b32.xlu0 %v709_v36, %s1868_s28  ;;  %v427_v48 = vshll.u32 %v1978_v29, 16  ;;  %v432_v49 = vshll.u32 %v1741_v30, 16  ;;  %v711_v51 = vrot.slane %v1744_v41, 1  ;;  %v405_v52 = vrot.slane %v403_v44, 1  ;;  %v185_v1 = vld [vmem:[%s1948_s27 + $0x54] sm:$0xf] }
  0x27   : > { %v706_v46 = vsel %vm694_vm0, %v704_v37, %v705_v38  ;;  %v710_v50 = vrot.slane %v1570_v42, 1  ;;  %v413_v53 = vshrl.u32 %v1981_v32, 16  ;;  %v415_v57 = vshll.u32 %v1981_v32, 16  ;;  %v2007_v0 = vld [vmem:[%s1948_s27 + $0x50] ss:$0 sps:$4 sm:$0x11]  }
  0x28   : > { %755 = vrot.lane.b32.xlu1 %v706_v46, %s1868_s28  ;;  %v429_v55 = vrot.slane %v427_v48, 1  ;;  %v434_v56 = vrot.slane %v432_v49, 1  ;;  %v406_v61 = vor.u32 %v405_v52, %v401_v43  ;;  %v449_v62 = vshrl.u32 %v1989_v40, 16  ;;  %v186_v6 = vld [vmem:[%s1948_s27 + $0x58] sm:$0xf] }
  0x29   : > { %v712_v60 = vsel %vm694_vm0, %v710_v50, %v711_v51  ;;  %v451_v63 = vshll.u32 %v1989_v40, 16  ;;  %v417_v3 = vrot.slane %v415_v57, 1  ;;  %v456_v4 = vshll.u32 %v1744_v41, 16  ;;  %v1749_v15 = vld [vmem:[%s1948_s27 + $0x5c] ss:$0 sps:$4 sm:$0x11]  }
  0x2a   : > { %v430_v2 = vor.u32 %v429_v55, %v425_v47  ;;  %v437_v5 = vshrl.u32 %v1983_v33, 16  ;;  %v411_v7 = vsel %vm387_vm1, %v406_v61, %v410_v45  ;;  %v439_v9 = vshll.u32 %v1983_v33, 16  ;;  %v231_v16 = vld [vmem:[%s1948_s27 + $0x48] sm:$0xe]  ;;  %v187_v27 = vld [vmem:[%s1948_s27 + $0x60] sm:$0xf] }
  0x2b   : > { %v453_v8 = vrot.slane %v451_v63, 1  ;;  %v444_v10 = vshll.u32 %v1968_v19, 16  ;;  %606 = vrot.lane.b32.xlu0 %v411_v7, %s1869_s29  ;;  %v418_v12 = vor.u32 %v417_v3, %v413_v53  ;;  %v458_v13 = vrot.slane %v456_v4, 1  ;;  %v232_v19 = vld [vmem:[%s1948_s27 + $0x54] sm:$0xe] }
  0x2c   : > { %759 = vrot.lane.b32.xlu1 %v712_v60, %s1868_s28  ;;  %v435_v11 = vsel %vm387_vm1, %v430_v2, %v434_v56  ;;  %v2018_v14 = vcombine.low %v183_v54, %v184_v59  ;;  %v441_v18 = vrot.slane %v439_v9, 1  ;;  %v468_v21 = vshll.u32 %v2007_v0, 16  ;;  %v188_v28 = vld [vmem:[%s1948_s27 + $0x64] sm:$0xf]  ;;  %v189_v36 = vld [vmem:[%s1948_s27 + $0x6c] sm:$0xf] }
  0x2d   : > { %v454_v17 = vor.u32 %v453_v8, %v449_v62  ;;  %v446_v20 = vrot.slane %v444_v10, 1  ;;  %v423_v22 = vsel %vm387_vm1, %v418_v12, %v422_v58  ;;  %v2027_v26 = vcombine.low %v185_v1, %v186_v6  ;;  %v2038_v42 = vld [vmem:[%s1948_s27 + $0x68] ss:$0 sps:$4 sm:$0x11]   ;;  %v190_v47 = vld [vmem:[%s1948_s27 + $0x70] sm:$0xf] }
  0x2e   : > { %v461_v23 = vshrl.u32 %v2018_v14, 16  ;;  %v463_v25 = vshll.u32 %v2018_v14, 16  ;;  %v442_v31 = vor.u32 %v441_v18, %v437_v5  ;;  %v470_v34 = vrot.slane %v468_v21, 1  ;;  %v2044_v52 = vld [vmem:[%s1948_s27 + $0x74] ss:$0 sps:$4 sm:$0x11]  }
  0x2f   : > { %v459_v30 = vsel %vm387_vm1, %v454_v17, %v458_v13  ;;  %v480_v35 = vshll.u32 %v1749_v15, 16  ;;  %608 = vrot.lane.b32.xlu0 %v423_v22, %s1869_s29  ;;  %v473_v38 = vshrl.u32 %v2027_v26, 16  ;;  %v475_v39 = vshll.u32 %v2027_v26, 16  ;;  %v233_v57 = vld [vmem:[%s1948_s27 + $0x60] sm:$0xe] }
  0x30   : > { %610 = vrot.lane.b32.xlu1 %v435_v11, %s1869_s29  ;;  %v465_v37 = vrot.slane %v463_v25, 1  ;;  %v1571_v41 = vcombine.low %v231_v16, %v184_v59  ;;  %v447_v43 = vsel %vm387_vm1, %v442_v31, %v446_v20  ;;  %v714_v45 = vrot.slane %v2007_v0, 1  ;;  %v234_v60 = vld [vmem:[%s1948_s27 + $0x6c] sm:$0xe]  ;;  %v191_v61 = vld [vmem:[%s1948_s27 + $0x78] sm:$0xf] }
  0x31   : > { %v482_v44 = vrot.slane %v480_v35, 1  ;;  %v1572_v46 = vcombine.low %v232_v19, %v186_v6  ;;  %v477_v49 = vrot.slane %v475_v39, 1  ;;  %v717_v51 = vrot.slane %v1749_v15, 1  ;;  %v192_v2 = vld [vmem:[%s1948_s27 + $0x7c] sm:$0xf] }
  0x32   : > { %v466_v48 = vor.u32 %v465_v37, %v461_v23  ;;  %v713_v50 = vrot.slane %v1571_v41, 1  ;;  %v2047_v54 = vcombine.low %v187_v27, %v188_v28  ;;  %v492_v55 = vshll.u32 %v2038_v42, 16  ;;  %v2067_v7 = vld [vmem:[%s1948_s27 + $0x80] ss:$0 sps:$4 sm:$0x11]  }
  0x33   : > { %v716_v53 = vrot.slane %v1572_v46, 1  ;;  %v2050_v56 = vcombine.low %v189_v36, %v190_v47  ;;  %612 = vrot.lane.b32.xlu0 %v447_v43, %s1869_s29  ;;  %v478_v58 = vor.u32 %v477_v49, %v473_v38  ;;  %v504_v59 = vshll.u32 %v2044_v52, 16  ;;  %v193_v12 = vld [vmem:[%s1948_s27 + $0x84] sm:$0xf]  ;;  %v194_v13 = vld [vmem:[%s1948_s27 + $0x88] sm:$0xf] }
  0x34   : > { %614 = vrot.lane.b32.xlu1 %v459_v30, %s1869_s29  ;;  %v471_v62 = vsel %vm387_vm1, %v466_v48, %v470_v34  ;;  %v715_v63 = vsel %vm694_vm0, %v713_v50, %v714_v45  ;;  %v485_v0 = vshrl.u32 %v2047_v54, 16  ;;  %v487_v1 = vshll.u32 %v2047_v54, 16  ;;  %v2081_v23 = vld [vmem:[%s1948_s27 + $0x8c] ss:$0 sps:$4 sm:$0x11]  }
  0x35   : > { %v483_v3 = vsel %vm387_vm1, %v478_v58, %v482_v44  ;;  %v718_v4 = vsel %vm694_vm0, %v716_v53, %v717_v51  ;;  %v497_v5 = vshrl.u32 %v2050_v56, 16  ;;  %v499_v6 = vshll.u32 %v2050_v56, 16  ;;  %v235_v31 = vld [vmem:[%s1948_s27 + $0x78] sm:$0xe]  ;;  %v236_v36 = vld [vmem:[%s1948_s27 + $0x84] sm:$0xe] }
  0x36   : > { %v489_v8 = vrot.slane %v487_v1, 1  ;;  %v494_v9 = vrot.slane %v492_v55, 1  ;;  %v1573_v10 = vcombine.low %v233_v57, %v188_v28  ;;  %v1574_v11 = vcombine.low %v234_v60, %v190_v47  ;;  %v195_v37 = vld [vmem:[%s1948_s27 + $0x90] sm:$0xf]  ;;  %v2095_v43 = vld [vmem:[%s1948_s27 + $0x94] sm:$0xf] }
  0x37   : > { %616 = vrot.lane.b32.xlu0 %v471_v62, %s1869_s29  ;;  %v501_v15 = vrot.slane %v499_v6, 1  ;;  %v506_v16 = vrot.slane %v504_v59, 1  ;;  %v720_v17 = vrot.slane %v2038_v42, 1  ;;  %v2074_v18 = vcombine.low %v191_v61, %v192_v2  ;;  %v197_v51 = vld [vmem:[%s1948_s27 + $0x9c] sm:$0xf] }
  0x38   : > { %618 = vrot.lane.b32.xlu1 %v483_v3, %s1869_s29  ;;  %v490_v20 = vor.u32 %v489_v8, %v485_v0  ;;  %v723_v21 = vrot.slane %v2044_v52, 1  ;;  %v516_v19 = vshll.u32 %v2067_v7, 16  ;;  %v2078_v22 = vcombine.low %v193_v12, %v194_v13  ;;  %v198_v55 = vld [vmem:[%s1948_s27 + $0xa0] sm:$0xf]  ;;  %v237_v3 = vld [vmem:[%s1948_s27 + $0x90] sm:$0xe] }
  0x39   : > { %v502_v25 = vor.u32 %v501_v15, %v497_v5  ;;  %v719_v27 = vrot.slane %v1573_v10, 1  ;;  %v722_v28 = vrot.slane %v1574_v11, 1  ;;  %v511_v30 = vshll.u32 %v2074_v18, 16  ;;  %v2110_v61 = vld [vmem:[%s1948_s27 + $0x98] ss:$0 sps:$4 sm:$0x11]  }
  0x3a   : > { %v509_v34 = vshrl.u32 %v2074_v18, 16  ;;  %v521_v35 = vshrl.u32 %v2078_v22, 16  ;;  %v523_v41 = vshll.u32 %v2078_v22, 16  ;;  %v528_v42 = vshll.u32 %v2081_v23, 16  ;;  %v200_v5 = vld [vmem:[%s1948_s27 + $0xac] sm:$0xf] }
  0x3b   : > { %761 = vrot.lane.b32.xlu0 %v715_v63, %s1868_s28  ;;  %v507_v38 = vsel %vm387_vm1, %v502_v25, %v506_v16  ;;  %v513_v39 = vrot.slane %v511_v30, 1  ;;  %v495_v44 = vsel %vm387_vm1, %v490_v20, %v494_v9  ;;  %v1575_v45 = vcombine.low %v235_v31, %v192_v2  ;;  %v2113_v62 = vld [vmem:[%s1948_s27 + $0xa4] ss:$0 sps:$4 sm:$0x11]   ;;  %v238_v8 = vld [vmem:[%s1948_s27 + $0x9c] sm:$0xe] }
  0x3c   : > { %763 = vrot.lane.b32.xlu1 %v718_v4, %s1868_s28  ;;  %v1576_v46 = vcombine.low %v236_v36, %v194_v13  ;;  %v518_v47 = vrot.slane %v516_v19, 1  ;;  %v525_v48 = vrot.slane %v523_v41, 1  ;;  %v726_v49 = vrot.slane %v2067_v7, 1  ;;  %v199_v4 = vld [vmem:[%s1948_s27 + $0xa8] sm:$0xf] }
  0x3d   : > { %v2100_v50 = vcombine.low %v195_v37, %v2095_v43  ;;  %v530_v52 = vrot.slane %v528_v42, 1  ;;  %v729_v53 = vrot.slane %v2081_v23, 1  ;;  %v721_v57 = vsel %vm694_vm0, %v719_v27, %v720_v17  ;;  %v2131_v13 = vld [vmem:[%s1948_s27 + $0xb0] ss:$0 sps:$4 sm:$0x11]  }
  0x3e   : > { %v724_v58 = vsel %vm694_vm0, %v722_v28, %v723_v21  ;;  %v514_v59 = vor.u32 %v513_v39, %v509_v34  ;;  %v526_v60 = vor.u32 %v525_v48, %v521_v35  ;;  %v725_v63 = vrot.slane %v1575_v45, 1  ;;  %v201_v21 = vld [vmem:[%s1948_s27 + $0xb4] sm:$0xf]  ;;  %v202_v19 = vld [vmem:[%s1948_s27 + $0xb8] sm:$0xf] }
  0x3f   : > { %620 = vrot.lane.b32.xlu0 %v495_v44, %s1869_s29  ;;  %v728_v0 = vrot.slane %v1576_v46, 1  ;;  %v535_v1 = vshll.u32 %v2100_v50, 16  ;;  %v2116_v2 = vcombine.low %v197_v51, %v198_v55  ;;  %v533_v6 = vshrl.u32 %v2100_v50, 16  ;;  %v239_v28 = vld [vmem:[%s1948_s27 + $0xa8] sm:$0xe] }
  0x40   : > { %622 = vrot.lane.b32.xlu1 %v507_v38, %s1869_s29  ;;  %v531_v9 = vsel %vm387_vm1, %v526_v60, %v530_v52  ;;  %v540_v10 = vshll.u32 %v2110_v61, 16  ;;  %v552_v12 = vshll.u32 %v2113_v62, 16  ;;  %v519_v15 = vsel %vm387_vm1, %v514_v59, %v518_v47  ;;  %v2148_v36 = vld [vmem:[%s1948_s27 + $0xbc] ss:$0 sps:$4 sm:$0x11]  }
  0x41   : > { %v547_v7 = vshll.u32 %v2116_v2, 16  ;;  %v545_v11 = vshrl.u32 %v2116_v2, 16  ;;  %v537_v16 = vrot.slane %v535_v1, 1  ;;  %v2134_v20 = vcombine.low %v199_v4, %v200_v5  ;;  %v240_v42 = vld [vmem:[%s1948_s27 + $0xb4] sm:$0xe] }
  0x42   : > { %v727_v23 = vsel %vm694_vm0, %v725_v63, %v726_v49  ;;  %v1577_v25 = vcombine.low %v237_v3, %v2095_v43  ;;  %v1578_v27 = vcombine.low %v238_v8, %v198_v55  ;;  %v730_v30 = vsel %vm694_vm0, %v728_v0, %v729_v53  ;;  %v203_v47 = vld [vmem:[%s1948_s27 + $0xc0] sm:$0xf]  ;;  %v204_v48 = vld [vmem:[%s1948_s27 + $0xc4] sm:$0xf] }
  0x43   : > { %765 = vrot.lane.b32.xlu0 %v721_v57, %s1868_s28  ;;  %v549_v17 = vrot.slane %v547_v7, 1  ;;  %v559_v31 = vshll.u32 %v2134_v20, 16  ;;  %v564_v34 = vshll.u32 %v2131_v13, 16  ;;  %v2145_v35 = vcombine.low %v201_v21, %v202_v19  ;;  %v1777_v4 = vld [vmem:[%s1948_s27 + $0xc8] ss:$0 sps:$4 sm:$0x11]  }
  0x44   : > { %767 = vrot.lane.b32.xlu1 %v724_v58, %s1868_s28  ;;  %v542_v37 = vrot.slane %v540_v10, 1  ;;  %v554_v39 = vrot.slane %v552_v12, 1  ;;  %v557_v41 = vshrl.u32 %v2134_v20, 16  ;;  %v538_v43 = vor.u32 %v537_v16, %v533_v6  ;;  %v206_v7 = vld [vmem:[%s1948_s27 + $0xd0] sm:$0xf] }
  0x45   : > { %v550_v38 = vor.u32 %v549_v17, %v545_v11  ;;  %v561_v44 = vrot.slane %v559_v31, 1  ;;  %v571_v45 = vshll.u32 %v2145_v35, 16  ;;  %v1579_v46 = vcombine.low %v239_v28, %v200_v5  ;;  %v205_v5 = vld [vmem:[%s1948_s27 + $0xcc] sm:$0xf]  ;;  %v171_v8 = vld [vmem:[%s1948_s27] sm:$0xf] }
  0x46   : > { %v731_v49 = vrot.slane %v1577_v25, 1  ;;  %v732_v51 = vrot.slane %v2110_v61, 1  ;;  %v734_v52 = vrot.slane %v1578_v27, 1  ;;  %v735_v53 = vrot.slane %v2113_v62, 1 }
  0x47   : > { %624 = vrot.lane.b32.xlu0 %v519_v15, %s1869_s29  ;;  %v566_v55 = vrot.slane %v564_v34, 1  ;;  %v569_v57 = vshrl.u32 %v2145_v35, 16  ;;  %v573_v58 = vrot.slane %v571_v45, 1  ;;  %v576_v59 = vshll.u32 %v2148_v36, 16  ;;  %v225_v15 = vld [vmem:[%s1948_s27] sm:$0xe] }
  0x48   : > { %626 = vrot.lane.b32.xlu1 %v531_v9, %s1869_s29  ;;  %v555_v60 = vsel %vm387_vm1, %v550_v38, %v554_v39  ;;  %v738_v61 = vrot.slane %v2131_v13, 1  ;;  %v1580_v63 = vcombine.low %v240_v42, %v202_v19  ;;  %v2164_v62 = vcombine.low %v203_v47, %v204_v48  ;;  %v172_v9 = vld [vmem:[%s1948_s27 + $0x4] sm:$0xf]  ;;  %v1781_v19 = vld [vmem:[%s1948_s27 + $0x8] ss:$0 sps:$4 sm:$0x11]  }
  0x49   : > { %v543_v0 = vsel %vm387_vm1, %v538_v43, %v542_v37  ;;  %v562_v1 = vor.u32 %v561_v44, %v557_v41  ;;  %v737_v3 = vrot.slane %v1579_v46, 1  ;;  %v736_v6 = vsel %vm694_vm0, %v734_v52, %v735_v53  ;;  %v241_v34 = vld [vmem:[%s1948_s27 + $0xc0] sm:$0xe]  ;;  %v242_v41 = vld [vmem:[%s1948_s27 + $0xcc] sm:$0xe] }
  0x4a   : > { %v574_v10 = vor.u32 %v573_v58, %v569_v57  ;;  %v578_v11 = vrot.slane %v576_v59, 1  ;;  %v741_v12 = vrot.slane %v2148_v36, 1  ;;  %v2175_v13 = vcombine.low %v171_v8, %v172_v9 }
  0x4b   : > { %769 = vrot.lane.b32.xlu0 %v727_v23, %s1868_s28  ;;  %v740_v16 = vrot.slane %v1580_v63, 1  ;;  %v581_v17 = vshrl.u32 %v2164_v62, 16  ;;  %v583_v21 = vshll.u32 %v2164_v62, 16  ;;  %v1565_v23 = vcombine.low %v225_v15, %v172_v9  ;;  %v1786_v15 = vld [vmem:[%s2715_s1 + $0x8] sm:$0xff]  }
  0x4c   : > { %771 = vrot.lane.b32.xlu1 %v730_v30, %s1868_s28  ;;  %v733_v25 = vsel %vm694_vm0, %v731_v49, %v732_v51  ;;  %v567_v27 = vsel %vm387_vm1, %v562_v1, %v566_v55  ;;  %v2184_v28 = vcombine.low %v205_v5, %v206_v7  ;;  %v1779_v30 = vld [vmem:[%s1948_s27 + $0xd4] ss:$0 sps:$4 sm:$0x11]   ;;  %v391_v31 = vshll.u32 %v2175_v13, 16  ;;  %s2663_s27 = scalar_lea.hbm %s2716_s2, %s1603_s23 }
  0x4d   : > { %v588_v36 = vshll.u32 %v1777_v4, 16  ;;  %v695_v37 = vrot.slane %v1565_v23, 1  ;;  %v696_v38 = vrot.slane %v1781_v19, 1  ;;  %v744_v39 = vrot.slane %v1777_v4, 1 }
  0x4e   : > { %v579_v42 = vsel %vm387_vm1, %v574_v10, %v578_v11  ;;  %v389_v43 = vshrl.u32 %v2175_v13, 16  ;;  %v1581_v44 = vcombine.low %v241_v34, %v204_v48  ;;  %v1582_v45 = vcombine.low %v242_v41, %v206_v7  ;;  %v1785_v11 = vld [vmem:[%s2715_s1] sm:$0xff]  }
  0x4f   : > { %628 = vrot.lane.b32.xlu0 %v543_v0, %s1869_s29  ;;  %v393_v46 = vrot.slane %v391_v31, 1  ;;  %v396_v47 = vshll.u32 %v1781_v19, 16  ;;  %v697_v49 = vsel %vm694_vm0, %v695_v37, %v696_v38  ;;  %v747_v51 = vrot.slane %v1779_v30, 1  ;;  %1625 = vmatprep.subr.bf16.mxu0 %v1785_v11 }
  0x50   : > { %630 = vrot.lane.b32.xlu1 %v555_v60, %s1869_s29  ;;  %v585_v52 = vrot.slane %v583_v21, 1  ;;  %v595_v53 = vshll.u32 %v2184_v28, 16  ;;  %v743_v55 = vrot.slane %v1581_v44, 1  ;;  %v746_v57 = vrot.slane %v1582_v45, 1  ;;  %1626 = vmatpush3.bf16.msra.mxu0 %v1785_v11 }
  0x51   : > { %v739_v58 = vsel %vm694_vm0, %v737_v3, %v738_v61  ;;  %v742_v60 = vsel %vm694_vm0, %v740_v16, %v741_v12  ;;  %v600_v63 = vshll.u32 %v1779_v30, 16  ;;  %v394_v0 = vor.u32 %v393_v46, %v389_v43  ;;  %1663 = vmatprep.subr.bf16.mxu1 %v1785_v11  ;;  %1627 = vmatprep.subr.bf16.mxu0 %v1786_v15 }
  0x52   : > { %v745_v59 = vsel %vm694_vm0, %v743_v55, %v744_v39  ;;  %v748_v48 = vsel %vm694_vm0, %v746_v57, %v747_v51  ;;  %v398_v1 = vrot.slane %v396_v47, 1  ;;  %v586_v4 = vor.u32 %v585_v52, %v581_v17  ;;  %1666 = vmatpush3.bf16.msra.mxu1 %v1785_v11  ;;  %v1787_v17 = vld [vmem:[%s2715_s1 + $0x10] ss:$0 sps:$4 sm:$0x33]  }
  0x53   : > { %773 = vrot.lane.b32.xlu0 %v733_v25, %s1868_s28  ;;  %v590_v5 = vrot.slane %v588_v36, 1  ;;  %v597_v7 = vrot.slane %v595_v53, 1  ;;  %v602_v9 = vrot.slane %v600_v63, 1  ;;  %1664 = vmatprep.subr.bf16.mxu1 %v1786_v15  ;;  %v1061_v23 = vsel %vm1059_vm2, %v1787_v17, 0 }
  0x54   : > { %775 = vrot.lane.b32.xlu1 %v736_v6, %s1868_s28  ;;  %v593_v6 = vshrl.u32 %v2184_v28, 16  ;;  %v399_v61 = vsel %vm387_vm1, %v394_v0, %v398_v1  ;;  %1628 = vmatpush3.bf16.msra.mxu0 %v1786_v15 }
  0x55   : > { %v591_v3 = vsel %vm387_vm1, %v586_v4, %v590_v5  ;;  %1669 = vmatprep.subr.msk.bf16.mxu0 %vm1059_vm2, %v1787_v17 }
  0x56   : > { %v598_v8 = vor.u32 %v597_v7, %v593_v6  ;;  %1667 = vmatpush3.bf16.msra.mxu1 %v1786_v15 }
  0x57   : > { %632 = vrot.lane.b32.xlu0 %v567_v27, %s1869_s29  ;;  %1670 = vmatprep.subr.msk.bf16.mxu1 %vm1059_vm2, %v1787_v17 }
  0x58   : > { %634 = vrot.lane.b32.xlu1 %v579_v42, %s1869_s29  ;;  %v603_v10 = vsel %vm387_vm1, %v598_v8, %v602_v9  ;;  %1630 = vmatpush3.bf16.msra.mxu0 %v1061_v23 }
  0x5a   : > { %1668 = vmatpush3.bf16.msra.mxu1 %v1061_v23 }
  0x5b   : > { %777 = vrot.lane.b32.xlu0 %v739_v58, %s1868_s28 }
  0x5c   : > { %779 = vrot.lane.b32.xlu1 %v742_v60, %s1868_s28 }
  0x5f   : > { %636 = vrot.lane.b32.xlu0 %v591_v3, %s1869_s29 }
  0x60   : > { %604 = vrot.lane.b32.xlu1 %v399_v61, %s1869_s29 }
  0x63   : > { %638 = vrot.lane.b32.xlu0 %v603_v10, %s1869_s29  ;;  %s1788_s29 = scalar_lea.vmem %s2665_s24, 32 }
  0x64   : > { %781 = vrot.lane.b32.xlu1 %v745_v59, %s1868_s28  ;;  %p1789_p12 = scmp.ne.s32.totalorder %s2665_s24, %s1788_s29  ;;  %p1796_p2 = scmp.lt.s32.totalorder %s1794_s3, %s1788_s29 }
  0x66   : > { %p1790_p13 = pnand %p1789_p12, %p1928_p4  ;;  %p1797_p3 = por %p1796_p2, %p1795_p1 }
  0x67   : > { %749 = vrot.lane.b32.xlu0 %v697_v49, %s1868_s28 }
  0x68   : > { %783 = vrot.lane.b32.xlu1 %v748_v48, %s1868_s28  ;;  %s1431_s28 = scalar_lea.sflag [#allocation3], %s158_s16  ;;  %p1791_p0 = pneg %p1790_p13 }
  0x6a   : > { %p1798_p5 = pnand %p1797_p3, %p1791_p0 }
  0x93   : > { %v754_v12 = vpop.permute.xlu0 %753 }
  0x94   : > { %v752_v16 = vpop.permute.xlu1 %751 }
  0x98   : > { %v758_v21 = vpop.permute.xlu0 %757 }
  0x9a   : > { %v756_v19 = vpop.permute.xlu1 %755 }
  0x9d   : > { %v607_v27 = vpop.permute.xlu0 %606 }
  0x9e   : > { %v760_v25 = vpop.permute.xlu1 %759  ;;  %v789_v30 = vsel %vm785_vm3, %v1972_v24, %v607_v27 }
  0x9f   : > { %v2226_v31 = vsel %vm822_vm4, %v789_v30, %v752_v16 }
  0xa0   : > { %875 = vrot.lane.b32.xlu0 %v2226_v31, %s1870_s8 }
  0xa1   : > { %v609_v36 = vpop.permute.xlu0 %608 }
  0xa2   : > { %v611_v34 = vpop.permute.xlu1 %610  ;;  %v791_v37 = vsel %vm785_vm3, %v1981_v32, %v609_v36 }
  0xa3   : > { %v2233_v38 = vsel %vm822_vm4, %v791_v37, %v754_v12  ;;  %v793_v39 = vsel %vm785_vm3, %v1978_v29, %v611_v34 }
  0xa4   : > { %908 = vrot.lane.b32.xlu0 %v2233_v38, %s1871_s15  ;;  %877 = vrot.lane.b32.xlu1 %v2233_v38, %s1870_s8  ;;  %v2242_v42 = vsel %vm822_vm4, %v793_v39, %v756_v19 }
  0xa5   : > { %v613_v41 = vpop.permute.xlu0 %612 }
  0xa6   : > { %v615_v24 = vpop.permute.xlu1 %614  ;;  %v795_v32 = vsel %vm785_vm3, %v1983_v33, %v613_v41 }
  0xa7   : > { %v2251_v44 = vsel %vm822_vm4, %v795_v32, %v758_v21  ;;  %v797_v45 = vsel %vm785_vm3, %v1989_v40, %v615_v24 }
  0xa8   : > { %879 = vrot.lane.b32.xlu0 %v2242_v42, %s1870_s8  ;;  %910 = vrot.lane.b32.xlu1 %v2242_v42, %s1871_s15  ;;  %v2260_v47 = vsel %vm822_vm4, %v797_v45, %v760_v25 }
  0xa9   : > { %v617_v43 = vpop.permute.xlu0 %616 }
  0xaa   : > { %v619_v29 = vpop.permute.xlu1 %618  ;;  %v799_v49 = vsel %vm785_vm3, %v2018_v14, %v617_v43 }
  0xab   : > { %v801_v53 = vsel %vm785_vm3, %v2027_v26, %v619_v29 }
  0xac   : > { %912 = vrot.lane.b32.xlu0 %v2251_v44, %s1871_s15  ;;  %881 = vrot.lane.b32.xlu1 %v2251_v44, %s1870_s8 }
  0xad   : > { %v762_v46 = vpop.permute.xlu0 %761 }
  0xae   : > { %v764_v33 = vpop.permute.xlu1 %763  ;;  %v2269_v52 = vsel %vm822_vm4, %v799_v49, %v762_v46 }
  0xaf   : > { %v2278_v57 = vsel %vm822_vm4, %v801_v53, %v764_v33 }
  0xb0   : > { %883 = vrot.lane.b32.xlu0 %v2260_v47, %s1870_s8  ;;  %914 = vrot.lane.b32.xlu1 %v2260_v47, %s1871_s15 }
  0xb1   : > { %v621_v51 = vpop.permute.xlu0 %620 }
  0xb2   : > { %v623_v40 = vpop.permute.xlu1 %622  ;;  %v803_v58 = vsel %vm785_vm3, %v2047_v54, %v621_v51 }
  0xb3   : > { %v805_v60 = vsel %vm785_vm3, %v2050_v56, %v623_v40 }
  0xb4   : > { %916 = vrot.lane.b32.xlu0 %v2269_v52, %s1871_s15  ;;  %885 = vrot.lane.b32.xlu1 %v2269_v52, %s1870_s8 }
  0xb5   : > { %v766_v55 = vpop.permute.xlu0 %765 }
  0xb6   : > { %v768_v14 = vpop.permute.xlu1 %767  ;;  %v2287_v48 = vsel %vm822_vm4, %v803_v58, %v766_v55 }
  0xb7   : > { %v2296_v0 = vsel %vm822_vm4, %v805_v60, %v768_v14 }
  0xb8   : > { %887 = vrot.lane.b32.xlu0 %v2278_v57, %s1870_s8  ;;  %918 = vrot.lane.b32.xlu1 %v2278_v57, %s1871_s15 }
  0xb9   : > { %v625_v59 = vpop.permute.xlu0 %624 }
  0xba   : > { %v627_v26 = vpop.permute.xlu1 %626  ;;  %v807_v1 = vsel %vm785_vm3, %v2074_v18, %v625_v59 }
  0xbb   : > { %v809_v6 = vsel %vm785_vm3, %v2078_v22, %v627_v26 }
  0xbc   : > { %920 = vrot.lane.b32.xlu0 %v2287_v48, %s1871_s15  ;;  %889 = vrot.lane.b32.xlu1 %v2287_v48, %s1870_s8 }
  0xbd   : > { %v770_v63 = vpop.permute.xlu0 %769 }
  0xbe   : > { %v772_v54 = vpop.permute.xlu1 %771  ;;  %v2305_v5 = vsel %vm822_vm4, %v807_v1, %v770_v63 }
  0xbf   : > { %v2314_v61 = vsel %vm822_vm4, %v809_v6, %v772_v54 }
  0xc0   : > { %891 = vrot.lane.b32.xlu0 %v2296_v0, %s1870_s8  ;;  %922 = vrot.lane.b32.xlu1 %v2296_v0, %s1871_s15 }
  0xc1   : > { %v629_v4 = vpop.permute.xlu0 %628 }
  0xc2   : > { %v631_v56 = vpop.permute.xlu1 %630  ;;  %v811_v3 = vsel %vm785_vm3, %v2100_v50, %v629_v4 }
  0xc3   : > { %v813_v10 = vsel %vm785_vm3, %v2116_v2, %v631_v56 }
  0xc4   : > { %924 = vrot.lane.b32.xlu0 %v2305_v5, %s1871_s15  ;;  %893 = vrot.lane.b32.xlu1 %v2305_v5, %s1870_s8 }
  0xc5   : > { %v774_v7 = vpop.permute.xlu0 %773 }
  0xc6   : > { %v776_v18 = vpop.permute.xlu1 %775  ;;  %v2323_v9 = vsel %vm822_vm4, %v811_v3, %v774_v7 }
  0xc7   : > { %v2332_v12 = vsel %vm822_vm4, %v813_v10, %v776_v18 }
  0xc8   : > { %895 = vrot.lane.b32.xlu0 %v2314_v61, %s1870_s8  ;;  %926 = vrot.lane.b32.xlu1 %v2314_v61, %s1871_s15 }
  0xc9   : > { %v633_v8 = vpop.permute.xlu0 %632 }
  0xca   : > { %v635_v22 = vpop.permute.xlu1 %634  ;;  %v815_v15 = vsel %vm785_vm3, %v2134_v20, %v633_v8 }
  0xcb   : > { %v817_v21 = vsel %vm785_vm3, %v2145_v35, %v635_v22 }
  0xcc   : > { %928 = vrot.lane.b32.xlu0 %v2323_v9, %s1871_s15  ;;  %897 = vrot.lane.b32.xlu1 %v2323_v9, %s1870_s8 }
  0xcd   : > { %v778_v11 = vpop.permute.xlu0 %777 }
  0xce   : > { %v780_v50 = vpop.permute.xlu1 %779  ;;  %v2341_v17 = vsel %vm822_vm4, %v815_v15, %v778_v11 }
  0xcf   : > { %v2352_v23 = vsel %vm822_vm4, %v817_v21, %v780_v50 }
  0xd0   : > { %899 = vrot.lane.b32.xlu0 %v2332_v12, %s1870_s8  ;;  %930 = vrot.lane.b32.xlu1 %v2332_v12, %s1871_s15 }
  0xd1   : > { %v637_v16 = vpop.permute.xlu0 %636 }
  0xd2   : > { %v605_v2 = vpop.permute.xlu1 %604  ;;  %v819_v19 = vsel %vm785_vm3, %v2164_v62, %v637_v16 }
  0xd3   : > { %v787_v37 = vsel %vm785_vm3, %v2175_v13, %v605_v2 }
  0xd4   : > { %932 = vrot.lane.b32.xlu0 %v2341_v17, %s1871_s15  ;;  %901 = vrot.lane.b32.xlu1 %v2341_v17, %s1870_s8 }
  0xd5   : > { %v639_v35 = vpop.permute.xlu0 %638 }
  0xd6   : > { %v782_v20 = vpop.permute.xlu1 %781  ;;  %v821_v27 = vsel %vm785_vm3, %v2184_v28, %v639_v35 }
  0xd7   : > { %v856_v25 = vsel %vm822_vm4, %v819_v19, %v782_v20 }
  0xd8   : > { %903 = vrot.lane.b32.xlu0 %v2352_v23, %s1870_s8  ;;  %934 = vrot.lane.b32.xlu1 %v2352_v23, %s1871_s15 }
  0xd9   : > { %v750_v34 = vpop.permute.xlu0 %749 }
  0xda   : > { %v784_v30 = vpop.permute.xlu1 %783  ;;  %v824_v39 = vsel %vm822_vm4, %v787_v37, %v750_v34 }
  0xdb   : > { %v858_v62 = vsel %vm822_vm4, %v821_v27, %v784_v30 }
  0xdc   : > { %936 = vrot.lane.b32.xlu0 %v856_v25, %s1871_s15  ;;  %905 = vrot.lane.b32.xlu1 %v856_v25, %s1870_s8 }
  0xe0   : > { %938 = vrot.lane.b32.xlu1 %v858_v62, %s1871_s15 }
 0x112   : > { %v876_v36 = vpop.permute.xlu0 %875 }
 0x113   : > { %v942_v28 = vsel %vm940_vm5, %v824_v39, %v876_v36 }
 0x116   : > { %v909_v24 = vpop.permute.xlu0 %908  ;;  %v878_v41 = vpop.permute.xlu1 %877 }
 0x117   : > { %v975_v32 = vsel %vm973_vm6, %v942_v28, %v909_v24  ;;  %v944_v29 = vsel %vm940_vm5, %v2226_v31, %v878_v41 }
 0x118   : > { %1631 = vmatprep.mubr.msk.bf16.mxu0 %vm1026_vm7, %v975_v32 }
 0x11a   : > { %v880_v43 = vpop.permute.xlu0 %879  ;;  %v911_v45 = vpop.permute.xlu1 %910 }
 0x11b   : > { %v977_v33 = vsel %vm973_vm6, %v944_v29, %v911_v45  ;;  %v946_v13 = vsel %vm940_vm5, %v2233_v38, %v880_v43 }
 0x11c   : > { %1632 = vmatmul.mubr.msk.bf16.vlgmr.msra.gmra.mrb[0].mxu0 %vm1026_vm7, %v977_v33 }
 0x11e   : > { %v913_v46 = vpop.permute.xlu0 %912  ;;  %v882_v49 = vpop.permute.xlu1 %881 }
 0x11f   : > { %v979_v40 = vsel %vm973_vm6, %v946_v13, %v913_v46  ;;  %v948_v51 = vsel %vm940_vm5, %v2242_v42, %v882_v49 }
 0x120   : > { %1635 = vmatprep.mubr.msk.bf16.mxu0 %vm1026_vm7, %v979_v40 }
 0x122   : > { %v884_v53 = vpop.permute.xlu0 %883  ;;  %v915_v31 = vpop.permute.xlu1 %914 }
 0x123   : > { %v981_v14 = vsel %vm973_vm6, %v948_v51, %v915_v31  ;;  %v950_v55 = vsel %vm940_vm5, %v2251_v44, %v884_v53 }
 0x124   : > { %1636 = vmatmul.mubr.msk.bf16.gmra.mrb[4].mxu0 %vm1026_vm7, %v981_v14 }
 0x126   : > { %v917_v58 = vpop.permute.xlu0 %916  ;;  %v886_v38 = vpop.permute.xlu1 %885 }
 0x127   : > { %v983_v26 = vsel %vm973_vm6, %v950_v55, %v917_v58  ;;  %v952_v59 = vsel %vm940_vm5, %v2260_v47, %v886_v38 }
 0x128   : > { %1639 = vmatprep.mubr.msk.bf16.mxu0 %vm1026_vm7, %v983_v26 }
 0x12a   : > { %v888_v60 = vpop.permute.xlu0 %887  ;;  %v919_v42 = vpop.permute.xlu1 %918 }
 0x12b   : > { %v985_v54 = vsel %vm973_vm6, %v952_v59, %v919_v42  ;;  %v954_v63 = vsel %vm940_vm5, %v2269_v52, %v888_v60 }
 0x12c   : > { %1640 = vmatmul.mubr.msk.bf16.gmra.mrb[8].mxu0 %vm1026_vm7, %v985_v54 }
 0x12e   : > { %v921_v1 = vpop.permute.xlu0 %920  ;;  %v890_v44 = vpop.permute.xlu1 %889 }
 0x12f   : > { %v987_v56 = vsel %vm973_vm6, %v954_v63, %v921_v1  ;;  %v956_v4 = vsel %vm940_vm5, %v2278_v57, %v890_v44 }
 0x130   : > { %1643 = vmatprep.mubr.msk.bf16.mxu0 %vm1026_vm7, %v987_v56 }
 0x132   : > { %v892_v6 = vpop.permute.xlu0 %891  ;;  %v923_v47 = vpop.permute.xlu1 %922 }
 0x133   : > { %v989_v18 = vsel %vm973_vm6, %v956_v4, %v923_v47  ;;  %v958_v7 = vsel %vm940_vm5, %v2287_v48, %v892_v6 }
 0x134   : > { %1644 = vmatmul.mubr.msk.bf16.gmra.mrb[12].mxu0 %vm1026_vm7, %v989_v18 }
 0x136   : > { %v925_v3 = vpop.permute.xlu0 %924  ;;  %v894_v52 = vpop.permute.xlu1 %893 }
 0x137   : > { %v991_v22 = vsel %vm973_vm6, %v958_v7, %v925_v3  ;;  %v960_v8 = vsel %vm940_vm5, %v2296_v0, %v894_v52 }
 0x138   : > { %1647 = vmatprep.mubr.msk.bf16.mxu1 %vm1026_vm7, %v991_v22 }
 0x13a   : > { %v896_v10 = vpop.permute.xlu0 %895  ;;  %v927_v57 = vpop.permute.xlu1 %926 }
 0x13b   : > { %v993_v50 = vsel %vm973_vm6, %v960_v8, %v927_v57  ;;  %v962_v11 = vsel %vm940_vm5, %v2305_v5, %v896_v10 }
 0x13c   : > { %1648 = vmatmul.mubr.msk.bf16.vlgmr.msra.gmra.mrb[0].mxu1 %vm1026_vm7, %v993_v50 }
 0x13e   : > { %v929_v15 = vpop.permute.xlu0 %928  ;;  %v898_v48 = vpop.permute.xlu1 %897 }
 0x13f   : > { %v995_v2 = vsel %vm973_vm6, %v962_v11, %v929_v15  ;;  %v964_v16 = vsel %vm940_vm5, %v2314_v61, %v898_v48 }
 0x140   : > { %1651 = vmatprep.mubr.msk.bf16.mxu1 %vm1026_vm7, %v995_v2 }
 0x142   : > { %v900_v21 = vpop.permute.xlu0 %899  ;;  %v931_v0 = vpop.permute.xlu1 %930 }
 0x143   : > { %v997_v20 = vsel %vm973_vm6, %v964_v16, %v931_v0  ;;  %v966_v19 = vsel %vm940_vm5, %v2323_v9, %v900_v21 }
 0x144   : > { %1652 = vmatmul.mubr.msk.bf16.gmra.mrb[4].mxu1 %vm1026_vm7, %v997_v20 }
 0x146   : > { %v933_v35 = vpop.permute.xlu0 %932  ;;  %v902_v5 = vpop.permute.xlu1 %901 }
 0x147   : > { %v999_v25 = vsel %vm973_vm6, %v966_v19, %v933_v35  ;;  %v968_v27 = vsel %vm940_vm5, %v2332_v12, %v902_v5 }
 0x148   : > { %1655 = vmatprep.mubr.msk.bf16.mxu1 %vm1026_vm7, %v999_v25 }
 0x14a   : > { %v904_v30 = vpop.permute.xlu0 %903  ;;  %v935_v61 = vpop.permute.xlu1 %934 }
 0x14b   : > { %v1001_v62 = vsel %vm973_vm6, %v968_v27, %v935_v61  ;;  %v970_v34 = vsel %vm940_vm5, %v2341_v17, %v904_v30 }
 0x14c   : > { %1656 = vmatmul.mubr.msk.bf16.gmra.mrb[8].mxu1 %vm1026_vm7, %v1001_v62 }
 0x14e   : > { %v937_v36 = vpop.permute.xlu0 %936  ;;  %v906_v9 = vpop.permute.xlu1 %905 }
 0x14f   : > { %v1003_v37 = vsel %vm973_vm6, %v970_v34, %v937_v36  ;;  %v972_v39 = vsel %vm940_vm5, %v2352_v23, %v906_v9 }
 0x150   : > { %1659 = vmatprep.mubr.msk.bf16.mxu1 %vm1026_vm7, %v1003_v37 }
 0x152   : > { %v939_v28 = vpop.permute.xlu1 %938 }
 0x153   : > { %v1005_v12 = vsel %vm973_vm6, %v972_v39, %v939_v28 }
 0x154   : > { %1660 = vmatmul.mubr.msk.bf16.gmra.mrb[12].mxu1 %vm1026_vm7, %v1005_v12 }
 0x1ef   : > { %v2431_v24 = vpop.f32.mrb[0].mxu0 }
 0x1f0   : > { %v2433_v41 = vpop.f32.mrb[1].mxu0  ;;  %v1227_v45 = vsel %vm822_vm4, %v2431_v24, 0.0 }
 0x1f1   : > { %v2435_v32 = vpop.f32.mrb[2].mxu0  ;;  %v1224_v29 = vsel %vm822_vm4, %v2433_v41, 0.0 }
 0x1f2   : > { %v2437_v17 = vpop.f32.mrb[3].mxu0  ;;  %v1229_v13 = vsel %vm822_vm4, %v2435_v32, 0.0 }
 0x1f3   : > { %v1225_v43 = vsel %vm822_vm4, %v2437_v17, 0.0 }
 0x1f4   : > { %v1226_v23 = vadd.f32 %v1225_v43, %v1224_v29 }
 0x1f6   : > { %v1228_v33 = vadd.f32 %v1227_v45, %v1226_v23 }
 0x1f7   : > { %v2447_v46 = vpop.f32.mrb[4].mxu0 }
 0x1f8   : > { %v2449_v49 = vpop.f32.mrb[5].mxu0  ;;  %v1230_v40 = vadd.f32 %v1229_v13, %v1228_v33  ;;  %v1235_v38 = vsel %vm822_vm4, %v2447_v46, 0.0 }
 0x1f9   : > { %v1231_v51 = vsel %vm822_vm4, %v2449_v49, 0.0  ;;  %v2453_v53 = vpop.f32.mrb[6].mxu0 }
 0x1fa   : > { %v1232_v31 = vadd.f32 %v1231_v51, %v1230_v40  ;;  %v2455_v14 = vpop.f32.mrb[7].mxu0  ;;  %v1237_v59 = vsel %vm822_vm4, %v2453_v53, 0.0 }
 0x1fb   : > { %v1233_v55 = vsel %vm822_vm4, %v2455_v14, 0.0 }
 0x1fc   : > { %v1234_v58 = vadd.f32 %v1233_v55, %v1232_v31 }
 0x1fe   : > { %v1236_v26 = vadd.f32 %v1235_v38, %v1234_v58 }
 0x1ff   : > { %v2463_v60 = vpop.f32.mrb[8].mxu0 }
 0x200   : > { %v2465_v42 = vpop.f32.mrb[9].mxu0  ;;  %v1238_v54 = vadd.f32 %v1237_v59, %v1236_v26  ;;  %v1243_v47 = vsel %vm822_vm4, %v2463_v60, 0.0 }
 0x201   : > { %v1239_v63 = vsel %vm822_vm4, %v2465_v42, 0.0  ;;  %v2469_v1 = vpop.f32.mrb[10].mxu0 }
 0x202   : > { %v1240_v44 = vadd.f32 %v1239_v63, %v1238_v54  ;;  %v2471_v56 = vpop.f32.mrb[11].mxu0  ;;  %v1245_v7 = vsel %vm822_vm4, %v2469_v1, 0.0 }
 0x203   : > { %v1241_v4 = vsel %vm822_vm4, %v2471_v56, 0.0 }
 0x204   : > { %v1242_v6 = vadd.f32 %v1241_v4, %v1240_v44 }
 0x206   : > { %v1244_v18 = vadd.f32 %v1243_v47, %v1242_v6 }
 0x207   : > { %v2479_v3 = vpop.f32.mrb[12].mxu0 }
 0x208   : > { %v2481_v52 = vpop.f32.mrb[13].mxu0  ;;  %v1246_v22 = vadd.f32 %v1245_v7, %v1244_v18  ;;  %v1251_v48 = vsel %vm822_vm4, %v2479_v3, 0.0 }
 0x209   : > { %v1247_v8 = vsel %vm822_vm4, %v2481_v52, 0.0  ;;  %v2485_v10 = vpop.f32.mrb[14].mxu0 }
 0x20a   : > { %v1248_v57 = vadd.f32 %v1247_v8, %v1246_v22  ;;  %v2487_v50 = vpop.f32.mrb[15].mxu0  ;;  %v1253_v16 = vsel %vm822_vm4, %v2485_v10, 0.0 }
 0x20b   : > { %v1249_v11 = vsel %vm822_vm4, %v2487_v50, 0.0 }
 0x20c   : > { %v1250_v15 = vadd.f32 %v1249_v11, %v1248_v57 }
 0x20e   : > { %v1252_v2 = vadd.f32 %v1251_v48, %v1250_v15 }
 0x20f   : > { %v2495_v21 = vpop.f32.mrb[0].mxu1 }
 0x210   : > { %v2497_v0 = vpop.f32.mrb[1].mxu1  ;;  %v1254_v20 = vadd.f32 %v1253_v16, %v1252_v2  ;;  %v1259_v61 = vsel %vm822_vm4, %v2495_v21, 0.0 }
 0x211   : > { %v1255_v19 = vsel %vm822_vm4, %v2497_v0, 0.0  ;;  %v2501_v35 = vpop.f32.mrb[2].mxu1 }
 0x212   : > { %v1256_v5 = vadd.f32 %v1255_v19, %v1254_v20  ;;  %v2503_v25 = vpop.f32.mrb[3].mxu1  ;;  %v1261_v34 = vsel %vm822_vm4, %v2501_v35, 0.0 }
 0x213   : > { %v1257_v27 = vsel %vm822_vm4, %v2503_v25, 0.0 }
 0x214   : > { %v1258_v30 = vadd.f32 %v1257_v27, %v1256_v5 }
 0x216   : > { %v1260_v62 = vadd.f32 %v1259_v61, %v1258_v30 }
 0x217   : > { %v2511_v36 = vpop.f32.mrb[4].mxu1 }
 0x218   : > { %v2513_v9 = vpop.f32.mrb[5].mxu1  ;;  %v1262_v37 = vadd.f32 %v1261_v34, %v1260_v62  ;;  %v1267_v45 = vsel %vm822_vm4, %v2511_v36, 0.0 }
 0x219   : > { %v1263_v39 = vsel %vm822_vm4, %v2513_v9, 0.0  ;;  %v2517_v28 = vpop.f32.mrb[6].mxu1 }
 0x21a   : > { %v1264_v12 = vadd.f32 %v1263_v39, %v1262_v37  ;;  %v2519_v29 = vpop.f32.mrb[7].mxu1  ;;  %v1269_v13 = vsel %vm822_vm4, %v2517_v28, 0.0 }
 0x21b   : > { %v1265_v43 = vsel %vm822_vm4, %v2519_v29, 0.0 }
 0x21c   : > { %v1266_v23 = vadd.f32 %v1265_v43, %v1264_v12 }
 0x21e   : > { %v1268_v33 = vadd.f32 %v1267_v45, %v1266_v23 }
 0x21f   : > { %v2527_v40 = vpop.f32.mrb[8].mxu1 }
 0x220   : > { %v1193_v51 = vpop.f32.mrb[9].mxu1  ;;  %v1270_v31 = vadd.f32 %v1269_v13, %v1268_v33  ;;  %v1275_v63 = vsel %vm822_vm4, %v2527_v40, 0.0 }
 0x221   : > { %v1271_v55 = vsel %vm822_vm4, %v1193_v51, 0.0  ;;  %v1658_v58 = vpop.f32.mrb[10].mxu1 }
 0x222   : > { %v1272_v38 = vadd.f32 %v1271_v55, %v1270_v31  ;;  %v1196_v26 = vpop.f32.mrb[11].mxu1  ;;  %v1277_v4 = vsel %vm822_vm4, %v1658_v58, 0.0 }
 0x223   : > { %v1273_v59 = vsel %vm822_vm4, %v1196_v26, 0.0 }
 0x224   : > { %v1274_v54 = vadd.f32 %v1273_v59, %v1272_v38 }
 0x226   : > { %v1276_v44 = vadd.f32 %v1275_v63, %v1274_v54 }
 0x227   : > { %v1661_v6 = vpop.f32.mrb[12].mxu1 }
 0x228   : > { %v1209_v47 = vpop.f32.mrb[13].mxu1  ;;  %v1278_v18 = vadd.f32 %v1277_v4, %v1276_v44  ;;  %v1283_v48 = vsel %vm822_vm4, %v1661_v6, 0.0 }
 0x229   : > { %v1279_v7 = vsel %vm822_vm4, %v1209_v47, 0.0  ;;  %v1662_v22 = vpop.f32.mrb[14].mxu1 }
 0x22a   : > { %v1280_v8 = vadd.f32 %v1279_v7, %v1278_v18  ;;  %v1212_v57 = vpop.f32.mrb[15].mxu1  ;;  %v1285_v16 = vsel %vm822_vm4, %v1662_v22, 0.0 }
 0x22b   : > { %v1281_v11 = vsel %vm822_vm4, %v1212_v57, 0.0 }
 0x22c   : > { %v1282_v15 = vadd.f32 %v1281_v11, %v1280_v8 }
 0x22e   : > { %v1284_v2 = vadd.f32 %v1283_v48, %v1282_v15 }
 0x230   : > { %v1286_v20 = vadd.f32 %v1285_v16, %v1284_v2 }
 0x232   : > { %v1287_v19 = vrot.slane %v1286_v20, 4 }
 0x234   : > { %v1288_v5 = vadd.f32 %v1287_v19, %v1286_v20 }
 0x236   : > { %v1289_v27 = vrot.slane %v1288_v5, 2 }
 0x238   : > { %v1290_v30 = vadd.f32 %v1289_v27, %v1288_v5 }
 0x23a   : > { %v1291_v61 = vrot.slane %v1290_v30, 1 }
 0x23c   : > { %v1292_v62 = vadd.f32 %v1291_v61, %v1290_v30 }
 0x23e   : > { %v1293_v34 = vmul.f32 0.00390625, %v1292_v62  ;;  %1327 = vst.msk [vmem:[%s2541_s20] sm:$0x1] %vm1326_vm8, %v1292_v62 }
 0x240   : > { %v1294_v37 = vsub.f32 %v2433_v41, %v1293_v34  ;;  %v1295_v39 = vsub.f32 %v2437_v17, %v1293_v34  ;;  %v1296_v12 = vsub.f32 %v2431_v24, %v1293_v34  ;;  %v1297_v43 = vsub.f32 %v2435_v32, %v1293_v34 }
 0x241   : > { %v1298_v23 = vsub.f32 %v2449_v49, %v1293_v34  ;;  %v1299_v45 = vsub.f32 %v2455_v14, %v1293_v34  ;;  %v1300_v33 = vsub.f32 %v2447_v46, %v1293_v34  ;;  %v1301_v13 = vsub.f32 %v2453_v53, %v1293_v34 }
 0x242   : > { %v1302_v31 = vsub.f32 %v2465_v42, %v1293_v34  ;;  %v1303_v55 = vsub.f32 %v2471_v56, %v1293_v34  ;;  %v1304_v41 = vsub.f32 %v2463_v60, %v1293_v34  ;;  %v1305_v17 = vsub.f32 %v2469_v1, %v1293_v34 }
 0x243   : > { %v1306_v24 = vsub.f32 %v2481_v52, %v1293_v34  ;;  %v1307_v32 = vsub.f32 %v2487_v50, %v1293_v34  ;;  %v1308_v49 = vsub.f32 %v2479_v3, %v1293_v34  ;;  %v1309_v14 = vsub.f32 %v2485_v10, %v1293_v34 }
 0x244   : > { %v1310_v46 = vsub.f32 %v2497_v0, %v1293_v34  ;;  %v1311_v53 = vsub.f32 %v2503_v25, %v1293_v34  ;;  %v2564_v42 = vsub.f32 %v2495_v21, %v1293_v34  ;;  %v2567_v56 = vsub.f32 %v2501_v35, %v1293_v34 }
 0x245   : > { %v2570_v60 = vsub.f32 %v2513_v9, %v1293_v34  ;;  %v2573_v1 = vsub.f32 %v2519_v29, %v1293_v34  ;;  %v2576_v3 = vsub.f32 %v2511_v36, %v1293_v34  ;;  %v2579_v52 = vsub.f32 %v2517_v28, %v1293_v34 }
 0x246   : > { %v2581_v10 = vsub.f32 %v1193_v51, %v1293_v34  ;;  %v2583_v50 = vsub.f32 %v1196_v26, %v1293_v34  ;;  %v2586_v21 = vsub.f32 %v2527_v40, %v1293_v34  ;;  %v2588_v0 = vsub.f32 %v1658_v58, %v1293_v34 }
 0x247   : > { %v2590_v35 = vsub.f32 %v1209_v47, %v1293_v34  ;;  %v2592_v25 = vsub.f32 %v1212_v57, %v1293_v34  ;;  %v2594_v9 = vsub.f32 %v1661_v6, %v1293_v34  ;;  %v2596_v36 = vsub.f32 %v1662_v22, %v1293_v34 }
 0x248   : > { %v1328_v29 = vmul.f32 %v1294_v37, %v1294_v37  ;;  %v1329_v28 = vmul.f32 %v1295_v39, %v1295_v39  ;;  %v1330_v38 = vmul.f32 %v1296_v12, %v1296_v12  ;;  %v1331_v51 = vmul.f32 %v1297_v43, %v1297_v43 }
 0x249   : > { %v1332_v54 = vmul.f32 %v1298_v23, %v1298_v23  ;;  %v1333_v44 = vmul.f32 %v1299_v45, %v1299_v45  ;;  %v1334_v47 = vmul.f32 %v1300_v33, %v1300_v33  ;;  %v1335_v22 = vmul.f32 %v1301_v13, %v1301_v13 }
 0x24a   : > { %v1360_v26 = vsel %vm822_vm4, %v1328_v29, 0.0  ;;  %v1361_v59 = vsel %vm822_vm4, %v1329_v28, 0.0  ;;  %v1363_v58 = vsel %vm822_vm4, %v1330_v38, 0.0  ;;  %v1365_v4 = vsel %vm822_vm4, %v1331_v51, 0.0 }
 0x24b   : > { %v1362_v40 = vadd.f32 %v1361_v59, %v1360_v26  ;;  %v1367_v18 = vsel %vm822_vm4, %v1332_v54, 0.0  ;;  %v1369_v8 = vsel %vm822_vm4, %v1333_v44, 0.0  ;;  %v1336_v11 = vmul.f32 %v1302_v31, %v1302_v31 }
 0x24c   : > { %v1371_v15 = vsel %vm822_vm4, %v1334_v47, 0.0  ;;  %v1337_v2 = vmul.f32 %v1303_v55, %v1303_v55  ;;  %v1373_v16 = vsel %vm822_vm4, %v1335_v22, 0.0  ;;  %v1338_v19 = vmul.f32 %v1304_v41, %v1304_v41 }
 0x24d   : > { %v1364_v63 = vadd.f32 %v1363_v58, %v1362_v40  ;;  %v1375_v5 = vsel %vm822_vm4, %v1336_v11, 0.0  ;;  %v1339_v30 = vmul.f32 %v1305_v17, %v1305_v17  ;;  %v1340_v34 = vmul.f32 %v1306_v24, %v1306_v24 }
 0x24e   : > { %v1377_v61 = vsel %vm822_vm4, %v1337_v2, 0.0  ;;  %v1379_v37 = vsel %vm822_vm4, %v1338_v19, 0.0  ;;  %v1341_v12 = vmul.f32 %v1307_v32, %v1307_v32  ;;  %v1342_v45 = vmul.f32 %v1308_v49, %v1308_v49 }
 0x24f   : > { %v1366_v6 = vadd.f32 %v1365_v4, %v1364_v63  ;;  %v1381_v43 = vsel %vm822_vm4, %v1339_v30, 0.0  ;;  %v1383_v33 = vsel %vm822_vm4, %v1340_v34, 0.0  ;;  %v1343_v31 = vmul.f32 %v1309_v14, %v1309_v14 }
 0x250   : > { %v1385_v55 = vsel %vm822_vm4, %v1341_v12, 0.0  ;;  %v1344_v17 = vmul.f32 %v1310_v46, %v1310_v46  ;;  %v1387_v29 = vsel %vm822_vm4, %v1342_v45, 0.0  ;;  %v1345_v24 = vmul.f32 %v1311_v53, %v1311_v53 }
 0x251   : > { %v1368_v7 = vadd.f32 %v1367_v18, %v1366_v6  ;;  %v1389_v38 = vsel %vm822_vm4, %v1343_v31, 0.0  ;;  %v1346_v32 = vmul.f32 %v2564_v42, %v2564_v42  ;;  %v1347_v14 = vmul.f32 %v2567_v56, %v2567_v56 }
 0x252   : > { %v1391_v49 = vsel %vm822_vm4, %v1344_v17, 0.0  ;;  %v1393_v59 = vsel %vm822_vm4, %v1345_v24, 0.0  ;;  %v1348_v46 = vmul.f32 %v2570_v60, %v2570_v60  ;;  %v1349_v58 = vmul.f32 %v2573_v1, %v2573_v1 }
 0x253   : > { %v1370_v57 = vadd.f32 %v1369_v8, %v1368_v7  ;;  %v1395_v53 = vsel %vm822_vm4, %v1346_v32, 0.0  ;;  %v1397_v42 = vsel %vm822_vm4, %v1347_v14, 0.0  ;;  %v1350_v44 = vmul.f32 %v2576_v3, %v2576_v3 }
 0x254   : > { %v1399_v56 = vsel %vm822_vm4, %v1348_v46, 0.0  ;;  %v1351_v6 = vmul.f32 %v2579_v52, %v2579_v52  ;;  %v1401_v60 = vsel %vm822_vm4, %v1349_v58, 0.0  ;;  %v1352_v18 = vmul.f32 %v2581_v10, %v2581_v10 }
 0x255   : > { %v1372_v48 = vadd.f32 %v1371_v15, %v1370_v57  ;;  %v1403_v1 = vsel %vm822_vm4, %v1350_v44, 0.0  ;;  %v1353_v22 = vmul.f32 %v2583_v50, %v2583_v50  ;;  %v1354_v57 = vmul.f32 %v2586_v21, %v2586_v21 }
 0x256   : > { %v1405_v3 = vsel %vm822_vm4, %v1351_v6, 0.0  ;;  %v1407_v52 = vsel %vm822_vm4, %v1352_v18, 0.0  ;;  %v1355_v15 = vmul.f32 %v2588_v0, %v2588_v0  ;;  %v1356_v2 = vmul.f32 %v2590_v35, %v2590_v35 }
 0x257   : > { %v1374_v20 = vadd.f32 %v1373_v16, %v1372_v48  ;;  %v1409_v10 = vsel %vm822_vm4, %v1353_v22, 0.0  ;;  %v1411_v50 = vsel %vm822_vm4, %v1354_v57, 0.0  ;;  %v1358_v0 = vmul.f32 %v2594_v9, %v2594_v9 }
 0x258   : > { %v1413_v21 = vsel %vm822_vm4, %v1355_v15, 0.0  ;;  %v1359_v35 = vmul.f32 %v2596_v36, %v2596_v36 }
 0x259   : > { %v1376_v27 = vadd.f32 %v1375_v5, %v1374_v20  ;;  %v1357_v20 = vmul.f32 %v2592_v25, %v2592_v25  ;;  %v1415_v5 = vsel %vm822_vm4, %v1356_v2, 0.0  ;;  %v1419_v25 = vsel %vm822_vm4, %v1358_v0, 0.0 }
 0x25a   : > { %v1421_v34 = vsel %vm822_vm4, %v1359_v35, 0.0 }
 0x25b   : > { %v1378_v62 = vadd.f32 %v1377_v61, %v1376_v27  ;;  %v1417_v30 = vsel %vm822_vm4, %v1357_v20, 0.0 }
 0x25d   : > { %v1380_v39 = vadd.f32 %v1379_v37, %v1378_v62 }
 0x25f   : > { %v1382_v23 = vadd.f32 %v1381_v43, %v1380_v39 }
 0x261   : > { %v1384_v13 = vadd.f32 %v1383_v33, %v1382_v23 }
 0x263   : > { %v1386_v41 = vadd.f32 %v1385_v55, %v1384_v13 }
 0x265   : > { %v1388_v28 = vadd.f32 %v1387_v29, %v1386_v41 }
 0x267   : > { %v1390_v51 = vadd.f32 %v1389_v38, %v1388_v28 }
 0x269   : > { %v1392_v26 = vadd.f32 %v1391_v49, %v1390_v51 }
 0x26b   : > { %v1394_v40 = vadd.f32 %v1393_v59, %v1392_v26 }
 0x26d   : > { %v1396_v54 = vadd.f32 %v1395_v53, %v1394_v40 }
 0x26f   : > { %v1398_v63 = vadd.f32 %v1397_v42, %v1396_v54 }
 0x271   : > { %v1400_v4 = vadd.f32 %v1399_v56, %v1398_v63 }
 0x273   : > { %v1402_v47 = vadd.f32 %v1401_v60, %v1400_v4 }
 0x275   : > { %v1404_v7 = vadd.f32 %v1403_v1, %v1402_v47 }
 0x277   : > { %v1406_v8 = vadd.f32 %v1405_v3, %v1404_v7 }
 0x279   : > { %v1408_v11 = vadd.f32 %v1407_v52, %v1406_v8 }
 0x27b   : > { %v1410_v48 = vadd.f32 %v1409_v10, %v1408_v11 }
 0x27d   : > { %v1412_v16 = vadd.f32 %v1411_v50, %v1410_v48 }
 0x27f   : > { %v1414_v19 = vadd.f32 %v1413_v21, %v1412_v16 }
 0x281   : > { %v1416_v27 = vadd.f32 %v1415_v5, %v1414_v19 }
 0x283   : > { %v1418_v61 = vadd.f32 %v1417_v30, %v1416_v27 }
 0x285   : > { %v1420_v62 = vadd.f32 %v1419_v25, %v1418_v61 }
 0x287   : > { %v1422_v37 = vadd.f32 %v1421_v34, %v1420_v62 }
 0x289   : > { %v1423_v39 = vrot.slane %v1422_v37, 4 }
 0x28b   : > { %v1424_v9 = vadd.f32 %v1423_v39, %v1422_v37 }
 0x28d   : > { %v1425_v12 = vrot.slane %v1424_v9, 2 }
 0x28f   : > { %v1426_v43 = vadd.f32 %v1425_v12, %v1424_v9 }
 0x291   : > { %v1427_v23 = vrot.slane %v1426_v43, 1 }
 0x293   : > { %v1428_v36 = vadd.f32 %v1427_v23, %v1426_v43 }
 0x295   : > { %1429 = vst.msk [vmem:[%s2541_s20 + $0x1] sm:$0x1] %vm1326_vm8, %v1428_v36 }
 0x296   : > { %1801 = shalt.err (!%p1798_p5)
}
 0x297   : > { %s1802_s4 = scalar_lea.hbm %s2663_s27, 32  ;;  %s1806_s7 = scalar_lea.hbm %s2716_s2, 64 }
 0x298   : > { %p1803_p6 = scmp.ne.s32.totalorder %s2663_s27, %s1802_s4  ;;  %p1807_p10 = scmp.lt.u32.totalorder %s2663_s27, %s2716_s2 }
 0x299   : > { %p1808_p11 = scmp.lt.u32.totalorder %s1806_s7, %s1802_s4  ;;  %p1810_p13 = scmp.lt.u32.totalorder %s1802_s4, %s2663_s27 }
 0x29a   : > { %p1804_p7 = pnand %p1803_p6, %p1928_p4 }
 0x29b   : > { %p1809_p12 = por %p1808_p11, %p1807_p10 }
 0x29c   : > { %p1805_p9 = pneg %p1804_p7 }
 0x29d   : > { %p1811_p0 = por %p1810_p13, %p1809_p12 }
 0x29f   : > { %p1812_p1 = pnand %p1811_p0, %p1805_p9 }
 0x2a1   : > { %1815 = shalt.err (!%p1812_p1)
}
 0x2a2   : > { %1672 = dma.vmem_to_hbm [thread:$0]  (%p1928_p4), %s2665_s24, 32, %s2663_s27, %s1431_s28  }
 0x2a3 PF: > { %p1678_p2 = scmp.ge.s32.totalorder %s1866_s14, 2  ;;  %s1457_s16 = sand.u32 1, %s1846_s9  }
 0x2a4   : > { %s1458_s18 = scalar_lea.sflag [#allocation3], %s1457_s16 }
 0x2a5   : > { %p1675_p3 = pnand %p1678_p2, %p1935_p8 }
 0x2a7   : > { %1841 = dma.done.wait (!%p1675_p3), %s1458_s18, 32  }
 0x2a8   : > { %1843 = vsyncadd (!%p1675_p3), %s1458_s18, 4294967264  ;;  %s15_s14 = sadd.s32 1, %s1866_s14   ;;  %s2719_s9 = smov %s1850_s10 }
 0x2a9   : > { %p12_p5 = scmp.ge.s32.totalorder %s15_s14, 4   ;;  %s2720_s10 = smov %s1854_s11 }
 0x2aa   : > { %s2721_s11 = smov %s1941_s22  ;;  %s2722_s12 = smov %s1862_s13 }
 0x2ab   : > { %s2723_s13 = smov %s2725_s17  ;;  %14 = sbr.rel (!%p12_p5) target bundleno = 4 (0x4), region = 63 }
 0x2b2   :  { %1463 = vsyncpa [#allocation3], 1 }
 0x2b3   :  { %1465 = vsyncpa [#allocation3 + $0x1], 1 }

// kernel: tpu_custom_call.1
= control target key start
LH: loop header
LB: loop body
LE: loop exit
PB: predicated region body
PF: predicated region fallthrough
CT: control target
= control target key end

     0   :  { %7 = vsyncpa [#allocation3], 0  ;;  %s8620_s0 = inlined_call_operand.vmem [shape: bf16[2,1,18,18,4], index: 0, kind: input, shape index: {}]   ;;  %s8621_s1 = inlined_call_operand.vmem [shape: bf16[9,4,8], index: 1, kind: input, shape index: {}]   ;;  %s8622_s2 = inlined_call_operand.hbm [shape: f32[2,1,2,8], index: 2, kind: output, shape index: {}]  }
   0x1   :  { %9 = vsyncpa [#allocation3 + $0x1], 0  ;;  %s6560_s9 = smov 0   ;;  %s6562_s10 = smov 0  }
   0x2   :  { %s6564_s11 = smov 0   ;;  %s6566_s12 = smov 0  }
   0x3   :  { %s6568_s13 = smov 0   ;;  %s6570_s14 = smov 0  }
   0x4 LB: > { %s5029_s15 = sadd.s32 4294967295, %s6542_s14   ;;  %s5030_s16 = sadd.s32 4294967294, %s6542_s14   ;;  %s6542_s14 = sphi %s6570_s14, %s15_s14   ;;  %s6538_s13 = sphi %s6568_s13, %s8696_s13   ;;  %s6534_s12 = sphi %s6566_s12, %s8695_s12   ;;  %s6530_s11 = sphi %s6564_s11, %s8694_s11   ;;  %s6526_s10 = sphi %s6562_s10, %s8693_s10   ;;  %s6522_s9 = sphi %s6560_s9, %s8692_s9  }
   0x5   : > { %s27_s17 = sadd.s32 1, %s6538_s13  ;;  %s85_s18 = sadd.s32 1, %s6530_s11 }
   0x6   : > { %p29_p0 = scmp.ge.s32.totalorder %s27_s17, 2  ;;  %p95_p1 = scmp.ne.s32.totalorder %s6530_s11, %s6526_s10 }
   0x7   : > { %p96_p2 = scmp.eq.s32.totalorder %s5029_s15, 1  ;;  %p101_p3 = scmp.ne.s32.totalorder %s6526_s10, %s6522_s9 }
   0x8   : > { %s8698_s17 = smov (%p29_p0, %s27_s17), 0  ;;  %p102_p5 = scmp.eq.s32.totalorder %s5030_s16, 1 }
   0x9   : > { %p6600_p4 = por %p96_p2, %p95_p1  ;;  %s80_s20 = ssub.s32 %s6538_s13, %s8698_s17 }
   0xa   : > { %p5033_p6 = scmp.ge.s32.totalorder %s6542_s14, 1  ;;  %p83_p7 = scmp.eq.s32.totalorder %s80_s20, 0 }
   0xb   : > { %p6607_p8 = por %p102_p5, %p101_p3  ;;  %p135_p9 = scmp.lt.s32.totalorder %s6542_s14, 3 }
   0xc   : > { %s6613_s22 = scalar_select %p83_p7, %s6530_s11, %s85_s18  }
   0xd   : > { %p136_p10 = pnand %p5033_p6, %p135_p9 }
   0xf   : > { %139 = sbr.rel (%p136_p10) target bundleno = 711 (0x2c7), region = 28 }
  0x16   : > { %v5036_v0 = vld [vmem:[%s8621_s1 + $0x2] sm:$0x3]  ;;  %vm706_vm0 = vcmask 1041408   ;;  %v5263_v1 = vld [vmem:[%s8621_s1 + $0x8] sm:$0x3]  ;;  %p161_p11 = scmp.lt.s32.totalorder %s6534_s12, 1 }
  0x17   : > { %6293 = vmatprep.subr.msk.bf16.mxu1 %vm706_vm0, %v5036_v0  ;;  %6297 = vmatprep.subr.msk.bf16.mxu0 %vm706_vm0, %v5263_v1  ;;  %v708_v2 = vsel %vm706_vm0, %v5036_v0, 0  ;;  %v6626_v3 = vsel %vm706_vm0, %v5263_v1, 0  ;;  %v203_v4 = vld [vmem:[%s8621_s1] sm:$0x3]  ;;  %v5328_v5 = vld [vmem:[%s8621_s1 + $0xa] sm:$0x3] }
  0x18   : > { %8638 = vst [vmem:[#allocation5_spill] sm:$0xff] %v6626_v3  ;;  %5730 = vmatpush3.bf16.msra.mxu1 %v708_v2  ;;  %5866 = vmatpush3.bf16.msra.mxu0 %v6626_v3  ;;  %s162_s27 = scalar_select %p161_p11, %s6534_s12, 1  ;;  %vm220_vm1 = vsmask.f32 3328  ;;  %vm221_vm2 = vsmask.f32 7440 }
  0x19   : > { %6294 = vmatprep.subr.msk.bf16.mxu1 %vm706_vm0, %v203_v4  ;;  %6299 = vmatprep.subr.msk.bf16.mxu0 %vm706_vm0, %v5328_v5  ;;  %vm657_vm3 = vcmask 31744   ;;  %v6654_v17 = vsel %vm706_vm0, %v203_v4, 0  ;;  %v6660_v26 = vld [vmem:[%s8621_s1 + $0xc] sm:$0x3]  ;;  %vm6667_vm4 = vmor %vm220_vm1, %vm221_vm2  ;;  %v6673_v37 = vsel %vm706_vm0, %v5328_v5, 0  ;;  %vm1211_vm5 = vcmask 1042432  }
  0x1a   : > { %s6303_s4 = smul.u32 216, %s162_s27  ;;  %v6677_v41 = vsel %vm706_vm0, %v6660_v26, 0  ;;  %vm1212_vm6 = vcmask 1046532   ;;  %vm4730_vm8 = vcmask 64512   ;;  %vm4833_vm9 = vcmask 57344  }
  0x1b   : > { %vm6893_vm7 = vmor %vm1211_vm5, %vm1212_vm6 }
  0x1c   : > { %s6641_s7 = scalar_lea.vmem %s8620_s0, %s6303_s4  ;;  %s158_s4 = sand.u32 1, %s6526_s10  }
  0x1d   : > { %v171_v6 = vld [vmem:[%s6641_s7] sm:$0xf]  ;;  %v172_v7 = vld [vmem:[%s6641_s7 + $0x4] sm:$0xf]  ;;  %v204_v8 = vld [vmem:[%s6641_s7 + $0x8] sm:$0x1] }
  0x1e   : > { %v224_v9 = vshrl.u32 %v171_v6, 16  ;;  %v227_v10 = vshll.u32 %v171_v6, 16  ;;  %v233_v11 = vshll.u32 %v172_v7, 16  ;;  %v237_v12 = vshrl.u32 %v172_v7, 16  ;;  %v5215_v13 = vld [vmem:[%s6641_s7 + $0xc] sm:$0xf] }
  0x1f   : > { %v243_v14 = vshll.u32 %v204_v8, 16  ;;  %v6648_v15 = vld [vmem:[%s6641_s7 + $0x10] sm:$0xf]  ;;  %v6651_v16 = vld [vmem:[%s6641_s7 + $0x14] sm:$0x1]  ;;  %v2028_v23 = vshrl.u32 %v5215_v13, 16 }
  0x20   : > { %v226_v18 = vrot.slane %v224_v9, 4  ;;  %v229_v19 = vrot.slane %v227_v10, 5  ;;  %v235_v20 = vrot.slane %v233_v11, 5  ;;  %v239_v21 = vrot.slane %v237_v12, 4  ;;  %v173_v31 = vld [vmem:[%s6641_s7 + $0xc] sm:$0xf] }
  0x21   : > { %v245_v22 = vrot.slane %v243_v14, 5  ;;  %v2031_v24 = vshll.u32 %v5215_v13, 16  ;;  %v2037_v25 = vshll.u32 %v6648_v15, 16  ;;  %v2041_v29 = vshrl.u32 %v6648_v15, 16  ;;  %v174_v36 = vld [vmem:[%s6641_s7 + $0x10] sm:$0xf] }
  0x22   : > { %v230_v27 = vor.u32 %v229_v19, %v226_v18  ;;  %v240_v28 = vor.u32 %v239_v21, %v235_v20  ;;  %v2047_v30 = vshll.u32 %v6651_v16, 16  ;;  %v2030_v33 = vrot.slane %v2028_v23, 4  ;;  %v205_v44 = vld [vmem:[%s6641_s7 + $0x14] sm:$0x1]  ;;  %v5218_v55 = vld [vmem:[%s6641_s7 + $0x18] sm:$0xf] }
  0x23   : > { %v2033_v34 = vrot.slane %v2031_v24, 5  ;;  %v2039_v35 = vrot.slane %v2037_v25, 5  ;;  %v2043_v40 = vrot.slane %v2041_v29, 4  ;;  %v248_v45 = vshrl.u32 %v173_v31, 16  ;;  %v6686_v60 = vld [vmem:[%s6641_s7 + $0x1c] sm:$0xf] }
  0x24   : > { %v231_v38 = vrot.slane %v230_v27, 4  ;;  %v241_v39 = vrot.slane %v240_v28, 4  ;;  %v2049_v43 = vrot.slane %v2047_v30, 5  ;;  %v251_v46 = vshll.u32 %v173_v31, 16  ;;  %v6694_v1 = vld [vmem:[%s6641_s7 + $0x20] sm:$0x1] }
  0x25   : > { %v2034_v42 = vor.u32 %v2033_v34, %v2030_v33  ;;  %v2044_v49 = vor.u32 %v2043_v40, %v2039_v35  ;;  %v257_v50 = vshll.u32 %v174_v36, 16  ;;  %v250_v53 = vrot.slane %v248_v45, 4  ;;  %v175_v18 = vld [vmem:[%s6641_s7 + $0x18] sm:$0xf]  ;;  %v176_v23 = vld [vmem:[%s6641_s7 + $0x1c] sm:$0xf] }
  0x26   : > { %v236_v47 = vsel %vm6667_vm4, %v231_v38, %v235_v20  ;;  %v246_v48 = vsel %vm6667_vm4, %v241_v39, %v245_v22  ;;  %v253_v54 = vrot.slane %v251_v46, 5  ;;  %v261_v58 = vshrl.u32 %v174_v36, 16  ;;  %v206_v31 = vld [vmem:[%s6641_s7 + $0x20] sm:$0x1]  ;;  %v5221_v40 = vld [vmem:[%s6641_s7 + $0x24] sm:$0xf] }
  0x27   : > { %v5037_v51 = vcombine.low %v236_v47, %v246_v48  ;;  %v2035_v52 = vrot.slane %v2034_v42, 4  ;;  %v2045_v56 = vrot.slane %v2044_v49, 4  ;;  %v259_v57 = vrot.slane %v257_v50, 5  ;;  %v6717_v46 = vld [vmem:[%s6641_s7 + $0x28] sm:$0xf]  ;;  %s5034_s5 = sshll.u32 %s158_s4, 1 }
  0x28   : > { %v267_v59 = vshll.u32 %v205_v44, 16  ;;  %v2771_v62 = vrot.slane %v6648_v15, 5  ;;  %v2774_v63 = vrot.slane %v6651_v16, 5  ;;  %v254_v0 = vor.u32 %v253_v54, %v250_v53  ;;  %v6726_v54 = vld [vmem:[%s6641_s7 + $0x2c] sm:$0x1]  ;;  %s8427_s6 = scalar_lea.vmem [#allocation2], %s5034_s5 }
  0x29   : > { %5731 = vmatprep.mubr.msk.bf16.mxu1 %vm657_vm3, %v5037_v51  ;;  %v2040_v61 = vsel %vm6667_vm4, %v2035_v52, %v2039_v35  ;;  %v2050_v2 = vsel %vm6667_vm4, %v2045_v56, %v2049_v43  ;;  %v263_v4 = vrot.slane %v261_v58, 4  ;;  %v2052_v6 = vshrl.u32 %v5218_v55, 16  ;;  %v5117_v51 = vld [vmem:[%s8621_s1 + $0x4] sm:$0x3]  ;;  %v6926_v16 = vld [vmem:[%s6641_s7 + $0x7c] sm:$0xf] }
  0x2a   : > { %v269_v5 = vrot.slane %v267_v59, 5  ;;  %v5264_v7 = vcombine.low %v2040_v61, %v2050_v2  ;;  %v255_v8 = vrot.slane %v254_v0, 4  ;;  %v2055_v9 = vshll.u32 %v5218_v55, 16  ;;  %v177_v0 = vld [vmem:[%s6641_s7 + $0x24] sm:$0xf]  ;;  %s4952_s8 = sshll.u32 %s8427_s6, 4  ;;  %s8571_s8 = int_to_ptr.vmem [resolvable:$true] %s4952_s8 }
  0x2b   : > { %v2061_v10 = vshll.u32 %v6686_v60, 16  ;;  %v264_v11 = vor.u32 %v263_v4, %v259_v57  ;;  %v2054_v12 = vrot.slane %v2052_v6, 4  ;;  %v2065_v13 = vshrl.u32 %v6686_v60, 16  ;;  %s4938_s20 = scalar_lea.sflag [#allocation3], %s158_s4  ;;  %s6464_s23 = scalar_lea.vmem %s8571_s8, 32 }
  0x2c   : > { %v2071_v14 = vshll.u32 %v6694_v1, 16  ;;  %5867 = vmatprep.mubr.msk.bf16.mxu0 %vm657_vm3, %v5264_v7  ;;  %v260_v19 = vsel %vm6667_vm4, %v255_v8, %v259_v57  ;;  %v2057_v20 = vrot.slane %v2055_v9, 5  ;;  %v2778_v22 = vrot.slane %v6686_v60, 5  ;;  %v178_v7 = vld [vmem:[%s6641_s7 + $0x28] sm:$0xf]  ;;  %p6465_p12 = scmp.ne.s32.totalorder %s8571_s8, %s6464_s23 }
  0x2d   : > { %v2063_v21 = vrot.slane %v2061_v10, 5  ;;  %v265_v24 = vrot.slane %v264_v11, 4  ;;  %v2067_v25 = vrot.slane %v2065_v13, 4  ;;  %v2781_v28 = vrot.slane %v6694_v1, 5  ;;  %v207_v13 = vld [vmem:[%s6641_s7 + $0x2c] sm:$0x1] }
  0x2e   : > { %v2073_v27 = vrot.slane %v2071_v14, 5  ;;  %v2058_v29 = vor.u32 %v2057_v20, %v2054_v12  ;;  %v6710_v30 = vrot.slane %v2778_v22, 4  ;;  %v272_v33 = vshrl.u32 %v175_v18, 16  ;;  %p6466_p13 = pnand %p6465_p12, %p6600_p4 }
  0x2f   : > { %v275_v34 = vshll.u32 %v175_v18, 16  ;;  %v270_v35 = vsel %vm6667_vm4, %v265_v24, %v269_v5  ;;  %v2068_v36 = vor.u32 %v2067_v25, %v2063_v21  ;;  %v281_v38 = vshll.u32 %v176_v23, 16  ;;  %v5224_v24 = vld [vmem:[%s6641_s7 + $0x30] sm:$0xf] }
  0x30   : > { %v285_v39 = vshrl.u32 %v176_v23, 16  ;;  %v5038_v42 = vcombine.low %v260_v19, %v270_v35  ;;  %v2059_v43 = vrot.slane %v2058_v29, 4  ;;  %v274_v44 = vrot.slane %v272_v33, 4  ;;  %v6746_v33 = vld [vmem:[%s6641_s7 + $0x34] sm:$0xf]  ;;  %p6467_p0 = pneg %p6466_p13 }
  0x31   : > { %v277_v45 = vrot.slane %v275_v34, 5  ;;  %v2069_v47 = vrot.slane %v2068_v36, 4  ;;  %v283_v48 = vrot.slane %v281_v38, 5  ;;  %v291_v50 = vshll.u32 %v206_v31, 16 }
  0x32   : > { %v287_v49 = vrot.slane %v285_v39, 4  ;;  %5732 = vmatmul.mubr.msk.bf16.vlgmr.msra.gmra.mrb[0].mxu1 %vm657_vm3, %v5038_v42  ;;  %v2064_v52 = vsel %vm6667_vm4, %v2059_v43, %v2063_v21  ;;  %v2076_v55 = vshrl.u32 %v5221_v40, 16  ;;  %v2079_v56 = vshll.u32 %v5221_v40, 16  ;;  %v6754_v40 = vld [vmem:[%s6641_s7 + $0x38] sm:$0x1] }
  0x33   : > { %v278_v53 = vor.u32 %v277_v45, %v274_v44  ;;  %5764 = vmatpush3.bf16.msra.mxu1 %v6654_v17  ;;  %v2074_v57 = vsel %vm6667_vm4, %v2069_v47, %v2073_v27  ;;  %v293_v59 = vrot.slane %v291_v50, 5  ;;  %v2085_v61 = vshll.u32 %v6717_v46, 16 }
  0x34   : > { %v288_v58 = vor.u32 %v287_v49, %v283_v48  ;;  %v5265_v2 = vcombine.low %v2064_v52, %v2074_v57  ;;  %v2078_v5 = vrot.slane %v2076_v55, 4  ;;  %v2081_v6 = vrot.slane %v2079_v56, 5  ;;  %6295 = vmatprep.subr.msk.bf16.mxu1 %vm706_vm0, %v5117_v51  ;;  %v179_v52 = vld [vmem:[%s6641_s7 + $0x30] sm:$0xf] }
  0x35   : > { %v279_v4 = vrot.slane %v278_v53, 4  ;;  %v2087_v9 = vrot.slane %v2085_v61, 5  ;;  %v2089_v17 = vshrl.u32 %v6717_v46, 16  ;;  %v2095_v10 = vshll.u32 %v6726_v54, 16 }
  0x36   : > { %v289_v8 = vrot.slane %v288_v58, 4  ;;  %5868 = vmatmul.mubr.msk.bf16.vlgmr.msra.gmra.mrb[0].mxu0 %vm657_vm3, %v5265_v2  ;;  %v2082_v12 = vor.u32 %v2081_v6, %v2078_v5  ;;  %v296_v14 = vshrl.u32 %v177_v0, 16  ;;  %v299_v18 = vshll.u32 %v177_v0, 16  ;;  %v180_v58 = vld [vmem:[%s6641_s7 + $0x34] sm:$0xf] }
  0x37   : > { %v284_v11 = vsel %vm6667_vm4, %v279_v4, %v283_v48  ;;  %5900 = vmatpush3.bf16.msra.mxu0 %v6673_v37  ;;  %v2091_v20 = vrot.slane %v2089_v17, 4  ;;  %v2097_v21 = vrot.slane %v2095_v10, 5  ;;  %v305_v23 = vshll.u32 %v178_v7, 16  ;;  %v208_v4 = vld [vmem:[%s6641_s7 + $0x38] sm:$0x1] }
  0x38   : > { %v294_v19 = vsel %vm6667_vm4, %v289_v8, %v293_v59  ;;  %v2083_v27 = vrot.slane %v2082_v12, 4  ;;  %v298_v29 = vrot.slane %v296_v14, 4  ;;  %v301_v31 = vrot.slane %v299_v18, 5  ;;  %6300 = vmatprep.subr.msk.bf16.mxu0 %vm706_vm0, %v6660_v26  ;;  %v5227_v12 = vld [vmem:[%s6641_s7 + $0x3c] sm:$0xf] }
  0x39   : > { %v5039_v25 = vcombine.low %v284_v11, %v294_v19  ;;  %v2092_v34 = vor.u32 %v2091_v20, %v2087_v9  ;;  %v307_v35 = vrot.slane %v305_v23, 5  ;;  %v309_v37 = vshrl.u32 %v178_v7, 16  ;;  %v6771_v20 = vld [vmem:[%s6641_s7 + $0x40] sm:$0xf] }
  0x3a   : > { %v315_v36 = vshll.u32 %v207_v13, 16  ;;  %v2088_v38 = vsel %vm6667_vm4, %v2083_v27, %v2087_v9  ;;  %v302_v39 = vor.u32 %v301_v31, %v298_v29  ;;  %v2100_v42 = vshrl.u32 %v5224_v24, 16 }
  0x3b   : > { %5735 = vmatprep.mubr.msk.bf16.mxu1 %vm657_vm3, %v5039_v25  ;;  %v2103_v43 = vshll.u32 %v5224_v24, 16  ;;  %v2093_v44 = vrot.slane %v2092_v34, 4  ;;  %v311_v45 = vrot.slane %v309_v37, 4  ;;  %v2109_v26 = vshll.u32 %v6746_v33, 16  ;;  %v6776_v34 = vld [vmem:[%s6641_s7 + $0x44] sm:$0x1] }
  0x3c   : > { %v317_v47 = vrot.slane %v315_v36, 5  ;;  %v303_v48 = vrot.slane %v302_v39, 4  ;;  %v2102_v49 = vrot.slane %v2100_v42, 4  ;;  %v2113_v51 = vshrl.u32 %v6746_v33, 16  ;;  %v181_v42 = vld [vmem:[%s6641_s7 + $0x3c] sm:$0xf] }
  0x3d   : > { %v2105_v50 = vrot.slane %v2103_v43, 5  ;;  %v2098_v53 = vsel %vm6667_vm4, %v2093_v44, %v2097_v21  ;;  %v312_v55 = vor.u32 %v311_v45, %v307_v35  ;;  %v2111_v56 = vrot.slane %v2109_v26, 5  ;;  %v182_v26 = vld [vmem:[%s6641_s7 + $0x40] sm:$0xf] }
  0x3e   : > { %v2119_v57 = vshll.u32 %v6754_v40, 16  ;;  %v5266_v59 = vcombine.low %v2088_v38, %v2098_v53  ;;  %v308_v61 = vsel %vm6667_vm4, %v303_v48, %v307_v35  ;;  %v2115_v2 = vrot.slane %v2113_v51, 4 }
  0x3f   : > { %v2106_v0 = vor.u32 %v2105_v50, %v2102_v49  ;;  %v313_v5 = vrot.slane %v312_v55, 4  ;;  %v320_v7 = vshrl.u32 %v179_v52, 16  ;;  %v323_v8 = vshll.u32 %v179_v52, 16 }
  0x40   : > { %v2121_v6 = vrot.slane %v2119_v57, 5  ;;  %5871 = vmatprep.mubr.msk.bf16.mxu0 %vm657_vm3, %v5266_v59  ;;  %v2116_v17 = vor.u32 %v2115_v2, %v2111_v56  ;;  %v329_v10 = vshll.u32 %v180_v58, 16  ;;  %v333_v11 = vshrl.u32 %v180_v58, 16  ;;  %v5230_v2 = vld [vmem:[%s6641_s7 + $0x48] sm:$0xf] }
  0x41   : > { %v2107_v9 = vrot.slane %v2106_v0, 4  ;;  %v318_v13 = vsel %vm6667_vm4, %v313_v5, %v317_v47  ;;  %v322_v14 = vrot.slane %v320_v7, 4  ;;  %v325_v18 = vrot.slane %v323_v8, 5  ;;  %v6794_v8 = vld [vmem:[%s6641_s7 + $0x4c] sm:$0xf] }
  0x42   : > { %v339_v19 = vshll.u32 %v208_v4, 16  ;;  %v5040_v21 = vcombine.low %v308_v61, %v318_v13  ;;  %v2117_v24 = vrot.slane %v2116_v17, 4  ;;  %v331_v25 = vrot.slane %v329_v10, 5  ;;  %v209_v61 = vld [vmem:[%s6641_s7 + $0x44] sm:$0x1] }
  0x43   : > { %v2112_v23 = vsel %vm6667_vm4, %v2107_v9, %v2111_v56  ;;  %v326_v27 = vor.u32 %v325_v18, %v322_v14  ;;  %v335_v29 = vrot.slane %v333_v11, 4  ;;  %v2124_v35 = vshrl.u32 %v5227_v12, 16 }
  0x44   : > { %v341_v31 = vrot.slane %v339_v19, 5  ;;  %5736 = vmatmul.mubr.msk.bf16.gmra.mrb[4].mxu1 %vm657_vm3, %v5040_v21  ;;  %v2122_v37 = vsel %vm6667_vm4, %v2117_v24, %v2121_v6  ;;  %v2127_v36 = vshll.u32 %v5227_v12, 16  ;;  %v2133_v38 = vshll.u32 %v6771_v20, 16 }
  0x45   : > { %v2137_v39 = vshrl.u32 %v6771_v20, 16  ;;  %v5267_v43 = vcombine.low %v2112_v23, %v2122_v37  ;;  %v327_v44 = vrot.slane %v326_v27, 4  ;;  %v336_v45 = vor.u32 %v335_v29, %v331_v25  ;;  %v6802_v23 = vld [vmem:[%s6641_s7 + $0x50] sm:$0x1]  ;;  %v6806_v27 = vld [vmem:[%s6641_s7 + $0x48] sm:$0xf] }
  0x46   : > { %v2126_v47 = vrot.slane %v2124_v35, 4  ;;  %v2129_v48 = vrot.slane %v2127_v36, 5  ;;  %v2135_v49 = vrot.slane %v2133_v38, 5  ;;  %v2143_v51 = vshll.u32 %v6776_v34, 16  ;;  %v6809_v36 = vld [vmem:[%s6641_s7 + $0x4c] sm:$0xf] }
  0x47   : > { %v2139_v50 = vrot.slane %v2137_v39, 4  ;;  %5872 = vmatmul.mubr.msk.bf16.gmra.mrb[4].mxu0 %vm657_vm3, %v5267_v43  ;;  %v332_v52 = vsel %vm6667_vm4, %v327_v44, %v331_v25  ;;  %v337_v53 = vrot.slane %v336_v45, 4  ;;  %v344_v55 = vshrl.u32 %v181_v42, 16 }
  0x48   : > { %v347_v56 = vshll.u32 %v181_v42, 16  ;;  %v2130_v57 = vor.u32 %v2129_v48, %v2126_v47  ;;  %v2145_v59 = vrot.slane %v2143_v51, 5  ;;  %v353_v0 = vshll.u32 %v182_v26, 16 }
  0x49   : > { %v2140_v58 = vor.u32 %v2139_v50, %v2135_v49  ;;  %v342_v4 = vsel %vm6667_vm4, %v337_v53, %v341_v31  ;;  %v346_v5 = vrot.slane %v344_v55, 4  ;;  %v357_v7 = vshrl.u32 %v182_v26, 16  ;;  %v210_v26 = vld [vmem:[%s6641_s7 + $0x50] sm:$0x1]  ;;  %v5233_v53 = vld [vmem:[%s6641_s7 + $0x54] sm:$0xf] }
  0x4a   : > { %v349_v6 = vrot.slane %v347_v56, 5  ;;  %v5041_v9 = vcombine.low %v332_v52, %v342_v4  ;;  %v2131_v17 = vrot.slane %v2130_v57, 4  ;;  %v355_v11 = vrot.slane %v353_v0, 5  ;;  %v6825_v4 = vld [vmem:[%s6641_s7 + $0x58] sm:$0xf] }
  0x4b   : > { %v2141_v10 = vrot.slane %v2140_v58, 4  ;;  %v359_v13 = vrot.slane %v357_v7, 4  ;;  %v363_v14 = vshll.u32 %v209_v61, 16  ;;  %v2148_v18 = vshrl.u32 %v5230_v2, 16 }
  0x4c   : > { %v350_v12 = vor.u32 %v349_v6, %v346_v5  ;;  %5739 = vmatprep.mubr.msk.bf16.mxu1 %vm657_vm3, %v5041_v9  ;;  %v2136_v19 = vsel %vm6667_vm4, %v2131_v17, %v2135_v49  ;;  %v2151_v24 = vshll.u32 %v5230_v2, 16  ;;  %v2157_v25 = vshll.u32 %v6794_v8, 16 }
  0x4d   : > { %v2146_v21 = vsel %vm6667_vm4, %v2141_v10, %v2145_v59  ;;  %v360_v35 = vor.u32 %v359_v13, %v355_v11  ;;  %v365_v37 = vrot.slane %v363_v14, 5  ;;  %v2150_v38 = vrot.slane %v2148_v18, 4 }
  0x4e   : > { %v5268_v29 = vcombine.low %v2136_v19, %v2146_v21  ;;  %v351_v31 = vrot.slane %v350_v12, 4  ;;  %v2153_v39 = vrot.slane %v2151_v24, 5  ;;  %v2159_v42 = vrot.slane %v2157_v25, 5  ;;  %v6831_v12 = vld [vmem:[%s6641_s7 + $0x5c] sm:$0x1] }
  0x4f   : > { %v2161_v43 = vshrl.u32 %v6794_v8, 16  ;;  %v361_v45 = vrot.slane %v360_v35, 4  ;;  %v2167_v47 = vshll.u32 %v6802_v23, 16  ;;  %v368_v48 = vshrl.u32 %v6806_v27, 16  ;;  %v6835_v24 = vld [vmem:[%s6641_s7 + $0x54] sm:$0xf] }
  0x50   : > { %5875 = vmatprep.mubr.msk.bf16.mxu0 %vm657_vm3, %v5268_v29  ;;  %v356_v44 = vsel %vm6667_vm4, %v351_v31, %v355_v11  ;;  %v2154_v49 = vor.u32 %v2153_v39, %v2150_v38  ;;  %v371_v51 = vshll.u32 %v6806_v27, 16  ;;  %v377_v52 = vshll.u32 %v6809_v36, 16 }
  0x51   : > { %v2163_v50 = vrot.slane %v2161_v43, 4  ;;  %v366_v55 = vsel %vm6667_vm4, %v361_v45, %v365_v37  ;;  %v2169_v56 = vrot.slane %v2167_v47, 5  ;;  %v370_v57 = vrot.slane %v368_v48, 4  ;;  %v6841_v37 = vld [vmem:[%s6641_s7 + $0x58] sm:$0xf] }
  0x52   : > { %v381_v58 = vshrl.u32 %v6809_v36, 16  ;;  %v5042_v59 = vcombine.low %v356_v44, %v366_v55  ;;  %v2155_v61 = vrot.slane %v2154_v49, 4  ;;  %v373_v2 = vrot.slane %v371_v51, 5 }
  0x53   : > { %v2164_v0 = vor.u32 %v2163_v50, %v2159_v42  ;;  %v379_v5 = vrot.slane %v377_v52, 5  ;;  %v387_v7 = vshll.u32 %v210_v26, 16  ;;  %v2172_v9 = vshrl.u32 %v5233_v53, 16  ;;  %v211_v26 = vld [vmem:[%s6641_s7 + $0x5c] sm:$0x1] }
  0x54   : > { %v383_v6 = vrot.slane %v381_v58, 4  ;;  %5740 = vmatmul.mubr.msk.bf16.gmra.mrb[8].mxu1 %vm657_vm3, %v5042_v59  ;;  %v2160_v17 = vsel %vm6667_vm4, %v2155_v61, %v2159_v42  ;;  %v374_v11 = vor.u32 %v373_v2, %v370_v57  ;;  %v2175_v13 = vshll.u32 %v5233_v53, 16  ;;  %v5236_v53 = vld [vmem:[%s6641_s7 + $0x60] sm:$0xf]  ;;  %v6855_v59 = vld [vmem:[%s6641_s7 + $0x64] sm:$0xf] }
  0x55   : > { %v2165_v10 = vrot.slane %v2164_v0, 4  ;;  %v389_v18 = vrot.slane %v387_v7, 5  ;;  %v2174_v19 = vrot.slane %v2172_v9, 4  ;;  %v2181_v21 = vshll.u32 %v6825_v4, 16  ;;  %v6862_v9 = vld [vmem:[%s6641_s7 + $0x68] sm:$0x1] }
  0x56   : > { %v384_v14 = vor.u32 %v383_v6, %v379_v5  ;;  %v375_v29 = vrot.slane %v374_v11, 4  ;;  %v2177_v31 = vrot.slane %v2175_v13, 5  ;;  %v2185_v35 = vshrl.u32 %v6825_v4, 16 }
  0x57   : > { %v2170_v25 = vsel %vm6667_vm4, %v2165_v10, %v2169_v56  ;;  %v2183_v42 = vrot.slane %v2181_v21, 5  ;;  %v2191_v43 = vshll.u32 %v6831_v12, 16  ;;  %v392_v48 = vshrl.u32 %v6835_v24, 16 }
  0x58   : > { %v5269_v38 = vcombine.low %v2160_v17, %v2170_v25  ;;  %v385_v39 = vrot.slane %v384_v14, 4  ;;  %v380_v44 = vsel %vm6667_vm4, %v375_v29, %v379_v5  ;;  %v2178_v45 = vor.u32 %v2177_v31, %v2174_v19  ;;  %v6866_v19 = vld [vmem:[%s6641_s7 + $0x60] sm:$0xf] }
  0x59   : > { %v2187_v47 = vrot.slane %v2185_v35, 4  ;;  %v2193_v50 = vrot.slane %v2191_v43, 5  ;;  %v395_v51 = vshll.u32 %v6835_v24, 16  ;;  %v401_v52 = vshll.u32 %v6841_v37, 16  ;;  %v6872_v35 = vld [vmem:[%s6641_s7 + $0x64] sm:$0xf] }
  0x5a   : > { %5876 = vmatmul.mubr.msk.bf16.gmra.mrb[8].mxu0 %vm657_vm3, %v5269_v38  ;;  %v390_v49 = vsel %vm6667_vm4, %v385_v39, %v389_v18  ;;  %v2179_v56 = vrot.slane %v2178_v45, 4  ;;  %v394_v58 = vrot.slane %v392_v48, 4  ;;  %v405_v2 = vshrl.u32 %v6841_v37, 16 }
  0x5b   : > { %v5043_v55 = vcombine.low %v380_v44, %v390_v49  ;;  %v2188_v57 = vor.u32 %v2187_v47, %v2183_v42  ;;  %v397_v61 = vrot.slane %v395_v51, 5  ;;  %v403_v0 = vrot.slane %v401_v52, 5 }
  0x5c   : > { %v411_v5 = vshll.u32 %v211_v26, 16  ;;  %v2184_v6 = vsel %vm6667_vm4, %v2179_v56, %v2183_v42  ;;  %v2196_v17 = vshrl.u32 %v5236_v53, 16  ;;  %v2199_v10 = vshll.u32 %v5236_v53, 16 }
  0x5d   : > { %5743 = vmatprep.mubr.msk.bf16.mxu1 %vm657_vm3, %v5043_v55  ;;  %v2189_v7 = vrot.slane %v2188_v57, 4  ;;  %v398_v11 = vor.u32 %v397_v61, %v394_v58  ;;  %v407_v13 = vrot.slane %v405_v2, 4  ;;  %v2205_v18 = vshll.u32 %v6855_v59, 16  ;;  %v5296_v58 = vld [vmem:[%s6641_s7 + $0xc] sm:$0xe] }
  0x5e   : > { %v413_v14 = vrot.slane %v411_v5, 5  ;;  %v2198_v25 = vrot.slane %v2196_v17, 4  ;;  %v2201_v29 = vrot.slane %v2199_v10, 5  ;;  %v2209_v31 = vshrl.u32 %v6855_v59, 16 }
  0x5f   : > { %v2194_v21 = vsel %vm6667_vm4, %v2189_v7, %v2193_v50  ;;  %v399_v39 = vrot.slane %v398_v11, 4  ;;  %v408_v42 = vor.u32 %v407_v13, %v403_v0  ;;  %v2207_v43 = vrot.slane %v2205_v18, 5  ;;  %v212_v50 = vld [vmem:[%s6641_s7 + $0x68] sm:$0x1] }
  0x60   : > { %v5270_v38 = vcombine.low %v2184_v6, %v2194_v21  ;;  %v2202_v44 = vor.u32 %v2201_v29, %v2198_v25  ;;  %v2211_v45 = vrot.slane %v2209_v31, 4  ;;  %v2215_v47 = vshll.u32 %v6862_v9, 16  ;;  %v6900_v29 = vld [vmem:[%s6641_s7 + $0x70] sm:$0xf] }
  0x61   : > { %v416_v26 = vshrl.u32 %v6866_v19, 16  ;;  %v404_v48 = vsel %vm6667_vm4, %v399_v39, %v403_v0  ;;  %v409_v49 = vrot.slane %v408_v42, 4  ;;  %v419_v51 = vshll.u32 %v6866_v19, 16  ;;  %v6887_v0 = vld [vmem:[%s6641_s7 + $0x6c] sm:$0xf] }
  0x62   : > { %5879 = vmatprep.mubr.msk.bf16.mxu0 %vm657_vm3, %v5270_v38  ;;  %v425_v52 = vshll.u32 %v6872_v35, 16  ;;  %v2203_v53 = vrot.slane %v2202_v44, 4  ;;  %v2212_v55 = vor.u32 %v2211_v45, %v2207_v43  ;;  %v2217_v56 = vrot.slane %v2215_v47, 5 }
  0x63   : > { %v418_v57 = vrot.slane %v416_v26, 4  ;;  %v414_v61 = vsel %vm6667_vm4, %v409_v49, %v413_v14  ;;  %v421_v2 = vrot.slane %v419_v51, 5  ;;  %v429_v6 = vshrl.u32 %v6872_v35, 16  ;;  %v213_v26 = vld [vmem:[%s6641_s7 + $0x74] sm:$0x1] }
  0x64   : > { %v427_v5 = vrot.slane %v425_v52, 5  ;;  %v5044_v7 = vcombine.low %v404_v48, %v414_v61  ;;  %v2208_v17 = vsel %vm6667_vm4, %v2203_v53, %v2207_v43  ;;  %v2213_v10 = vrot.slane %v2212_v55, 4  ;;  %v5297_v48 = vld [vmem:[%s6641_s7 + $0x18] sm:$0xe] }
  0x65   : > { %v435_v11 = vshll.u32 %v212_v50, 16  ;;  %v422_v14 = vor.u32 %v421_v2, %v418_v57  ;;  %v431_v18 = vrot.slane %v429_v6, 4  ;;  %v5312_v21 = vrot.slane %v5296_v58, 9  ;;  %v6919_v53 = vld [vmem:[%s6641_s7 + $0x78] sm:$0xf] }
  0x66   : > { %v2773_v25 = vrot.slane %v2771_v62, 4  ;;  %5744 = vmatmul.mubr.msk.bf16.gmra.mrb[12].mxu1 %vm657_vm3, %v5044_v7  ;;  %v2218_v31 = vsel %vm6667_vm4, %v2213_v10, %v2217_v56  ;;  %v440_v39 = vshrl.u32 %v6887_v0, 16  ;;  %v443_v42 = vshll.u32 %v6887_v0, 16  ;;  %v214_v57 = vld [vmem:[%s6641_s7 + $0x80] sm:$0x1] }
  0x67   : > { %v437_v38 = vrot.slane %v435_v11, 5  ;;  %v5271_v43 = vcombine.low %v2208_v17, %v2218_v31  ;;  %v423_v44 = vrot.slane %v422_v14, 4  ;;  %v432_v45 = vor.u32 %v431_v18, %v427_v5  ;;  %v5298_v10 = vld [vmem:[%s6641_s7 + $0x24] sm:$0xe] }
  0x68   : > { %v2772_v47 = vsel %vm6893_vm7, %v5312_v21, %v2771_v62  ;;  %v2775_v49 = vsel %vm6893_vm7, %v2773_v25, %v2774_v63  ;;  %v442_v50 = vrot.slane %v440_v39, 4  ;;  %v445_v51 = vrot.slane %v443_v42, 5  ;;  %v6945_v39 = vld [vmem:[%s6641_s7 + $0x84] sm:$0xf] }
  0x69   : > { %v449_v52 = vshll.u32 %v6900_v29, 16  ;;  %5880 = vmatmul.mubr.msk.bf16.gmra.mrb[12].mxu0 %vm657_vm3, %v5271_v43  ;;  %v428_v15 = vsel %vm6667_vm4, %v423_v44, %v427_v5  ;;  %v433_v62 = vrot.slane %v432_v45, 4  ;;  %v5329_v55 = vcombine.low %v2772_v47, %v2775_v49  ;;  %v6953_v43 = vld [vmem:[%s6641_s7 + $0x88] sm:$0xf] }
  0x6a   : > { %v453_v56 = vshrl.u32 %v6900_v29, 16  ;;  %v446_v63 = vor.u32 %v445_v51, %v442_v50  ;;  %v459_v61 = vshll.u32 %v213_v26, 16  ;;  %v5313_v2 = vrot.slane %v5297_v48, 9 }
  0x6b   : > { %v451_v58 = vrot.slane %v449_v52, 5  ;;  %v438_v6 = vsel %vm6667_vm4, %v433_v62, %v437_v38  ;;  %5901 = vmatprep.mubr.msk.bf16.mxu0 %vm657_vm3, %v5329_v55  ;;  %v2782_v5 = vsel %vm6893_vm7, %v6710_v30, %v2781_v28  ;;  %v464_v17 = vshrl.u32 %v6919_v53, 16  ;;  %v215_v52 = vld [vmem:[%s6641_s7 + $0x8c] sm:$0x1] }
  0x6c   : > { %v455_v7 = vrot.slane %v453_v56, 4  ;;  %v5045_v11 = vcombine.low %v428_v15, %v438_v6  ;;  %v447_v14 = vrot.slane %v446_v63, 4  ;;  %v461_v18 = vrot.slane %v459_v61, 5 }
  0x6d   : > { %v2779_v21 = vsel %vm6893_vm7, %v5313_v2, %v2778_v22  ;;  %v466_v38 = vrot.slane %v464_v17, 4  ;;  %v467_v1 = vshll.u32 %v6919_v53, 16  ;;  %v473_v30 = vshll.u32 %v6926_v16, 16  ;;  %v6958_v22 = vld [vmem:[%s8621_s1 + $0xe] sm:$0x3] }
  0x6e   : > { %v456_v25 = vor.u32 %v455_v7, %v451_v58  ;;  %v5330_v31 = vcombine.low %v2779_v21, %v2782_v5  ;;  %5747 = vmatprep.mubr.msk.bf16.mxu1 %vm657_vm3, %v5045_v11  ;;  %v452_v28 = vsel %vm6667_vm4, %v447_v14, %v451_v58  ;;  %v477_v60 = vshrl.u32 %v6926_v16, 16  ;;  %v6977_v5 = vld [vmem:[%s6641_s7 + $0x90] sm:$0xf] }
  0x6f   : > { %v483_v42 = vshll.u32 %v214_v57, 16  ;;  %v469_v45 = vrot.slane %v467_v1, 5  ;;  %v5314_v47 = vrot.slane %v5298_v10, 9  ;;  %v2785_v26 = vrot.slane %v6717_v46, 5  ;;  %v5299_v57 = vld [vmem:[%s6641_s7 + $0x30] sm:$0xe] }
  0x70   : > { %v457_v44 = vrot.slane %v456_v25, 4  ;;  %v475_v48 = vrot.slane %v473_v30, 5  ;;  %v479_v49 = vrot.slane %v477_v60, 4  ;;  %v2788_v51 = vrot.slane %v6726_v54, 5  ;;  %v6989_v30 = vld [vmem:[%s6641_s7 + $0x94] sm:$0xf] }
  0x71   : > { %v485_v50 = vrot.slane %v483_v42, 5  ;;  %5902 = vmatmul.mubr.msk.bf16.vlgmr.msra.gmra.mrb[0].mxu0 %vm657_vm3, %v5330_v31  ;;  %v470_v62 = vor.u32 %v469_v45, %v466_v38  ;;  %v2786_v55 = vsel %vm6893_vm7, %v5314_v47, %v2785_v26  ;;  %v2787_v56 = vrot.slane %v2785_v26, 4  ;;  %v216_v60 = vld [vmem:[%s6641_s7 + $0x98] sm:$0x1]  ;;  %v5300_v26 = vld [vmem:[%s6641_s7 + $0x3c] sm:$0xe] }
  0x72   : > { %v462_v15 = vsel %vm6667_vm4, %v457_v44, %v461_v18  ;;  %5934 = vmatpush3.bf16.msra.mxu0 %v6677_v41  ;;  %v480_v46 = vor.u32 %v479_v49, %v475_v48  ;;  %v488_v58 = vshrl.u32 %v6945_v39, 16  ;;  %v491_v54 = vshll.u32 %v6945_v39, 16 }
  0x73   : > { %v5046_v63 = vcombine.low %v452_v28, %v462_v15  ;;  %v471_v61 = vrot.slane %v470_v62, 4  ;;  %v2789_v2 = vsel %vm6893_vm7, %v2787_v56, %v2788_v51  ;;  %v497_v6 = vshll.u32 %v6953_v43, 16  ;;  %6301 = vmatprep.subr.msk.bf16.mxu0 %vm706_vm0, %v6958_v22 }
  0x74   : > { %v501_v7 = vshrl.u32 %v6953_v43, 16  ;;  %v481_v41 = vrot.slane %v480_v46, 4  ;;  %v5331_v17 = vcombine.low %v2786_v55, %v2789_v2  ;;  %v490_v10 = vrot.slane %v488_v58, 4  ;;  %v7009_v46 = vld [vmem:[%s6641_s7 + $0xa0] sm:$0xf] }
  0x75   : > { %5748 = vmatmul.mubr.msk.bf16.gmra.mrb[16].mxu1 %vm657_vm3, %v5046_v63  ;;  %v493_v11 = vrot.slane %v491_v54, 5  ;;  %v476_v14 = vsel %vm6667_vm4, %v471_v61, %v475_v48  ;;  %v499_v18 = vrot.slane %v497_v6, 5  ;;  %v507_v25 = vshll.u32 %v215_v52, 16  ;;  %v6998_v52 = vld [vmem:[%s6641_s7 + $0x9c] sm:$0xf] }
  0x76   : > { %v503_v21 = vrot.slane %v501_v7, 4  ;;  %v486_v31 = vsel %vm6667_vm4, %v481_v41, %v485_v50  ;;  %5905 = vmatprep.mubr.msk.bf16.mxu0 %vm657_vm3, %v5331_v17  ;;  %v5315_v1 = vrot.slane %v5299_v57, 9  ;;  %v2792_v28 = vrot.slane %v6746_v33, 5 }
  0x77   : > { %v494_v38 = vor.u32 %v493_v11, %v490_v10  ;;  %v5047_v42 = vcombine.low %v476_v14, %v486_v31  ;;  %v509_v45 = vrot.slane %v507_v25, 5  ;;  %v2795_v47 = vrot.slane %v6754_v40, 5  ;;  %v217_v10 = vld [vmem:[%s6641_s7 + $0xa4] sm:$0x1]  ;;  %v5301_v11 = vld [vmem:[%s6641_s7 + $0x48] sm:$0xe] }
  0x78   : > { %v504_v44 = vor.u32 %v503_v21, %v499_v18  ;;  %v2793_v49 = vsel %vm6893_vm7, %v5315_v1, %v2792_v28  ;;  %v2794_v50 = vrot.slane %v2792_v28, 4  ;;  %v512_v51 = vshrl.u32 %v6977_v5, 16 }
  0x79   : > { %v495_v48 = vrot.slane %v494_v38, 4  ;;  %5751 = vmatprep.mubr.msk.bf16.mxu1 %vm657_vm3, %v5047_v42  ;;  %v515_v15 = vshll.u32 %v6977_v5, 16  ;;  %v521_v62 = vshll.u32 %v6989_v30, 16  ;;  %v525_v40 = vshrl.u32 %v6989_v30, 16 }
  0x7a   : > { %v505_v33 = vrot.slane %v504_v44, 4  ;;  %v2796_v56 = vsel %vm6893_vm7, %v2794_v50, %v2795_v47  ;;  %v514_v57 = vrot.slane %v512_v51, 4  ;;  %v531_v63 = vshll.u32 %v216_v60, 16 }
  0x7b   : > { %v500_v55 = vsel %vm6667_vm4, %v495_v48, %v499_v18  ;;  %v5332_v54 = vcombine.low %v2793_v49, %v2796_v56  ;;  %v517_v61 = vrot.slane %v515_v15, 5  ;;  %v523_v2 = vrot.slane %v521_v62, 5  ;;  %v7035_v56 = vld [vmem:[%s6641_s7 + $0xac] sm:$0xf] }
  0x7c   : > { %v510_v58 = vsel %vm6667_vm4, %v505_v33, %v509_v45  ;;  %v527_v7 = vrot.slane %v525_v40, 4  ;;  %v533_v41 = vrot.slane %v531_v63, 5  ;;  %v5316_v17 = vrot.slane %v5300_v26, 9  ;;  %v7030_v33 = vld [vmem:[%s6641_s7 + $0xa8] sm:$0xf] }
  0x7d   : > { %v5048_v6 = vcombine.low %v500_v55, %v510_v58  ;;  %5906 = vmatmul.mubr.msk.bf16.gmra.mrb[4].mxu0 %vm657_vm3, %v5332_v54  ;;  %v518_v14 = vor.u32 %v517_v61, %v514_v57  ;;  %v2799_v18 = vrot.slane %v6771_v20, 5  ;;  %v2802_v21 = vrot.slane %v6776_v34, 5  ;;  %v218_v61 = vld [vmem:[%s6641_s7 + $0xb0] sm:$0x1] }
  0x7e   : > { %v536_v25 = vshrl.u32 %v6998_v52, 16  ;;  %v528_v31 = vor.u32 %v527_v7, %v523_v2  ;;  %v539_v38 = vshll.u32 %v6998_v52, 16  ;;  %v545_v1 = vshll.u32 %v7009_v46, 16 }
  0x7f   : > { %5752 = vmatmul.mubr.msk.bf16.gmra.mrb[20].mxu1 %vm657_vm3, %v5048_v6  ;;  %v549_v28 = vshrl.u32 %v7009_v46, 16  ;;  %v519_v60 = vrot.slane %v518_v14, 4  ;;  %v2800_v42 = vsel %vm6893_vm7, %v5316_v17, %v2799_v18  ;;  %v2801_v20 = vrot.slane %v2799_v18, 4  ;;  %v7050_v14 = vld [vmem:[%s6641_s7 + $0xb4] sm:$0xf] }
  0x80   : > { %v538_v44 = vrot.slane %v536_v25, 4  ;;  %v529_v34 = vrot.slane %v528_v31, 4  ;;  %v541_v45 = vrot.slane %v539_v38, 5  ;;  %v547_v47 = vrot.slane %v545_v1, 5 }
  0x81   : > { %v551_v26 = vrot.slane %v549_v28, 4  ;;  %v524_v48 = vsel %vm6667_vm4, %v519_v60, %v523_v2  ;;  %v2803_v49 = vsel %vm6893_vm7, %v2801_v20, %v2802_v21  ;;  %v555_v50 = vshll.u32 %v217_v10, 16  ;;  %v5302_v2 = vld [vmem:[%s6641_s7 + $0x54] sm:$0xe] }
  0x82   : > { %v5317_v51 = vrot.slane %v5301_v11, 9  ;;  %v534_v15 = vsel %vm6667_vm4, %v529_v34, %v533_v41  ;;  %v5333_v62 = vcombine.low %v2800_v42, %v2803_v49  ;;  %v542_v40 = vor.u32 %v541_v45, %v538_v44  ;;  %v7059_v42 = vld [vmem:[%s6641_s7 + $0xb8] sm:$0xf]  ;;  %v219_v49 = vld [vmem:[%s6641_s7 + $0xbc] sm:$0x1] }
  0x83   : > { %v552_v55 = vor.u32 %v551_v26, %v547_v47  ;;  %v5049_v57 = vcombine.low %v524_v48, %v534_v15  ;;  %v557_v63 = vrot.slane %v555_v50, 5  ;;  %v2806_v58 = vrot.slane %v6794_v8, 5 }
  0x84   : > { %v2809_v54 = vrot.slane %v6802_v23, 5  ;;  %5909 = vmatprep.mubr.msk.bf16.mxu0 %vm657_vm3, %v5333_v62  ;;  %v543_v6 = vrot.slane %v542_v40, 4  ;;  %v560_v41 = vshrl.u32 %v7030_v33, 16  ;;  %v563_v17 = vshll.u32 %v7030_v33, 16 }
  0x85   : > { %v553_v7 = vrot.slane %v552_v55, 4  ;;  %5755 = vmatprep.mubr.msk.bf16.mxu1 %vm657_vm3, %v5049_v57  ;;  %v2807_v10 = vsel %vm6893_vm7, %v5317_v51, %v2806_v58  ;;  %v2808_v11 = vrot.slane %v2806_v58, 4  ;;  %v569_v8 = vshll.u32 %v7035_v56, 16  ;;  %v5303_v55 = vld [vmem:[%s6641_s7 + $0x60] sm:$0xe] }
  0x86   : > { %v573_v23 = vshrl.u32 %v7035_v56, 16  ;;  %v548_v18 = vsel %vm6667_vm4, %v543_v6, %v547_v47  ;;  %v562_v25 = vrot.slane %v560_v41, 4  ;;  %v565_v31 = vrot.slane %v563_v17, 5  ;;  %v5304_v6 = vld [vmem:[%s6641_s7 + $0x6c] sm:$0xe] }
  0x87   : > { %v558_v21 = vsel %vm6667_vm4, %v553_v7, %v557_v63  ;;  %v2810_v1 = vsel %vm6893_vm7, %v2808_v11, %v2809_v54  ;;  %v571_v28 = vrot.slane %v569_v8, 5  ;;  %v579_v34 = vshll.u32 %v218_v61, 16  ;;  %v5240_v11 = vld [vmem:[%s6641_s7 + $0x70] sm:$0xf]  ;;  %v5241_v8 = vld [vmem:[%s6641_s7 + $0x74] sm:$0x1] }
  0x88   : > { %v5050_v38 = vcombine.low %v548_v18, %v558_v21  ;;  %v575_v60 = vrot.slane %v573_v23, 4  ;;  %v5334_v20 = vcombine.low %v2807_v10, %v2810_v1  ;;  %v566_v44 = vor.u32 %v565_v31, %v562_v25 }
  0x89   : > { %v5318_v45 = vrot.slane %v5302_v2, 9  ;;  %v2813_v26 = vrot.slane %v6825_v4, 5  ;;  %v2816_v48 = vrot.slane %v6831_v12, 5  ;;  %v584_v50 = vshrl.u32 %v7050_v14, 16 }
  0x8a   : > { %5756 = vmatmul.mubr.msk.bf16.gmra.mrb[24].mxu1 %vm657_vm3, %v5050_v38  ;;  %v576_v47 = vor.u32 %v575_v60, %v571_v28  ;;  %5910 = vmatmul.mubr.msk.bf16.gmra.mrb[8].mxu0 %vm657_vm3, %v5334_v20  ;;  %v567_v51 = vrot.slane %v566_v44, 4  ;;  %v581_v15 = vrot.slane %v579_v34, 5  ;;  %v587_v62 = vshll.u32 %v7050_v14, 16 }
  0x8b   : > { %v593_v40 = vshll.u32 %v7059_v42, 16  ;;  %v2814_v4 = vsel %vm6893_vm7, %v5318_v45, %v2813_v26  ;;  %v2815_v12 = vrot.slane %v2813_v26, 4  ;;  %v586_v63 = vrot.slane %v584_v50, 4 }
  0x8c   : > { %v577_v57 = vrot.slane %v576_v47, 4  ;;  %v572_v58 = vsel %vm6667_vm4, %v567_v51, %v571_v28  ;;  %v589_v54 = vrot.slane %v587_v62, 5  ;;  %v597_v2 = vshrl.u32 %v7059_v42, 16  ;;  %v5305_v47 = vld [vmem:[%s6641_s7 + $0x78] sm:$0xe] }
  0x8d   : > { %v595_v61 = vrot.slane %v593_v40, 5  ;;  %v2817_v41 = vsel %vm6893_vm7, %v2815_v12, %v2816_v48  ;;  %v603_v17 = vshll.u32 %v219_v49, 16  ;;  %v5319_v10 = vrot.slane %v5303_v55, 9  ;;  %v6407_v51 = vld [vmem:[%s6641_s7] sm:$0xf] }
  0x8e   : > { %v582_v7 = vsel %vm6667_vm4, %v577_v57, %v581_v15  ;;  %v5335_v18 = vcombine.low %v2814_v4, %v2817_v41  ;;  %v590_v21 = vor.u32 %v589_v54, %v586_v63  ;;  %v599_v25 = vrot.slane %v597_v2, 4  ;;  %v7097_v15 = vld [vmem:[%s6641_s7 + $0x4] sm:$0xf]  ;;  %v7101_v40 = vld [vmem:[%s6641_s7 + $0x7c] sm:$0xf] }
  0x8f   : > { %v5051_v23 = vcombine.low %v572_v58, %v582_v7  ;;  %v605_v31 = vrot.slane %v603_v17, 5  ;;  %v2820_v38 = vrot.slane %v6855_v59, 5  ;;  %v2823_v1 = vrot.slane %v6862_v9, 5  ;;  %v7104_v55 = vld [vmem:[%s6641_s7 + $0x80] sm:$0x1] }
  0x90   : > { %v5320_v28 = vrot.slane %v5304_v6, 9  ;;  %5913 = vmatprep.mubr.msk.bf16.mxu0 %vm657_vm3, %v5335_v18  ;;  %v591_v60 = vrot.slane %v590_v21, 4  ;;  %v600_v20 = vor.u32 %v599_v25, %v595_v61  ;;  %v2827_v44 = vrot.slane %v5240_v11, 5  ;;  %v5246_v57 = vld [vmem:[%s6641_s7 + $0x88] sm:$0xf] }
  0x91   : > { %5759 = vmatprep.mubr.msk.bf16.mxu1 %vm657_vm3, %v5051_v23  ;;  %v2830_v34 = vrot.slane %v5241_v8, 5  ;;  %v2821_v45 = vsel %vm6893_vm7, %v5319_v10, %v2820_v38  ;;  %v2822_v59 = vrot.slane %v2820_v38, 4  ;;  %v5069_v62 = vcombine.low %v6407_v51, %v7097_v15  ;;  %v5247_v54 = vld [vmem:[%s6641_s7 + $0x8c] sm:$0x1]  ;;  %v5249_v17 = vld [vmem:[%s6641_s7 + $0x94] sm:$0xf] }
  0x92   : > { %v596_v9 = vsel %vm6667_vm4, %v591_v60, %v595_v61  ;;  %v601_v26 = vrot.slane %v600_v20, 4  ;;  %v2828_v48 = vsel %vm6893_vm7, %v5320_v28, %v2827_v44  ;;  %v2829_v49 = vrot.slane %v2827_v44, 4  ;;  %v5306_v61 = vld [vmem:[%s6641_s7 + $0x84] sm:$0xe]  ;;  %v5307_v23 = vld [vmem:[%s6641_s7 + $0x90] sm:$0xe] }
  0x93   : > { %v2824_v50 = vsel %vm6893_vm7, %v2822_v59, %v2823_v1  ;;  %v5321_v58 = vrot.slane %v5305_v47, 9  ;;  %v2834_v7 = vrot.slane %v7101_v40, 5  ;;  %v2837_v41 = vrot.slane %v7104_v55, 5  ;;  %v5250_v25 = vld [vmem:[%s6641_s7 + $0x98] sm:$0x1] }
  0x94   : > { %v606_v4 = vsel %vm6667_vm4, %v601_v26, %v605_v31  ;;  %v5336_v12 = vcombine.low %v2821_v45, %v2824_v50  ;;  %v2831_v63 = vsel %vm6893_vm7, %v2829_v49, %v2830_v34  ;;  %v5322_v10 = vrot.slane %v5306_v61, 9  ;;  %v5252_v31 = vld [vmem:[%s6641_s7 + $0xa0] sm:$0xf]  ;;  %v5253_v60 = vld [vmem:[%s6641_s7 + $0xa4] sm:$0x1] }
  0x95   : > { %v5052_v2 = vcombine.low %v596_v9, %v606_v4  ;;  %v5337_v6 = vcombine.low %v2828_v48, %v2831_v63  ;;  %v2841_v11 = vrot.slane %v5246_v57, 5  ;;  %v2844_v8 = vrot.slane %v5247_v54, 5  ;;  %v5308_v20 = vld [vmem:[%s6641_s7 + $0x9c] sm:$0xe]  ;;  %v6409_v44 = vld [vmem:[%s6641_s7 + $0xc] sm:$0xf] }
  0x96   : > { %5914 = vmatmul.mubr.msk.bf16.gmra.mrb[12].mxu0 %vm657_vm3, %v5336_v12  ;;  %v2835_v18 = vsel %vm6893_vm7, %v5321_v58, %v2834_v7  ;;  %v2836_v21 = vrot.slane %v2834_v7, 4  ;;  %v2848_v28 = vrot.slane %v5249_v17, 5  ;;  %v7131_v34 = vld [vmem:[%s6641_s7 + $0x10] sm:$0xf]  ;;  %v6411_v47 = vld [vmem:[%s6641_s7 + $0x18] sm:$0xf] }
  0x97   : > { %5760 = vmatmul.mubr.msk.bf16.gmra.mrb[28].mxu1 %vm657_vm3, %v5052_v2  ;;  %5917 = vmatprep.mubr.msk.bf16.mxu0 %vm657_vm3, %v5337_v6  ;;  %v2842_v38 = vsel %vm6893_vm7, %v5322_v10, %v2841_v11  ;;  %v2843_v1 = vrot.slane %v2841_v11, 4  ;;  %v5070_v45 = vcombine.low %v6409_v44, %v7131_v34  ;;  %v7138_v9 = vld [vmem:[%s6641_s7 + $0x1c] sm:$0xf]  ;;  %v5323_v48 = vrot.slane %v5307_v23, 9  ;;  %v5255_v57 = vld [vmem:[%s6641_s7 + $0xac] sm:$0xf] }
  0x98   : > { %5765 = vmatprep.mubr.msk.bf16.mxu1 %vm657_vm3, %v5069_v62  ;;  %v2838_v59 = vsel %vm6893_vm7, %v2836_v21, %v2837_v41  ;;  %v5071_v26 = vcombine.low %v6411_v47, %v7138_v9  ;;  %v2850_v51 = vrot.slane %v2848_v28, 4  ;;  %v2851_v62 = vrot.slane %v5250_v25, 5  ;;  %v6413_v54 = vld [vmem:[%s8621_s1 + $0x4] sm:$0x3]  ;;  %v5258_v2 = vld [vmem:[%s6641_s7 + $0xb8] sm:$0xf] }
  0x99   : > { %v5338_v49 = vcombine.low %v2835_v18, %v2838_v59  ;;  %v2845_v50 = vsel %vm6893_vm7, %v2843_v1, %v2844_v8  ;;  %v5324_v12 = vrot.slane %v5308_v20, 9  ;;  %v2855_v63 = vrot.slane %v5252_v31, 5  ;;  %v7153_v7 = vld [vmem:[%s8621_s1 + $0x6] sm:$0x3]  ;;  %v5256_v10 = vld [vmem:[%s6641_s7 + $0xb0] sm:$0x1] }
  0x9a   : > { %v5339_v4 = vcombine.low %v2842_v38, %v2845_v50  ;;  %v2858_v58 = vrot.slane %v5253_v60, 5  ;;  %v1425_v61 = vsel %vm706_vm0, %v6413_v54, 0  ;;  %v2849_v41 = vsel %vm6893_vm7, %v5323_v48, %v2848_v28  ;;  %v5309_v11 = vld [vmem:[%s6641_s7 + $0xa8] sm:$0xe]  ;;  %v5259_v25 = vld [vmem:[%s6641_s7 + $0xbc] sm:$0x1] }
  0x9b   : > { %v2857_v6 = vrot.slane %v2855_v63, 4  ;;  %v2852_v17 = vsel %vm6893_vm7, %v2850_v51, %v2851_v62  ;;  %v2862_v8 = vrot.slane %v5255_v57, 5  ;;  %v2856_v23 = vsel %vm6893_vm7, %v5324_v12, %v2855_v63  ;;  %v5310_v31 = vld [vmem:[%s6641_s7 + $0xb4] sm:$0xe]  ;;  %v6414_v38 = vld [vmem:[%s6641_s7 + $0x24] sm:$0xf] }
  0x9c   : > { %v2869_v21 = vrot.slane %v5258_v2, 5  ;;  %v7174_v1 = vld [vmem:[%s6641_s7 + $0x28] sm:$0xf]  ;;  %v5340_v60 = vcombine.low %v2849_v41, %v2852_v17  ;;  %v5325_v44 = vrot.slane %v5309_v11, 9  ;;  %v2865_v59 = vrot.slane %v5256_v10, 5 }
  0x9d   : > { %v2859_v18 = vsel %vm6893_vm7, %v2857_v6, %v2858_v58  ;;  %v5072_v28 = vcombine.low %v6414_v38, %v7174_v1  ;;  %v6416_v47 = vld [vmem:[%s6641_s7 + $0x30] sm:$0xf]  ;;  %v2872_v51 = vrot.slane %v5259_v25, 5  ;;  %v5261_v62 = vld [vmem:[%s6641_s7 + $0xc4] sm:$0xf]  ;;  %v2257_v25 = vshrl.u32 %v7101_v40, 16 }
  0x9e   : > { %5918 = vmatmul.mubr.msk.bf16.gmra.mrb[16].mxu0 %vm657_vm3, %v5338_v49  ;;  %v5341_v20 = vcombine.low %v2856_v23, %v2859_v18  ;;  %v5326_v49 = vrot.slane %v5310_v31, 9  ;;  %v2871_v50 = vrot.slane %v2869_v21, 4  ;;  %v2863_v57 = vsel %vm6893_vm7, %v5325_v44, %v2862_v8  ;;  %v5311_v12 = vld [vmem:[%s6641_s7 + $0xc0] sm:$0xe]  ;;  %v6418_v41 = vld [vmem:[%s6641_s7 + $0x3c] sm:$0xf] }
  0x9f   : > { %5766 = vmatmul.mubr.msk.bf16.vlgmr.msra.gmra.mrb[0].mxu1 %vm657_vm3, %v5070_v45  ;;  %5921 = vmatprep.mubr.msk.bf16.mxu0 %vm657_vm3, %v5339_v4  ;;  %v2864_v45 = vrot.slane %v2862_v8, 4  ;;  %v2876_v63 = vrot.slane %v5261_v62, 5  ;;  %v5327_v6 = vrot.slane %v5311_v12, 9  ;;  %v7199_v17 = vld [vmem:[%s6641_s7 + $0x40] sm:$0xf]  ;;  %v5075_v18 = vcombine.low %v6806_v27, %v6809_v36  ;;  %v6370_v62 = vld [vmem:[%s6641_s7 + $0x24] sm:$0xff]  }
  0xa0   : > { %5798 = vmatpush3.bf16.msra.mxu1 %v1425_v61  ;;  %5769 = vmatprep.mubr.msk.bf16.mxu1 %vm657_vm3, %v5071_v26  ;;  %v7179_v26 = vld [vmem:[%s6641_s7 + $0x34] sm:$0xf]  ;;  %v2870_v58 = vsel %vm6893_vm7, %v5326_v49, %v2869_v21  ;;  %v2873_v54 = vsel %vm6893_vm7, %v2871_v50, %v2872_v51  ;;  %v5262_v61 = vld [vmem:[%s6641_s7 + $0xc8] sm:$0x1]  ;;  %v5074_v10 = vcombine.low %v6418_v41, %v7199_v17  ;;  %v2253_v21 = vshll.u32 %v7101_v40, 16 }
  0xa1   : > { %6296 = vmatprep.subr.msk.bf16.mxu1 %vm706_vm0, %v7153_v7  ;;  %v5073_v48 = vcombine.low %v6416_v47, %v7179_v26  ;;  %v2866_v4 = vsel %vm6893_vm7, %v2864_v45, %v2865_v59  ;;  %v5343_v11 = vcombine.low %v2870_v58, %v2873_v54  ;;  %v2878_v8 = vrot.slane %v2876_v63, 4  ;;  %v1163_v45 = vld [vmem:[%s6641_s7] sm:$0xe]  ;;  %v1164_v59 = vld [vmem:[%s6641_s7 + $0xc] sm:$0xe] }
  0xa2   : > { %v5342_v2 = vcombine.low %v2863_v57, %v2866_v4  ;;  %v2879_v23 = vrot.slane %v5262_v61, 5  ;;  %v2877_v31 = vsel %vm6893_vm7, %v5327_v6, %v2876_v63  ;;  %v7214_v27 = vrot.slane %v2253_v21, 5  ;;  %v1167_v41 = vld [vmem:[%s6641_s7 + $0x30] sm:$0xe] }
  0xa3   : > { %v2259_v36 = vrot.slane %v2257_v25, 4  ;;  %v5077_v44 = vcombine.low %v6866_v19, %v6872_v35  ;;  %v2263_v47 = vshll.u32 %v7104_v55, 16  ;;  %v5101_v19 = vrot.slane %v1163_v45, 9 }
  0xa4   : > { %v2880_v38 = vsel %vm6893_vm7, %v2878_v8, %v2879_v23  ;;  %8643 = vst [vmem:[#allocation6_spill] sm:$0xff] %v7214_v27  ;;  %v5102_v35 = vrot.slane %v1164_v59, 9  ;;  %v1230_v4 = vrot.slane %v7138_v9, 5  ;;  %v1237_v12 = vrot.slane %v7174_v1, 5  ;;  %v1168_v8 = vld [vmem:[%s6641_s7 + $0x3c] sm:$0xe] }
  0xa5   : > { %v5344_v40 = vcombine.low %v2877_v31, %v2880_v38  ;;  %v2260_v49 = vor.u32 %v2259_v36, %v7214_v27  ;;  %v7234_v51 = vrot.slane %v2263_v47, 5  ;;  %v5078_v58 = vcombine.low %v6887_v0, %v6900_v29  ;;  %v1169_v31 = vld [vmem:[%s6641_s7 + $0x48] sm:$0xe]  ;;  %v6424_v59 = vld [vmem:[%s6641_s7 + $0x38] sm:$0x1] }
  0xa6   : > { %5922 = vmatmul.mubr.msk.bf16.gmra.mrb[20].mxu0 %vm657_vm3, %v5340_v60  ;;  %v5076_v60 = vcombine.low %v6835_v24, %v6841_v37  ;;  %v6421_v24 = vld [vmem:[%s6641_s7 + $0x14] sm:$0x1]  ;;  %v4065_v54 = vsel %vm706_vm0, %v6958_v22, 0  ;;  %v5079_v61 = vcombine.low %v6919_v53, %v6926_v16  ;;  %v5080_v6 = vcombine.low %v6945_v39, %v6953_v43  ;;  %v6422_v16 = vld [vmem:[%s6641_s7 + $0x20] sm:$0x1] }
  0xa7   : > { %5770 = vmatmul.mubr.msk.bf16.gmra.mrb[4].mxu1 %vm657_vm3, %v5072_v28  ;;  %5925 = vmatprep.mubr.msk.bf16.mxu0 %vm657_vm3, %v5341_v20  ;;  %v1223_v28 = vrot.slane %v7131_v34, 5  ;;  %v6368_v20 = vld [vmem:[%s6641_s7 + $0x18] sm:$0xff]   ;;  %v6420_v34 = vld [vmem:[%s6641_s7 + $0x8] sm:$0x1]  ;;  %v1226_v37 = vrot.slane %v6421_v24, 5  ;;  %8644 = vst [vmem:[#allocation7_spill] sm:$0xff] %v7234_v51  ;;  %v5081_v9 = vcombine.low %v6977_v5, %v6989_v30 }
  0xa8   : > { %5773 = vmatprep.mubr.msk.bf16.mxu1 %vm657_vm3, %v5073_v48  ;;  %v1216_v48 = vrot.slane %v7097_v15, 5  ;;  %v1219_v50 = vrot.slane %v6420_v34, 5  ;;  %v1165_v15 = vld [vmem:[%s6641_s7 + $0x18] sm:$0xe]  ;;  %v7239_v63 = vrot.slane %v2260_v49, 4  ;;  %v1233_v22 = vrot.slane %v6422_v16, 5 }
  0xa9   : > { %v1225_v55 = vrot.slane %v1223_v28, 4  ;;  %v5103_v1 = vrot.slane %v1165_v15, 9  ;;  %v7261_v29 = vsel %vm6893_vm7, %v5102_v35, %v1223_v28  ;;  %v1239_v25 = vrot.slane %v1237_v12, 4  ;;  %v5426_v24 = vld [vmem:[%s6641_s7 + $0x18] sm:$0xf] }
  0xaa   : > { %v1218_v57 = vrot.slane %v1216_v48, 4  ;;  %8645 = vst [vmem:[#allocation8_spill] sm:$0xff] %v7239_v63  ;;  %v7257_v0 = vsel %vm6893_vm7, %v5101_v19, %v1216_v48  ;;  %v1247_v47 = vrot.slane %v6424_v59, 5  ;;  %v7298_v49 = vsel %vm706_vm0, %v7153_v7, 0  ;;  %v5427_v7 = vld [vmem:[%s6641_s7 + $0x1c] sm:$0xf] }
  0xab   : > { %v7265_v53 = vsel %vm6893_vm7, %v1225_v55, %v1226_v37  ;;  %v7302_v34 = vsel %vm6893_vm7, %v5103_v1, %v1230_v4  ;;  %v6374_v37 = vld [vmem:[%s6641_s7 + $0x3c] sm:$0xff]   ;;  %v5106_v35 = vrot.slane %v1168_v8, 9  ;;  %v6425_v55 = vld [vmem:[%s6641_s7 + $0x44] sm:$0x1]  ;;  %v3586_v8 = vshll.u32 %v5426_v24, 16 }
  0xac   : > { %v7276_v23 = vsel %vm6893_vm7, %v1218_v57, %v1219_v50  ;;  %v1170_v50 = vld [vmem:[%s6641_s7 + $0x54] sm:$0xe]  ;;  %v1254_v15 = vrot.slane %v6425_v55, 5  ;;  %v5430_v39 = vld [vmem:[%s6641_s7 + $0x28] sm:$0xf] }
  0xad   : > { %v6432_v5 = vld [vmem:[%s6641_s7 + $0x70] sm:$0xf] }
  0xae   : > { %5926 = vmatmul.mubr.msk.bf16.gmra.mrb[24].mxu0 %vm657_vm3, %v5342_v2  ;;  %v1166_v2 = vld [vmem:[%s6641_s7 + $0x24] sm:$0xe]  ;;  %v1279_v30 = vrot.slane %v6432_v5, 5 }
  0xaf   : > { %5774 = vmatmul.mubr.msk.bf16.gmra.mrb[8].mxu1 %vm657_vm3, %v5074_v10  ;;  %5929 = vmatprep.mubr.msk.bf16.mxu0 %vm657_vm3, %v5343_v11  ;;  %v1244_v10 = vrot.slane %v7179_v26, 5  ;;  %v6372_v11 = vld [vmem:[%s6641_s7 + $0x30] sm:$0xff]   ;;  %v5104_v21 = vrot.slane %v1166_v2, 9 }
  0xb0   : > { %5777 = vmatprep.mubr.msk.bf16.mxu1 %vm657_vm3, %v5075_v18  ;;  %v7272_v26 = vld [vmem:[%s8621_s1 + $0x10] sm:$0x3]  ;;  %v1232_v18 = vrot.slane %v1230_v4, 4  ;;  %v1281_v48 = vrot.slane %v1279_v30, 4 }
  0xb1   : > { %v1246_v45 = vrot.slane %v1244_v10, 4  ;;  %v7309_v19 = vsel %vm6893_vm7, %v5104_v21, %v1237_v12  ;;  %v3596_v21 = vshrl.u32 %v5427_v7, 16 }
  0xb2   : > { %v7318_v4 = vsel %vm6893_vm7, %v1232_v18, %v1233_v22  ;;  %v3583_v22 = vshrl.u32 %v5426_v24, 16  ;;  %v3592_v18 = vshll.u32 %v5427_v7, 16  ;;  %v5429_v24 = vld [vmem:[%s6641_s7 + $0x24] sm:$0xf] }
  0xb3   : > { %v7331_v1 = vsel %vm6893_vm7, %v1246_v45, %v1247_v47 }
  0xb4   : > { %v3585_v43 = vrot.slane %v3583_v22, 4  ;;  %v7373_v7 = vrot.slane %v3592_v18, 5  ;;  %v3610_v22 = vshll.u32 %v5429_v24, 16  ;;  %v3620_v18 = vshrl.u32 %v5430_v39, 16 }
  0xb6   : > { %5930 = vmatmul.mubr.msk.bf16.gmra.mrb[28].mxu0 %vm657_vm3, %v5344_v40  ;;  %v6423_v40 = vld [vmem:[%s6641_s7 + $0x2c] sm:$0x1]  ;;  %v3612_v27 = vrot.slane %v3610_v22, 5 }
  0xb7   : > { %5778 = vmatmul.mubr.msk.bf16.gmra.mrb[12].mxu1 %vm657_vm3, %v5076_v60  ;;  %5935 = vmatprep.mubr.msk.bf16.mxu0 %vm657_vm3, %v6368_v20  ;;  %v1240_v28 = vrot.slane %v6423_v40, 5  ;;  %v1251_v60 = vrot.slane %v7199_v17, 5  ;;  %v6428_v40 = vld [vmem:[%s6641_s7 + $0x50] sm:$0x1]  ;;  %v6433_v17 = vld [vmem:[%s6641_s7 + $0x74] sm:$0x1] }
  0xb8   : > { %5781 = vmatprep.mubr.msk.bf16.mxu1 %vm657_vm3, %v5077_v44  ;;  %v5105_v44 = vrot.slane %v1167_v41, 9  ;;  %v5108_v41 = vrot.slane %v1170_v50, 9  ;;  %v1171_v50 = vld [vmem:[%s6641_s7 + $0x60] sm:$0xe]  ;;  %v5431_v20 = vld [vmem:[%s6641_s7 + $0x2c] sm:$0x1] }
  0xb9   : > { %v1253_v12 = vrot.slane %v1251_v60, 4  ;;  %v7344_v45 = vsel %vm6893_vm7, %v5106_v35, %v1251_v60  ;;  %v6429_v35 = vld [vmem:[%s6641_s7 + $0x5c] sm:$0x1] }
  0xba   : > { %v7327_v2 = vsel %vm6893_vm7, %v5105_v44, %v1244_v10  ;;  %v1268_v55 = vrot.slane %v6429_v35, 5  ;;  %v1172_v35 = vld [vmem:[%s6641_s7 + $0x6c] sm:$0xe] }
  0xbb   : > { %v7348_v59 = vsel %vm6893_vm7, %v1253_v12, %v1254_v15  ;;  %v6430_v15 = vld [vmem:[%s6641_s7 + $0x64] sm:$0xf]  ;;  %v3598_v12 = vrot.slane %v3596_v21, 4  ;;  %v5110_v5 = vrot.slane %v1172_v35, 9 }
  0xbc   : > { %v6380_v21 = vld [vmem:[%s6641_s7 + $0x60] sm:$0xff]  }
  0xbe   : > { %5936 = vmatmul.mubr.msk.bf16.vlgmr.msra.gmra.mrb[0].mxu0 %vm657_vm3, %v6370_v62  ;;  %v6426_v62 = vld [vmem:[%s6641_s7 + $0x4c] sm:$0xf] }
  0xbf   : > { %5782 = vmatmul.mubr.msk.bf16.gmra.mrb[16].mxu1 %vm657_vm3, %v5078_v58  ;;  %5968 = vmatpush3.bf16.msra.mxu0 %v4065_v54  ;;  %v1258_v57 = vrot.slane %v6426_v62, 5  ;;  %v7322_v58 = vsel %vm6893_vm7, %v1239_v25, %v1240_v28  ;;  %v5107_v54 = vrot.slane %v1169_v31, 9  ;;  %v1261_v28 = vrot.slane %v6428_v40, 5 }
  0xc0   : > { %5785 = vmatprep.mubr.msk.bf16.mxu1 %vm657_vm3, %v5079_v61  ;;  %5939 = vmatprep.mubr.msk.bf16.mxu0 %vm657_vm3, %v6372_v11  ;;  %v6376_v61 = vld [vmem:[%s6641_s7 + $0x48] sm:$0xff]   ;;  %v6427_v11 = vld [vmem:[%s6641_s7 + $0x58] sm:$0xf]  ;;  %v1272_v62 = vrot.slane %v6430_v15, 5  ;;  %v5433_v15 = vld [vmem:[%s6641_s7 + $0x34] sm:$0xf] }
  0xc1   : > { %6302 = vmatprep.subr.msk.bf16.mxu0 %vm706_vm0, %v7272_v26  ;;  %v1265_v16 = vrot.slane %v6427_v11, 5  ;;  %v1260_v31 = vrot.slane %v1258_v57, 4  ;;  %v7352_v47 = vsel %vm6893_vm7, %v5107_v54, %v1258_v57  ;;  %v5428_v57 = vld [vmem:[%s6641_s7 + $0x20] sm:$0x1]  ;;  %v5432_v54 = vld [vmem:[%s6641_s7 + $0x30] sm:$0xf] }
  0xc2   : > { %v5109_v11 = vrot.slane %v1171_v50, 9  ;;  %v3634_v50 = vshll.u32 %v5432_v54, 16  ;;  %v3602_v25 = vshll.u32 %v5428_v57, 16  ;;  %v3640_v36 = vshll.u32 %v5433_v15, 16 }
  0xc3   : > { %v7363_v60 = vsel %vm6893_vm7, %v5108_v41, %v1265_v16  ;;  %v7379_v41 = vsel %vm6893_vm7, %v1260_v31, %v1261_v28  ;;  %v1274_v31 = vrot.slane %v1272_v62, 4  ;;  %v3631_v28 = vshrl.u32 %v5432_v54, 16 }
  0xc4   : > { %v7421_v35 = vrot.slane %v3640_v36, 5 }
  0xc6   : > { %5940 = vmatmul.mubr.msk.bf16.gmra.mrb[4].mxu0 %vm657_vm3, %v6374_v37  ;;  %v1267_v37 = vrot.slane %v1265_v16, 4  ;;  %v6431_v16 = vld [vmem:[%s6641_s7 + $0x68] sm:$0x1] }
  0xc7   : > { %5786 = vmatmul.mubr.msk.bf16.gmra.mrb[20].mxu1 %vm657_vm3, %v5080_v6  ;;  %5943 = vmatprep.mubr.msk.bf16.mxu0 %vm657_vm3, %v6376_v61  ;;  %v3588_v6 = vrot.slane %v3586_v8, 5  ;;  %v6378_v61 = vld [vmem:[%s6641_s7 + $0x54] sm:$0xff]   ;;  %v1275_v40 = vrot.slane %v6431_v16, 5  ;;  %v3616_v8 = vshll.u32 %v5430_v39, 16  ;;  %v3599_v16 = vor.u32 %v3598_v12, %v7373_v7 }
  0xc8   : > { %5789 = vmatprep.mubr.msk.bf16.mxu1 %vm657_vm3, %v5081_v9  ;;  %v3607_v9 = vshrl.u32 %v5429_v24, 16  ;;  %v7388_v44 = vsel %vm6893_vm7, %v1267_v37, %v1268_v55  ;;  %v1282_v24 = vrot.slane %v6433_v17, 5  ;;  %v3644_v39 = vshrl.u32 %v5433_v15, 16 }
  0xc9   : > { %v3589_v10 = vor.u32 %v3588_v6, %v3585_v43  ;;  %v7394_v37 = vrot.slane %v3616_v8, 5  ;;  %v3622_v55 = vrot.slane %v3620_v18, 4  ;;  %v8646_v43 = vcombine.low %v6998_v52, %v7009_v46  ;;  %v6434_v8 = vld [vmem:[%s6641_s7 + $0x7c] sm:$0xf]  ;;  %v7430_v18 = vld [vmem:[%s6641_s7 + $0x38] sm:$0x1] }
  0xca   : > { %v3609_v38 = vrot.slane %v3607_v9, 4  ;;  %v7403_v17 = vsel %vm6893_vm7, %v5109_v11, %v1272_v62  ;;  %v7407_v57 = vsel %vm6893_vm7, %v1274_v31, %v1275_v40  ;;  %v3633_v6 = vrot.slane %v3631_v28, 4  ;;  %8648 = vst [vmem:[#allocation9_spill] sm:$0xff] %v7430_v18 }
  0xcb   : > { %v3636_v12 = vrot.slane %v3634_v50, 5  ;;  %v8647_v52 = vcombine.low %v7030_v33, %v7035_v56  ;;  %v3590_v46 = vrot.slane %v3589_v10, 4  ;;  %v3600_v54 = vrot.slane %v3599_v16, 4  ;;  %v6382_v33 = vld [vmem:[%s6641_s7 + $0x6c] sm:$0xff]   ;;  %v1174_v16 = vld [vmem:[%s6641_s7 + $0x84] sm:$0xe] }
  0xcc   : > { %v3626_v62 = vshll.u32 %v5431_v20, 16  ;;  %v7415_v11 = vsel %vm6893_vm7, %v5110_v5, %v1279_v30  ;;  %v7419_v40 = vsel %vm6893_vm7, %v1281_v48, %v1282_v24  ;;  %v3646_v9 = vrot.slane %v3644_v39, 4  ;;  %v6383_v48 = vld [vmem:[%s6641_s7 + $0x78] sm:$0xff]  }
  0xcd   : > { %v3613_v10 = vor.u32 %v3612_v27, %v3609_v38  ;;  %v3623_v20 = vor.u32 %v3622_v55, %v7394_v37  ;;  %v1286_v30 = vrot.slane %v6434_v8, 5  ;;  %v3637_v38 = vor.u32 %v3636_v12, %v3633_v6  ;;  %v5435_v5 = vld [vmem:[%s6641_s7 + $0x3c] sm:$0xf] }
  0xce   : > { %5944 = vmatmul.mubr.msk.bf16.gmra.mrb[8].mxu0 %vm657_vm3, %v6378_v61  ;;  %v3604_v61 = vrot.slane %v3602_v25, 5  ;;  %v1173_v25 = vld [vmem:[%s6641_s7 + $0x78] sm:$0xe]  ;;  %v7446_v50 = vrot.slane %v3626_v62, 5  ;;  %v3647_v39 = vor.u32 %v3646_v9, %v7421_v35  ;;  %v3650_v55 = vshll.u32 %v7430_v18, 16 }
  0xcf   : > { %5790 = vmatmul.mubr.msk.bf16.gmra.mrb[24].mxu1 %vm657_vm3, %v8646_v43  ;;  %5947 = vmatprep.mubr.msk.bf16.mxu0 %vm657_vm3, %v6380_v21  ;;  %v3595_v21 = vsel %vm6667_vm4, %v3590_v46, %v7373_v7  ;;  %v5111_v24 = vrot.slane %v1173_v25, 9  ;;  %v6435_v43 = vld [vmem:[%s6641_s7 + $0x88] sm:$0xf]  ;;  %v7454_v7 = vld [vmem:[%s6641_s7 + $0x40] sm:$0xf]  ;;  %v3614_v12 = vrot.slane %v3613_v10, 4  ;;  %v8650_v62 = vcombine.low %v7050_v14, %v7059_v42 }
  0xd0   : > { %5793 = vmatprep.mubr.msk.bf16.mxu1 %vm657_vm3, %v8647_v52  ;;  %v3605_v31 = vsel %vm6667_vm4, %v3600_v54, %v3604_v61  ;;  %v1293_v6 = vrot.slane %v6435_v43, 5  ;;  %8649 = vst [vmem:[#allocation10_spill] sm:$0xff] %v7454_v7  ;;  %v3624_v52 = vrot.slane %v3623_v20, 4  ;;  %v1288_v46 = vrot.slane %v1286_v30, 4  ;;  %v6436_v54 = vld [vmem:[%s6641_s7 + $0x80] sm:$0x1] }
  0xd1   : > { %v1289_v61 = vrot.slane %v6436_v54, 5  ;;  %v3638_v9 = vrot.slane %v3637_v38, 4  ;;  %v5112_v25 = vrot.slane %v1174_v16, 9  ;;  %v3655_v8 = vshrl.u32 %v5435_v5, 16  ;;  %v6384_v10 = vld [vmem:[%s6641_s7 + $0x84] sm:$0xff]  }
  0xd2   : > { %v3658_v43 = vshll.u32 %v5435_v5, 16  ;;  %v7468_v20 = vcombine.low %v3595_v21, %v3605_v31  ;;  %v7472_v14 = vsel %vm706_vm0, %v7272_v26, 0  ;;  %v3668_v38 = vshrl.u32 %v7454_v7, 16  ;;  %v6385_v21 = vld [vmem:[%s6641_s7 + $0x90] sm:$0xff]   ;;  %v6441_v18 = vld [vmem:[%s6641_s7 + $0xa0] sm:$0xf] }
  0xd3   : > { %v3648_v16 = vrot.slane %v3647_v39, 4  ;;  %v3652_v5 = vrot.slane %v3650_v55, 5  ;;  %v1295_v54 = vrot.slane %v1293_v6, 4  ;;  %v3619_v31 = vsel %vm6667_vm4, %v3614_v12, %v7394_v37 }
  0xd4   : > { %v3629_v26 = vsel %vm6667_vm4, %v3624_v52, %v7446_v50  ;;  %v7487_v39 = vsel %vm6893_vm7, %v5111_v24, %v1286_v30  ;;  %v7491_v55 = vsel %vm6893_vm7, %v1288_v46, %v1289_v61  ;;  %v3643_v37 = vsel %vm6667_vm4, %v3638_v9, %v7421_v35  ;;  %v5441_v30 = vld [vmem:[%s6641_s7 + $0x54] sm:$0xf]  ;;  %v7508_v24 = vld [vmem:[%s6641_s7 + $0x58] sm:$0xf]  ;;  %v7513_v61 = vld [vmem:[%s6641_s7 + $0x90] sm:$0xe] }
  0xd5   : > { %v7504_v12 = vsel %vm6893_vm7, %v5112_v25, %v1293_v6  ;;  %v3657_v50 = vrot.slane %v3655_v8, 4  ;;  %v3660_v52 = vrot.slane %v3658_v43, 5  ;;  %v3670_v46 = vrot.slane %v3668_v38, 4 }
  0xd6   : > { %5948 = vmatmul.mubr.msk.bf16.gmra.mrb[12].mxu0 %vm657_vm3, %v6382_v33  ;;  %v8651_v33 = vcombine.low %v7257_v0, %v7276_v23  ;;  %v6437_v0 = vld [vmem:[%s6641_s7 + $0x8c] sm:$0x1]  ;;  %v3653_v36 = vsel %vm6667_vm4, %v3648_v16, %v3652_v5  ;;  %v3703_v25 = vshrl.u32 %v5441_v30, 16  ;;  %v3706_v8 = vshll.u32 %v5441_v30, 16 }
  0xd7   : > { %5794 = vmatmul.mubr.msk.bf16.gmra.mrb[28].mxu1 %vm657_vm3, %v8650_v62  ;;  %5951 = vmatprep.mubr.msk.bf16.mxu0 %vm657_vm3, %v6383_v48  ;;  %v3664_v48 = vshll.u32 %v7454_v7, 16  ;;  %v1296_v23 = vrot.slane %v6437_v0, 5  ;;  %v5438_v62 = vld [vmem:[%s6641_s7 + $0x48] sm:$0xf]  ;;  %v7497_v0 = vld [vmem:[%s6641_s7 + $0x4c] sm:$0xf]  ;;  %v8653_v38 = vcombine.low %v7261_v29, %v7265_v53  ;;  %v7531_v16 = vcombine.low %v3619_v31, %v3629_v26 }
  0xd8   : > { %5799 = vmatprep.mubr.msk.bf16.mxu1 %vm657_vm3, %v8651_v33  ;;  %v7494_v33 = vld [vmem:[%s6641_s7 + $0x44] sm:$0x1]  ;;  %v3679_v27 = vshrl.u32 %v5438_v62, 16  ;;  %v3682_v15 = vshll.u32 %v5438_v62, 16  ;;  %v3688_v6 = vshll.u32 %v7497_v0, 16  ;;  %v3692_v9 = vshrl.u32 %v7497_v0, 16 }
  0xd9   : > { %8652 = vst [vmem:[#allocation11_spill] sm:$0xff] %v7494_v33  ;;  %v7510_v28 = vrot.slane %v3664_v48, 5  ;;  %v7519_v35 = vsel %vm6893_vm7, %v1295_v54, %v1296_v23  ;;  %v3712_v43 = vshll.u32 %v7508_v24, 16  ;;  %v3716_v48 = vshrl.u32 %v7508_v24, 16  ;;  %v5444_v31 = vld [vmem:[%s6641_s7 + $0x60] sm:$0xf] }
  0xda   : > { %v3674_v5 = vshll.u32 %v7494_v33, 16  ;;  %v5113_v54 = vrot.slane %v7513_v61, 9  ;;  %v8654_v23 = vcombine.low %v7302_v34, %v7318_v4  ;;  %v7542_v29 = vcombine.low %v3643_v37, %v3653_v36  ;;  %v6386_v26 = vld [vmem:[%s6641_s7 + $0x9c] sm:$0xff]   ;;  %v6387_v30 = vld [vmem:[%s6641_s7 + $0xa8] sm:$0xff]  }
  0xdb   : > { %v3661_v53 = vor.u32 %v3660_v52, %v3657_v50  ;;  %v3681_v62 = vrot.slane %v3679_v27, 4  ;;  %v7553_v34 = vrot.slane %v3688_v6, 5  ;;  %v3694_v4 = vrot.slane %v3692_v9, 4  ;;  %v6438_v36 = vld [vmem:[%s8621_s1 + $0x8] sm:$0x3] }
  0xdc   : > { %v3705_v27 = vrot.slane %v3703_v25, 4  ;;  %v3708_v37 = vrot.slane %v3706_v8, 5  ;;  %v7562_v50 = vrot.slane %v3712_v43, 5  ;;  %v3718_v52 = vrot.slane %v3716_v48, 4  ;;  %v6439_v6 = vld [vmem:[%s6641_s7 + $0x94] sm:$0xf] }
  0xdd   : > { %v7568_v9 = vld [vmem:[%s6641_s7 + $0x64] sm:$0xf]  ;;  %v3727_v61 = vshrl.u32 %v5444_v31, 16  ;;  %v7570_v22 = vrot.slane %v3661_v53, 4  ;;  %v1307_v25 = vrot.slane %v6441_v18, 5  ;;  %v3695_v43 = vor.u32 %v3694_v4, %v7553_v34 }
  0xde   : > { %5952 = vmatmul.mubr.msk.bf16.gmra.mrb[16].mxu0 %vm657_vm3, %v6384_v10  ;;  %8655 = vst [vmem:[#allocation12_spill] sm:$0xff] %v7568_v9  ;;  %v3730_v10 = vshll.u32 %v5444_v31, 16  ;;  %v3709_v31 = vor.u32 %v3708_v37, %v3705_v27  ;;  %v3719_v53 = vor.u32 %v3718_v52, %v7562_v50  ;;  %v8656_v18 = vcombine.low %v7309_v19, %v7322_v58  ;;  %v6388_v37 = vld [vmem:[%s6641_s7 + $0xb4] sm:$0xff]  }
  0xdf   : > { %5800 = vmatmul.mubr.msk.bf16.vlgmr.msra.gmra.mrb[0].mxu1 %vm657_vm3, %v8653_v38  ;;  %5955 = vmatprep.mubr.msk.bf16.mxu0 %vm657_vm3, %v6385_v21  ;;  %v3684_v21 = vrot.slane %v3682_v15, 5  ;;  %v7551_v38 = vld [vmem:[%s6641_s7 + $0x50] sm:$0x1]  ;;  %v7560_v15 = vld [vmem:[%s6641_s7 + $0x5c] sm:$0x1]  ;;  %v8657_v27 = vcombine.low %v7327_v2, %v7331_v1  ;;  %v1309_v52 = vrot.slane %v1307_v25, 4 }
  0xe0   : > { %5832 = vmatpush3.bf16.msra.mxu1 %v7298_v49  ;;  %5803 = vmatprep.mubr.msk.bf16.mxu1 %vm657_vm3, %v8654_v23  ;;  %v3671_v49 = vor.u32 %v3670_v46, %v7510_v28  ;;  %v7564_v46 = vrot.slane %v3674_v5, 5  ;;  %v1300_v23 = vrot.slane %v6439_v6, 5  ;;  %v3698_v48 = vshll.u32 %v7551_v38, 16  ;;  %v1176_v5 = vld [vmem:[%s6641_s7 + $0x9c] sm:$0xe] }
  0xe1   : > { %6298 = vmatprep.subr.msk.bf16.mxu1 %vm706_vm0, %v6438_v36  ;;  %v6440_v36 = vld [vmem:[%s6641_s7 + $0x98] sm:$0x1]  ;;  %v3685_v7 = vor.u32 %v3684_v21, %v3681_v62  ;;  %v3722_v6 = vshll.u32 %v7560_v15, 16  ;;  %v3740_v62 = vshrl.u32 %v7568_v9, 16  ;;  %v3732_v4 = vrot.slane %v3730_v10, 5 }
  0xe2   : > { %v1303_v33 = vrot.slane %v6440_v36, 5  ;;  %v3672_v8 = vrot.slane %v3671_v49, 4  ;;  %v3736_v36 = vshll.u32 %v7568_v9, 16  ;;  %v7589_v21 = vsel %vm6893_vm7, %v5113_v54, %v1300_v23  ;;  %v7600_v2 = vld [vmem:[%s6641_s7 + $0x68] sm:$0x1] }
  0xe3   : > { %v3729_v49 = vrot.slane %v3727_v61, 4  ;;  %v3686_v19 = vrot.slane %v3685_v7, 4  ;;  %v5114_v58 = vrot.slane %v1176_v5, 9  ;;  %v3696_v3 = vrot.slane %v3695_v43, 4  ;;  %8658 = vst [vmem:[#allocation13_spill] sm:$0xff] %v7600_v2  ;;  %v6389_v5 = vld [vmem:[%s6641_s7 + $0xc0] sm:$0xff]  }
  0xe4   : > { %v3700_v54 = vrot.slane %v3698_v48, 5  ;;  %v3724_v63 = vrot.slane %v3722_v6, 5  ;;  %v1314_v61 = vrot.slane %v7035_v56, 5  ;;  %v3710_v10 = vrot.slane %v3709_v31, 4  ;;  %v1178_v31 = vld [vmem:[%s6641_s7 + $0xb4] sm:$0xe] }
  0xe5   : > { %v3720_v51 = vrot.slane %v3719_v53, 4  ;;  %v7602_v1 = vrot.slane %v3736_v36, 5  ;;  %v3742_v7 = vrot.slane %v3740_v62, 4  ;;  %v3667_v43 = vsel %vm6667_vm4, %v7570_v22, %v7510_v28  ;;  %v6443_v62 = vld [vmem:[%s6641_s7 + $0xb0] sm:$0x1] }
  0xe6   : > { %5956 = vmatmul.mubr.msk.bf16.gmra.mrb[20].mxu0 %vm657_vm3, %v6386_v26  ;;  %v1302_v26 = vrot.slane %v1300_v23, 4  ;;  %v1177_v23 = vld [vmem:[%s6641_s7 + $0xa8] sm:$0xe]  ;;  %v3677_v48 = vsel %vm6667_vm4, %v3672_v8, %v7564_v46  ;;  %v3733_v6 = vor.u32 %v3732_v4, %v3729_v49  ;;  %v3691_v53 = vsel %vm6667_vm4, %v3686_v19, %v7553_v34  ;;  %v5447_v46 = vld [vmem:[%s6641_s7 + $0x6c] sm:$0xf] }
  0xe7   : > { %5804 = vmatmul.mubr.msk.bf16.gmra.mrb[4].mxu1 %vm657_vm3, %v8656_v18  ;;  %5959 = vmatprep.mubr.msk.bf16.mxu0 %vm657_vm3, %v6387_v30  ;;  %v6442_v18 = vld [vmem:[%s6641_s7 + $0xa4] sm:$0x1]  ;;  %v7622_v36 = vsel %vm6893_vm7, %v5114_v58, %v1307_v25  ;;  %v5115_v28 = vrot.slane %v1177_v23, 9  ;;  %v1316_v8 = vrot.slane %v1314_v61, 4  ;;  %v3746_v49 = vshll.u32 %v7600_v2, 16 }
  0xe8   : > { %5807 = vmatprep.mubr.msk.bf16.mxu1 %vm657_vm3, %v8657_v27  ;;  %v1310_v30 = vrot.slane %v6442_v18, 5  ;;  %v7614_v56 = vsel %vm6893_vm7, %v1302_v26, %v1303_v33  ;;  %v3701_v33 = vsel %vm6667_vm4, %v3696_v3, %v3700_v54  ;;  %v1317_v26 = vrot.slane %v6443_v62, 5  ;;  %v5450_v18 = vld [vmem:[%s6641_s7 + $0x78] sm:$0xf]  ;;  %v7677_v54 = vld [vmem:[%s6641_s7 + $0xbc] sm:$0x1] }
  0xe9   : > { %v3715_v34 = vsel %vm6667_vm4, %v3710_v10, %v7562_v50  ;;  %v3725_v25 = vsel %vm6667_vm4, %v3720_v51, %v3724_v63  ;;  %v3743_v4 = vor.u32 %v3742_v7, %v7602_v1  ;;  %v5116_v27 = vrot.slane %v1178_v31, 9  ;;  %v7651_v51 = vld [vmem:[%s6641_s7 + $0x70] sm:$0xf]  ;;  %v7681_v10 = vld [vmem:[%s6641_s7 + $0x7c] sm:$0xf] }
  0xea   : > { %v7626_v22 = vsel %vm6893_vm7, %v1309_v52, %v1310_v30  ;;  %v8660_v3 = vcombine.low %v7344_v45, %v7348_v59  ;;  %v7647_v19 = vrot.slane %v3733_v6, 4  ;;  %v1321_v50 = vrot.slane %v7059_v42, 5  ;;  %8661 = vst [vmem:[#allocation15_spill] sm:$0xff] %v7651_v51  ;;  %8663 = vst [vmem:[#allocation16_spill] sm:$0xff] %v7681_v10  ;;  %v5453_v7 = vld [vmem:[%s6641_s7 + $0x84] sm:$0xf] }
  0xeb   : > { %8659 = vst [vmem:[#allocation14_spill] sm:$0xff] %v7626_v22  ;;  %v3751_v63 = vshrl.u32 %v5447_v46, 16  ;;  %v8662_v45 = vcombine.low %v7352_v47, %v7379_v41  ;;  %v7659_v58 = vcombine.low %v3691_v53, %v3701_v33  ;;  %v7665_v42 = vsel %vm6893_vm7, %v5115_v28, %v1314_v61  ;;  %v6390_v61 = vld [vmem:[%s6641_s7 + $0xcc] sm:$0xff]   ;;  %v7693_v31 = vld [vmem:[%s6641_s7 + $0x88] sm:$0xf] }
  0xec   : > { %v7668_v30 = vcombine.low %v3715_v34, %v3725_v25  ;;  %v7672_v47 = vsel %vm6893_vm7, %v1316_v8, %v1317_v26  ;;  %v7674_v41 = vrot.slane %v3746_v49, 5  ;;  %v3760_v6 = vshll.u32 %v7651_v51, 16  ;;  %8664 = vst [vmem:[#allocation17_spill] sm:$0xff] %v7693_v31  ;;  %v5456_v62 = vld [vmem:[%s6641_s7 + $0x90] sm:$0xf] }
  0xed   : > { %v7699_v28 = vrot.slane %v1321_v50, 4  ;;  %v7701_v33 = vrot.slane %v3751_v63, 4  ;;  %v3764_v8 = vshrl.u32 %v7651_v51, 16  ;;  %v3775_v26 = vshrl.u32 %v5450_v18, 16  ;;  %v7708_v25 = vld [vmem:[%s6641_s7 + $0x94] sm:$0xf] }
  0xee   : > { %5960 = vmatmul.mubr.msk.bf16.gmra.mrb[24].mxu0 %vm657_vm3, %v6388_v37  ;;  %v7645_v37 = vcombine.low %v3667_v43, %v3677_v48  ;;  %v7689_v43 = vsel %vm6893_vm7, %v5116_v27, %v1321_v50  ;;  %v3754_v48 = vshll.u32 %v5447_v46, 16  ;;  %v3778_v49 = vshll.u32 %v5450_v18, 16  ;;  %8665 = vst [vmem:[#allocation18_spill] sm:$0xff] %v7708_v25  ;;  %v7746_v2 = vld [vmem:[%s6641_s7 + $0x8c] sm:$0x1] }
  0xef   : > { %5808 = vmatmul.mubr.msk.bf16.gmra.mrb[8].mxu1 %vm657_vm3, %v8660_v3  ;;  %5963 = vmatprep.mubr.msk.bf16.mxu0 %vm657_vm3, %v6389_v5  ;;  %v7685_v5 = vrot.slane %v3743_v4, 4  ;;  %v3784_v46 = vshll.u32 %v7681_v10, 16  ;;  %v3788_v34 = vshrl.u32 %v7681_v10, 16  ;;  %v3799_v4 = vshrl.u32 %v5453_v7, 16 }
  0xf0   : > { %5811 = vmatprep.mubr.msk.bf16.mxu1 %vm657_vm3, %v8662_v45  ;;  %v3802_v27 = vshll.u32 %v5453_v7, 16  ;;  %v3808_v3 = vshll.u32 %v7693_v31, 16  ;;  %v3812_v50 = vshrl.u32 %v7693_v31, 16  ;;  %v7718_v45 = vld [vmem:[%s6641_s7 + $0x74] sm:$0x1]  ;;  %v3756_v18 = vrot.slane %v3754_v48, 5 }
  0xf1   : > { %v3823_v52 = vshrl.u32 %v5456_v62, 16  ;;  %v3826_v53 = vshll.u32 %v5456_v62, 16  ;;  %v8666_v7 = vcombine.low %v7363_v60, %v7388_v44  ;;  %v3766_v59 = vrot.slane %v3764_v8, 4  ;;  %v5459_v48 = vld [vmem:[%s6641_s7 + $0x9c] sm:$0xf] }
  0xf2   : > { %v3832_v63 = vshll.u32 %v7708_v25, 16  ;;  %v3836_v23 = vshrl.u32 %v7708_v25, 16  ;;  %v8667_v62 = vcombine.low %v7403_v17, %v7407_v57  ;;  %v7736_v44 = vld [vmem:[%s6641_s7 + $0x80] sm:$0x1]  ;;  %v3777_v60 = vrot.slane %v3775_v26, 4 }
  0xf3   : > { %8668 = vst [vmem:[#allocation19_spill] sm:$0xff] %v7736_v44  ;;  %v3801_v31 = vrot.slane %v3799_v4, 4  ;;  %v3804_v8 = vrot.slane %v3802_v27, 5  ;;  %v7740_v10 = vrot.slane %v3808_v3, 5  ;;  %v3814_v51 = vrot.slane %v3812_v50, 4 }
  0xf4   : > { %v7743_v25 = vld [vmem:[%s6641_s7 + $0xa0] sm:$0xf]  ;;  %v3825_v17 = vrot.slane %v3823_v52, 4  ;;  %v3828_v57 = vrot.slane %v3826_v53, 5  ;;  %v3850_v9 = vshll.u32 %v5459_v48, 16  ;;  %v3757_v26 = vor.u32 %v3756_v18, %v7701_v33 }
  0xf5   : > { %v3794_v27 = vshll.u32 %v7736_v44, 16  ;;  %v7755_v3 = vld [vmem:[%s6641_s7 + $0x98] sm:$0x1]  ;;  %v3856_v50 = vshll.u32 %v7743_v25, 16  ;;  %v3860_v52 = vshrl.u32 %v7743_v25, 16  ;;  %v3805_v22 = vor.u32 %v3804_v8, %v3801_v31 }
  0xf6   : > { %5964 = vmatmul.mubr.msk.bf16.gmra.mrb[28].mxu0 %vm657_vm3, %v6390_v61  ;;  %v7726_v61 = vrot.slane %v3760_v6, 5  ;;  %v3790_v6 = vrot.slane %v3788_v34, 4  ;;  %v3838_v34 = vrot.slane %v3836_v23, 4  ;;  %v3818_v33 = vshll.u32 %v7746_v2, 16 }
  0xf7   : > { %5812 = vmatmul.mubr.msk.bf16.gmra.mrb[12].mxu1 %vm657_vm3, %v8666_v7  ;;  %5969 = vmatprep.mubr.msk.bf16.mxu0 %vm657_vm3, %v7468_v20  ;;  %v3780_v7 = vrot.slane %v3778_v49, 5  ;;  %v7738_v20 = vrot.slane %v3784_v46, 5  ;;  %v3770_v49 = vshll.u32 %v7718_v45, 16  ;;  %v7750_v46 = vrot.slane %v3832_v63, 5 }
  0xf8   : > { %5815 = vmatprep.mubr.msk.bf16.mxu1 %vm657_vm3, %v8667_v62  ;;  %v3847_v62 = vshrl.u32 %v5459_v48, 16  ;;  %v3767_v4 = vor.u32 %v3766_v59, %v7726_v61  ;;  %v3815_v23 = vor.u32 %v3814_v51, %v7740_v10  ;;  %v3829_v59 = vor.u32 %v3828_v57, %v3825_v17  ;;  %v7788_v57 = vld [vmem:[%s6641_s7 + $0xa4] sm:$0x1] }
  0xf9   : > { %v3781_v53 = vor.u32 %v3780_v7, %v3777_v60  ;;  %v3791_v48 = vor.u32 %v3790_v6, %v7738_v20  ;;  %v3852_v18 = vrot.slane %v3850_v9, 5  ;;  %v8669_v44 = vcombine.low %v7415_v11, %v7419_v40 }
  0xfa   : > { %v3849_v63 = vrot.slane %v3847_v62, 4  ;;  %v8670_v31 = vrot.slane %v7677_v54, 5  ;;  %v3772_v51 = vrot.slane %v3770_v49, 5  ;;  %v3839_v60 = vor.u32 %v3838_v34, %v7750_v46  ;;  %v7791_v34 = vld [vmem:[%s6641_s7 + $0xac] sm:$0xf] }
  0xfb   : > { %v3842_v9 = vshll.u32 %v7755_v3, 16  ;;  %v8671_v11 = vcombine.low %v7487_v39, %v7491_v55  ;;  %v3758_v40 = vrot.slane %v3757_v26, 4  ;;  %v7784_v54 = vrot.slane %v3856_v50, 5 }
  0xfc   : > { %v3782_v7 = vrot.slane %v3781_v53, 4  ;;  %v3792_v6 = vrot.slane %v3791_v48, 4  ;;  %v3796_v8 = vrot.slane %v3794_v27, 5  ;;  %v3820_v17 = vrot.slane %v3818_v33, 5  ;;  %v7801_v48 = vld [vmem:[%s6641_s7 + $0xb0] sm:$0x1] }
  0xfd   : > { %v3806_v39 = vrot.slane %v3805_v22, 4  ;;  %v3816_v55 = vrot.slane %v3815_v23, 4  ;;  %v3830_v62 = vrot.slane %v3829_v59, 4  ;;  %v3853_v49 = vor.u32 %v3852_v18, %v3849_v63 }
  0xfe   : > { %5970 = vmatmul.mubr.msk.bf16.vlgmr.msra.gmra.mrb[0].mxu0 %vm657_vm3, %v7531_v16  ;;  %v7774_v16 = vsel %vm6893_vm7, %v7699_v28, %v8670_v31  ;;  %v3862_v28 = vrot.slane %v3860_v52, 4  ;;  %v3844_v26 = vrot.slane %v3842_v9, 5  ;;  %v3763_v52 = vsel %vm6667_vm4, %v3758_v40, %v7726_v61 }
  0xff   : > { %5816 = vmatmul.mubr.msk.bf16.gmra.mrb[16].mxu1 %vm657_vm3, %v8669_v44  ;;  %6002 = vmatpush3.bf16.msra.mxu0 %v7472_v14  ;;  %v3768_v14 = vrot.slane %v3767_v4, 4  ;;  %v5462_v44 = vld [vmem:[%s6641_s7 + $0xa8] sm:$0xf]  ;;  %v3866_v22 = vshll.u32 %v7788_v57, 16  ;;  %v3787_v33 = vsel %vm6667_vm4, %v3782_v7, %v7738_v20  ;;  %v3797_v23 = vsel %vm6667_vm4, %v3792_v6, %v3796_v8 }
 0x100   : > { %5819 = vmatprep.mubr.msk.bf16.mxu1 %vm657_vm3, %v8671_v11  ;;  %5973 = vmatprep.mubr.msk.bf16.mxu0 %vm657_vm3, %v7542_v29  ;;  %v3840_v29 = vrot.slane %v3839_v60, 4  ;;  %v3871_v4 = vshrl.u32 %v5462_v44, 16  ;;  %v3874_v50 = vshll.u32 %v5462_v44, 16  ;;  %v3863_v53 = vor.u32 %v3862_v28, %v7784_v54  ;;  %v5511_v11 = vld [vmem:[%s6641_s7 + $0x48] sm:$0xe] }
 0x101   : > { %v3773_v27 = vsel %vm6667_vm4, %v3768_v14, %v3772_v51  ;;  %v3880_v59 = vshll.u32 %v7791_v34, 16  ;;  %v3884_v61 = vshrl.u32 %v7791_v34, 16  ;;  %v3811_v63 = vsel %vm6667_vm4, %v3806_v39, %v7740_v10  ;;  %v7866_v39 = vld [vmem:[%s6641_s7 + $0xb8] sm:$0xf] }
 0x102   : > { %v3821_v18 = vsel %vm6667_vm4, %v3816_v55, %v3820_v17  ;;  %v3835_v20 = vsel %vm6667_vm4, %v3830_v62, %v7750_v46  ;;  %v3854_v31 = vrot.slane %v3853_v49, 4  ;;  %v8672_v51 = vcombine.low %v7504_v12, %v7519_v35 }
 0x103   : > { %v3873_v10 = vrot.slane %v3871_v4, 4  ;;  %v3876_v60 = vrot.slane %v3874_v50, 5  ;;  %v3890_v9 = vshll.u32 %v7801_v48, 16  ;;  %v8673_v46 = vcombine.low %v7589_v21, %v7614_v56  ;;  %v5465_v21 = vld [vmem:[%s6641_s7 + $0xb4] sm:$0xf] }
 0x104   : > { %v5132_v12 = vcombine.low %v7665_v42, %v7672_v47  ;;  %v8674_v35 = vsel %vm6667_vm4, %v7685_v5, %v7674_v41  ;;  %v3864_v14 = vrot.slane %v3863_v53, 4  ;;  %v3868_v28 = vrot.slane %v3866_v22, 5  ;;  %v5513_v4 = vld [vmem:[%s6641_s7 + $0x60] sm:$0xe]  ;;  %v5514_v53 = vld [vmem:[%s6641_s7 + $0x6c] sm:$0xe] }
 0x105   : > { %v5133_v56 = vcombine.low %v7689_v43, %v7774_v16  ;;  %v7849_v44 = vcombine.low %v3763_v52, %v3773_v27  ;;  %v7851_v42 = vrot.slane %v3880_v59, 5  ;;  %v3886_v47 = vrot.slane %v3884_v61, 4  ;;  %v8683_v16 = vld [vmem:[#allocation7_spill] sm:$0xff] }
 0x106   : > { %5974 = vmatmul.mubr.msk.bf16.gmra.mrb[4].mxu0 %vm657_vm3, %v7645_v37  ;;  %v3845_v37 = vsel %vm6667_vm4, %v3840_v29, %v3844_v26  ;;  %v7853_v41 = vcombine.low %v3787_v33, %v3797_v23  ;;  %v7855_v5 = vcombine.low %v3811_v63, %v3821_v18  ;;  %v3859_v6 = vsel %vm6667_vm4, %v3854_v31, %v7784_v54  ;;  %v8676_v23 = vld [vmem:[#allocation14_spill] sm:$0xff]  ;;  %v5468_v63 = vld [vmem:[%s6641_s7 + $0xc0] sm:$0xf]  ;;  %v8679_v31 = vld [vmem:[#allocation13_spill] sm:$0xff] }
 0x107   : > { %5820 = vmatmul.mubr.msk.bf16.gmra.mrb[20].mxu1 %vm657_vm3, %v8672_v51  ;;  %5977 = vmatprep.mubr.msk.bf16.mxu0 %vm657_vm3, %v7659_v58  ;;  %v8675_v58 = vsel %vm6667_vm4, %v7647_v19, %v7602_v1  ;;  %v7857_v7 = vcombine.low %v3835_v20, %v3845_v37  ;;  %v5527_v1 = vrot.slane %v5511_v11, 9  ;;  %v5512_v19 = vld [vmem:[%s6641_s7 + $0x54] sm:$0xe]  ;;  %v3877_v8 = vor.u32 %v3876_v60, %v3873_v10  ;;  %v8678_v18 = vld [vmem:[#allocation12_spill] sm:$0xff] }
 0x108   : > { %5823 = vmatprep.mubr.msk.bf16.mxu1 %vm657_vm3, %v8673_v46  ;;  %v5481_v40 = vcombine.low %v8675_v58, %v8674_v35  ;;  %v7863_v17 = vrot.slane %v3890_v9, 5  ;;  %v3895_v55 = vshrl.u32 %v5465_v21, 16  ;;  %v3869_v62 = vsel %vm6667_vm4, %v3864_v14, %v3868_v28  ;;  %v8680_v9 = vld [vmem:[#allocation15_spill] sm:$0xff]  ;;  %v7915_v35 = vld [vmem:[%s6641_s7 + $0xbc] sm:$0x1] }
 0x109   : > { %v3898_v49 = vshll.u32 %v5465_v21, 16  ;;  %v4354_v29 = vrot.slane %v7497_v0, 5  ;;  %v4357_v26 = vrot.slane %v7551_v38, 5  ;;  %v3887_v50 = vor.u32 %v3886_v47, %v7851_v42  ;;  %v7918_v58 = vld [vmem:[%s6641_s7 + $0xc4] sm:$0xf] }
 0x10a   : > { %v5528_v52 = vrot.slane %v5512_v19, 9  ;;  %v4361_v54 = vrot.slane %v7508_v24, 5  ;;  %v4364_v27 = vrot.slane %v7560_v15, 5  ;;  %v3904_v22 = vshll.u32 %v7866_v39, 16  ;;  %v5515_v19 = vld [vmem:[%s6641_s7 + $0x78] sm:$0xe] }
 0x10b   : > { %v3908_v33 = vshrl.u32 %v7866_v39, 16  ;;  %v7883_v0 = vsel %vm6893_vm7, %v5527_v1, %v4354_v29  ;;  %v4356_v38 = vrot.slane %v4354_v29, 4  ;;  %v8677_v59 = vcombine.low %v7622_v36, %v8676_v23  ;;  %v8681_v23 = vld [vmem:[#allocation16_spill] sm:$0xff] }
 0x10c   : > { %v7890_v24 = vcombine.low %v3859_v6, %v3869_v62  ;;  %v7894_v15 = vsel %vm6893_vm7, %v5528_v52, %v4361_v54  ;;  %v5529_v61 = vrot.slane %v5513_v4, 9  ;;  %v4368_v20 = vrot.slane %v8678_v18, 5  ;;  %v6391_v6 = vld [vmem:[%s6641_s7 + $0xc] sm:$0xff]  }
 0x10d   : > { %v7900_v36 = vsel %vm6893_vm7, %v4356_v38, %v4357_v26  ;;  %v4371_v51 = vrot.slane %v8679_v31, 5  ;;  %v5530_v37 = vrot.slane %v5514_v53, 9  ;;  %v4375_v11 = vrot.slane %v8680_v9, 5 }
 0x10e   : > { %5978 = vmatmul.mubr.msk.bf16.gmra.mrb[8].mxu0 %vm657_vm3, %v7668_v30  ;;  %v4363_v30 = vrot.slane %v4361_v54, 4  ;;  %v5544_v10 = vcombine.low %v7883_v0, %v7900_v36  ;;  %v4378_v46 = vrot.slane %v7718_v45, 5  ;;  %v7924_v14 = vsel %vm6893_vm7, %v5529_v61, %v4368_v20 }
 0x10f   : > { %5824 = vmatmul.mubr.msk.bf16.gmra.mrb[24].mxu1 %vm657_vm3, %v8677_v59  ;;  %5981 = vmatprep.mubr.msk.bf16.mxu0 %vm657_vm3, %v5481_v40  ;;  %v4370_v28 = vrot.slane %v4368_v20, 4  ;;  %v7926_v21 = vrot.slane %v3895_v55, 4  ;;  %v3919_v47 = vshrl.u32 %v5468_v63, 16  ;;  %v7930_v45 = vsel %vm6893_vm7, %v5530_v37, %v4375_v11  ;;  %v5242_v55 = vld [vmem:[%s6641_s7 + $0x78] sm:$0xf] }
 0x110   : > { %5827 = vmatprep.mubr.msk.bf16.mxu1 %vm657_vm3, %v5132_v12  ;;  %v7908_v60 = vsel %vm6893_vm7, %v4363_v30, %v4364_v27  ;;  %v7912_v12 = vrot.slane %v3877_v8, 4  ;;  %v4377_v1 = vrot.slane %v4375_v11, 4  ;;  %v7934_v8 = vrot.slane %v3887_v50, 4  ;;  %v8682_v59 = vld [vmem:[#allocation19_spill] sm:$0xff] }
 0x111   : > { %v5545_v40 = vcombine.low %v7894_v15, %v7908_v60  ;;  %v7936_v62 = vrot.slane %v3898_v49, 5  ;;  %v3922_v29 = vshll.u32 %v5468_v63, 16  ;;  %v7940_v26 = vsel %vm6893_vm7, %v4370_v28, %v4371_v51  ;;  %v8685_v28 = vld [vmem:[#allocation17_spill] sm:$0xff]  ;;  %v6454_v60 = vld [vmem:[%s6641_s7 + $0xa0] sm:$0xf] }
 0x112   : > { %v7943_v4 = vrot.slane %v3904_v22, 5  ;;  %v7945_v52 = vrot.slane %v3908_v33, 4  ;;  %v5546_v54 = vcombine.low %v7924_v14, %v7940_v26  ;;  %v7951_v27 = vsel %vm6893_vm7, %v4377_v1, %v4378_v46  ;;  %v5516_v33 = vld [vmem:[%s6641_s7 + $0x84] sm:$0xe]  ;;  %v6392_v1 = vld [vmem:[%s6641_s7 + $0x18] sm:$0xff]  }
 0x113   : > { %v3914_v49 = vshll.u32 %v7915_v35, 16  ;;  %v3928_v50 = vshll.u32 %v7918_v58, 16  ;;  %v5547_v53 = vcombine.low %v7930_v45, %v7951_v27  ;;  %v5531_v22 = vrot.slane %v5515_v19, 9  ;;  %v6458_v27 = vld [vmem:[%s6641_s7 + $0xac] sm:$0xf] }
 0x114   : > { %v3921_v38 = vrot.slane %v3919_v47, 4  ;;  %v4385_v30 = vrot.slane %v8682_v59, 5  ;;  %v2244_v61 = vshrl.u32 %v5242_v55, 16  ;;  %v3924_v63 = vrot.slane %v3922_v29, 5  ;;  %v5471_v29 = vld [vmem:[%s6641_s7 + $0xcc] sm:$0xf] }
 0x115   : > { %v3932_v18 = vshrl.u32 %v7918_v58, 16  ;;  %v2247_v43 = vshll.u32 %v5242_v55, 16  ;;  %v5532_v37 = vrot.slane %v5516_v33, 9  ;;  %v3883_v9 = vsel %vm6667_vm4, %v7912_v12, %v7851_v42  ;;  %v7994_v55 = vld [vmem:[%s6641_s7 + $0xd0] sm:$0xf] }
 0x116   : > { %5982 = vmatmul.mubr.msk.bf16.gmra.mrb[12].mxu0 %vm657_vm3, %v7849_v44  ;;  %v4382_v44 = vrot.slane %v8681_v23, 5  ;;  %v2246_v51 = vrot.slane %v2244_v61, 4  ;;  %v3901_v11 = vor.u32 %v7936_v62, %v7926_v21  ;;  %v4389_v47 = vrot.slane %v8685_v28, 5  ;;  %v6393_v21 = vld [vmem:[%s6641_s7 + $0x24] sm:$0xff]  }
 0x117   : > { %5828 = vmatmul.mubr.msk.bf16.gmra.mrb[28].mxu1 %vm657_vm3, %v5133_v56  ;;  %5985 = vmatprep.mubr.msk.bf16.mxu0 %vm657_vm3, %v7853_v41  ;;  %v8684_v56 = vld [vmem:[#allocation8_spill] sm:$0xff]  ;;  %v2249_v46 = vrot.slane %v2247_v43, 5  ;;  %v3893_v19 = vsel %vm6667_vm4, %v7934_v8, %v7863_v17  ;;  %v4392_v12 = vrot.slane %v7746_v2, 5  ;;  %v8002_v62 = vrot.slane %v3928_v50, 5  ;;  %v5517_v8 = vld [vmem:[%s6641_s7 + $0x90] sm:$0xe] }
 0x118   : > { %5833 = vmatprep.mubr.msk.bf16.mxu1 %vm657_vm3, %v6391_v6  ;;  %v2266_v41 = vsel %vm6667_vm4, %v8684_v56, %v8683_v16  ;;  %v7976_v20 = vsel %vm6893_vm7, %v5531_v22, %v4382_v44  ;;  %v4384_v31 = vrot.slane %v4382_v44, 4  ;;  %v3911_v6 = vor.u32 %v7945_v52, %v7943_v4  ;;  %v8008_v52 = vld [vmem:[%s6641_s7 + $0xc8] sm:$0x1] }
 0x119   : > { %v3934_v22 = vrot.slane %v3932_v18, 4  ;;  %v2250_v17 = vor.u32 %v2249_v46, %v2246_v51  ;;  %v3916_v23 = vrot.slane %v3914_v49, 5  ;;  %v3925_v44 = vor.u32 %v3924_v63, %v3921_v38  ;;  %v8687_v16 = vld [vmem:[#allocation5_spill] sm:$0xff]  ;;  %v8688_v51 = vld [vmem:[#allocation6_spill] sm:$0xff] }
 0x11a   : > { %v7998_v42 = vsel %vm6893_vm7, %v4384_v31, %v4385_v30  ;;  %v8012_v59 = vsel %vm6893_vm7, %v5532_v37, %v4389_v47  ;;  %v4391_v30 = vrot.slane %v4389_v47, 4  ;;  %v3943_v2 = vshrl.u32 %v5471_v29, 16 }
 0x11b   : > { %v5548_v33 = vcombine.low %v7976_v20, %v7998_v42  ;;  %v3946_v50 = vshll.u32 %v5471_v29, 16  ;;  %v3952_v61 = vshll.u32 %v7994_v55, 16  ;;  %v2251_v18 = vrot.slane %v2250_v17, 4  ;;  %v6394_v29 = vld [vmem:[%s6641_s7 + $0x30] sm:$0xff]  }
 0x11c   : > { %v3956_v49 = vshrl.u32 %v7994_v55, 16  ;;  %v8023_v38 = vsel %vm6893_vm7, %v4391_v30, %v4392_v12  ;;  %v5533_v63 = vrot.slane %v5517_v8, 9  ;;  %v3935_v56 = vor.u32 %v3934_v22, %v8002_v62 }
 0x11d   : > { %v3938_v31 = vshll.u32 %v8008_v52, 16  ;;  %v5549_v37 = vcombine.low %v8012_v59, %v8023_v38  ;;  %v5487_v46 = vcombine.low %v3883_v9, %v3893_v19  ;;  %v3902_v28 = vrot.slane %v3901_v11, 4  ;;  %v5518_v11 = vld [vmem:[%s6641_s7 + $0x9c] sm:$0xe] }
 0x11e   : > { %5986 = vmatmul.mubr.msk.bf16.gmra.mrb[16].mxu0 %vm657_vm3, %v7855_v5  ;;  %v8686_v5 = vld [vmem:[#allocation18_spill] sm:$0xff]  ;;  %v3912_v47 = vrot.slane %v3911_v6, 4  ;;  %v3926_v12 = vrot.slane %v3925_v44, 4  ;;  %v4399_v8 = vrot.slane %v7755_v3, 5  ;;  %v3945_v30 = vrot.slane %v3943_v2, 4  ;;  %v6395_v19 = vld [vmem:[%s6641_s7 + $0x3c] sm:$0xff]  }
 0x11f   : > { %5834 = vmatmul.mubr.msk.bf16.vlgmr.msra.gmra.mrb[0].mxu1 %vm657_vm3, %v6392_v1  ;;  %5989 = vmatprep.mubr.msk.bf16.mxu0 %vm657_vm3, %v7857_v7  ;;  %v4396_v43 = vrot.slane %v8686_v5, 5  ;;  %v2256_v7 = vsel %vm6667_vm4, %v2251_v18, %v8688_v51  ;;  %v3948_v18 = vrot.slane %v3946_v50, 5  ;;  %v8046_v5 = vrot.slane %v3952_v61, 5 }
 0x120   : > { %6036 = vmatpush3.bf16.msra.mxu1 %v8687_v16  ;;  %5837 = vmatprep.mubr.msk.bf16.mxu1 %vm657_vm3, %v6393_v21  ;;  %v8035_v1 = vcombine.low %v2256_v7, %v2266_v41  ;;  %v8039_v21 = vld [vmem:[%s6641_s7 + $0xd4] sm:$0x1]  ;;  %v3958_v9 = vrot.slane %v3956_v49, 4  ;;  %v3936_v41 = vrot.slane %v3935_v56, 4  ;;  %v3940_v6 = vrot.slane %v3938_v31, 5 }
 0x121   : > { %v8043_v22 = vsel %vm6893_vm7, %v5533_v63, %v4396_v43  ;;  %v4398_v17 = vrot.slane %v4396_v43, 4  ;;  %v3907_v63 = vsel %vm6667_vm4, %v3902_v28, %v7943_v4  ;;  %v3917_v2 = vsel %vm6667_vm4, %v3912_v47, %v3916_v23  ;;  %v6445_v16 = vld [vmem:[%s6641_s7 + $0x1c] sm:$0xf]  ;;  %v5519_v28 = vld [vmem:[%s6641_s7 + $0xa8] sm:$0xe] }
 0x122   : > { %v3962_v50 = vshll.u32 %v8039_v21, 16  ;;  %v5534_v61 = vrot.slane %v5518_v11, 9  ;;  %v4403_v49 = vrot.slane %v7743_v25, 5  ;;  %v3931_v4 = vsel %vm6667_vm4, %v3926_v12, %v8002_v62  ;;  %v5507_v62 = vld [vmem:[%s6641_s7 + $0x18] sm:$0xe]  ;;  %v6396_v47 = vld [vmem:[%s6641_s7 + $0x48] sm:$0xff]  }
 0x123   : > { %v8052_v44 = vsel %vm6893_vm7, %v4398_v17, %v4399_v8  ;;  %v3959_v43 = vor.u32 %v3958_v9, %v8046_v5  ;;  %v4406_v23 = vrot.slane %v7788_v57, 5  ;;  %v3941_v25 = vsel %vm6667_vm4, %v3936_v41, %v3940_v6  ;;  %v6446_v11 = vld [vmem:[%s6641_s7 + $0x20] sm:$0x1] }
 0x124   : > { %v5550_v3 = vcombine.low %v8043_v22, %v8052_v44  ;;  %v4326_v56 = vrot.slane %v6445_v16, 5  ;;  %v8078_v31 = vsel %vm6893_vm7, %v5534_v61, %v4403_v49  ;;  %v4405_v51 = vrot.slane %v4403_v49, 4  ;;  %v5520_v49 = vld [vmem:[%s6641_s7 + $0xb4] sm:$0xe] }
 0x125   : > { %v5488_v7 = vcombine.low %v3907_v63, %v3917_v2  ;;  %v3960_v17 = vrot.slane %v3959_v43, 4  ;;  %v5535_v41 = vrot.slane %v5519_v28, 9  ;;  %v4410_v6 = vrot.slane %v7791_v34, 5  ;;  %v5508_v2 = vld [vmem:[%s6641_s7 + $0x24] sm:$0xe] }
 0x126   : > { %5990 = vmatmul.mubr.msk.bf16.gmra.mrb[20].mxu0 %vm657_vm3, %v7890_v24  ;;  %v3949_v24 = vor.u32 %v3948_v18, %v3945_v30  ;;  %v8083_v57 = vsel %vm6893_vm7, %v4405_v51, %v4406_v23  ;;  %v6397_v30 = vld [vmem:[%s6641_s7 + $0x54] sm:$0xff]   ;;  %v5523_v18 = vrot.slane %v5507_v62, 9  ;;  %v4328_v9 = vrot.slane %v4326_v56, 4  ;;  %v6449_v28 = vld [vmem:[%s6641_s7 + $0x2c] sm:$0x1] }
 0x127   : > { %5838 = vmatmul.mubr.msk.bf16.gmra.mrb[4].mxu1 %vm657_vm3, %v6394_v29  ;;  %5993 = vmatprep.mubr.msk.bf16.mxu0 %vm657_vm3, %v5487_v46  ;;  %v3964_v46 = vrot.slane %v3962_v50, 5  ;;  %v5489_v29 = vcombine.low %v3931_v4, %v3941_v25  ;;  %v5551_v8 = vcombine.low %v8078_v31, %v8083_v57  ;;  %v4413_v63 = vrot.slane %v7801_v48, 5  ;;  %v6447_v50 = vld [vmem:[%s6641_s7 + $0x28] sm:$0xf]  ;;  %v5509_v25 = vld [vmem:[%s6641_s7 + $0x30] sm:$0xe] }
 0x128   : > { %5841 = vmatprep.mubr.msk.bf16.mxu1 %vm657_vm3, %v6395_v19  ;;  %v3950_v12 = vrot.slane %v3949_v24, 4  ;;  %v4329_v19 = vrot.slane %v6446_v11, 5  ;;  %v4333_v61 = vrot.slane %v6447_v50, 5  ;;  %v8106_v48 = vsel %vm6893_vm7, %v5535_v41, %v4410_v6  ;;  %v6399_v11 = vld [vmem:[%s6641_s7 + $0x6c] sm:$0xff]   ;;  %v8689_v41 = vld [vmem:[#allocation9_spill] sm:$0xff] }
 0x129   : > { %v3965_v34 = vsel %vm6667_vm4, %v3960_v17, %v3964_v46  ;;  %v4412_v24 = vrot.slane %v4410_v6, 4  ;;  %v4327_v43 = vsel %vm6893_vm7, %v5523_v18, %v4326_v56  ;;  %v5524_v51 = vrot.slane %v5508_v2, 9  ;;  %v5521_v50 = vld [vmem:[%s6641_s7 + $0xc0] sm:$0xe]  ;;  %v6463_v31 = vld [vmem:[%s6641_s7 + $0xc8] sm:$0x1] }
 0x12a   : > { %v3955_v4 = vsel %vm6667_vm4, %v3950_v12, %v8046_v5  ;;  %v4330_v23 = vsel %vm6893_vm7, %v4328_v9, %v4329_v19  ;;  %v6448_v5 = vld [vmem:[%s6641_s7 + $0x34] sm:$0xf]  ;;  %v6398_v12 = vld [vmem:[%s6641_s7 + $0x60] sm:$0xff]   ;;  %v5525_v18 = vrot.slane %v5509_v25, 9  ;;  %v4420_v9 = vrot.slane %v7915_v35, 5 }
 0x12b   : > { %v4340_v16 = vrot.slane %v6448_v5, 5  ;;  %v8117_v62 = vsel %vm6893_vm7, %v4412_v24, %v4413_v63  ;;  %v5490_v46 = vcombine.low %v3955_v4, %v3965_v34  ;;  %v5540_v17 = vcombine.low %v4327_v43, %v4330_v23  ;;  %v5510_v24 = vld [vmem:[%s6641_s7 + $0x3c] sm:$0xe] }
 0x12c   : > { %v5552_v56 = vcombine.low %v8106_v48, %v8117_v62  ;;  %v4343_v6 = vrot.slane %v8689_v41, 5  ;;  %v4334_v35 = vsel %vm6893_vm7, %v5524_v51, %v4333_v61  ;;  %v5537_v5 = vrot.slane %v5521_v50, 9 }
 0x12d   : > { %v4342_v19 = vrot.slane %v4340_v16, 4  ;;  %v4341_v23 = vsel %vm6893_vm7, %v5525_v18, %v4340_v16  ;;  %v4427_v51 = vrot.slane %v8008_v52, 5  ;;  %v2407_v57 = vshll.u32 %v6463_v31, 16 }
 0x12e   : > { %5994 = vmatmul.mubr.msk.bf16.gmra.mrb[24].mxu0 %vm657_vm3, %v5488_v7  ;;  %v5536_v7 = vrot.slane %v5520_v49, 9 }
 0x12f   : > { %5842 = vmatmul.mubr.msk.bf16.gmra.mrb[8].mxu1 %vm657_vm3, %v6396_v47  ;;  %5997 = vmatprep.mubr.msk.bf16.mxu0 %vm657_vm3, %v5489_v29  ;;  %v4336_v47 = vrot.slane %v6449_v28, 5  ;;  %v4417_v29 = vrot.slane %v7866_v39, 5  ;;  %v8690_v39 = vld [vmem:[#allocation10_spill] sm:$0xff]  ;;  %v4344_v25 = vsel %vm6893_vm7, %v4342_v19, %v4343_v6  ;;  %v5526_v28 = vrot.slane %v5510_v24, 9 }
 0x130   : > { %5845 = vmatprep.mubr.msk.bf16.mxu1 %vm657_vm3, %v6397_v30  ;;  %v4335_v30 = vrot.slane %v4333_v61, 4  ;;  %v4347_v49 = vrot.slane %v8690_v39, 5  ;;  %v4424_v61 = vrot.slane %v7918_v58, 5  ;;  %v6450_v39 = vld [vmem:[%s6641_s7 + $0x70] sm:$0xf]  ;;  %v4431_v24 = vrot.slane %v7994_v55, 5 }
 0x131   : > { %v8129_v63 = vsel %vm6893_vm7, %v5536_v7, %v4417_v29  ;;  %v4419_v2 = vrot.slane %v4417_v29, 4  ;;  %v5239_v7 = vld [vmem:[%s6641_s7 + $0x6c] sm:$0xf]  ;;  %v8691_v29 = vld [vmem:[#allocation11_spill] sm:$0xff] }
 0x132   : > { %v4337_v34 = vsel %vm6893_vm7, %v4335_v30, %v4336_v47  ;;  %v4349_v47 = vrot.slane %v4347_v49, 4  ;;  %v6400_v30 = vld [vmem:[%s6641_s7 + $0x78] sm:$0xff]   ;;  %v8160_v16 = vsel %vm6893_vm7, %v5537_v5, %v4424_v61  ;;  %v4426_v18 = vrot.slane %v4424_v61, 4 }
 0x133   : > { %v8136_v4 = vsel %vm6893_vm7, %v4419_v2, %v4420_v9  ;;  %v5542_v9 = vcombine.low %v4341_v23, %v4344_v25  ;;  %v2220_v19 = vshrl.u32 %v5239_v7, 16  ;;  %v2223_v41 = vshll.u32 %v5239_v7, 16 }
 0x134   : > { %v5553_v43 = vcombine.low %v8129_v63, %v8136_v4  ;;  %v8165_v58 = vsel %vm6893_vm7, %v4426_v18, %v4427_v51  ;;  %v4348_v6 = vsel %vm6893_vm7, %v5526_v28, %v4347_v49  ;;  %v4434_v49 = vrot.slane %v8039_v21, 5  ;;  %v6402_v51 = vld [vmem:[%s6641_s7 + $0x90] sm:$0xff]   ;;  %v6403_v21 = vld [vmem:[%s6641_s7 + $0x9c] sm:$0xff]  }
 0x135   : > { %v5554_v50 = vcombine.low %v8160_v16, %v8165_v58  ;;  %v2222_v23 = vrot.slane %v2220_v19, 4  ;;  %v2225_v25 = vrot.slane %v2223_v41, 5  ;;  %v4433_v7 = vrot.slane %v4431_v24, 4 }
 0x136   : > { %5998 = vmatmul.mubr.msk.bf16.gmra.mrb[28].mxu0 %vm657_vm3, %v5490_v46  ;;  %v5541_v46 = vcombine.low %v4334_v35, %v4337_v34  ;;  %v2229_v35 = vshll.u32 %v6450_v39, 16  ;;  %v2233_v34 = vshrl.u32 %v6450_v39, 16 }
 0x137   : > { %5846 = vmatmul.mubr.msk.bf16.gmra.mrb[12].mxu1 %vm657_vm3, %v6398_v12  ;;  %6003 = vmatprep.mubr.msk.bf16.mxu0 %vm657_vm3, %v5540_v17  ;;  %v4350_v12 = vrot.slane %v8691_v29, 5  ;;  %v5522_v17 = vld [vmem:[%s6641_s7 + $0xcc] sm:$0xe]  ;;  %v8187_v55 = vsel %vm6893_vm7, %v4433_v7, %v4434_v49 }
 0x138   : > { %5849 = vmatprep.mubr.msk.bf16.mxu1 %vm657_vm3, %v6399_v11  ;;  %v6401_v11 = vld [vmem:[%s6641_s7 + $0x84] sm:$0xff]   ;;  %v5538_v52 = vrot.slane %v5522_v17, 9  ;;  %v2235_v28 = vrot.slane %v2233_v34, 4  ;;  %v6451_v17 = vld [vmem:[%s6641_s7 + $0x74] sm:$0x1] }
 0x139   : > { %v4351_v2 = vsel %vm6893_vm7, %v4349_v47, %v4350_v12  ;;  %v5245_v47 = vld [vmem:[%s6641_s7 + $0x84] sm:$0xf]  ;;  %v2226_v12 = vor.u32 %v2225_v25, %v2222_v23  ;;  %v6405_v34 = vld [vmem:[%s6641_s7 + $0xb4] sm:$0xff]  }
 0x13a   : > { %v8182_v5 = vsel %vm6893_vm7, %v5538_v52, %v4431_v24  ;;  %v5543_v61 = vcombine.low %v4348_v6, %v4351_v2  ;;  %v2271_v18 = vshll.u32 %v5245_v47, 16  ;;  %v5248_v6 = vld [vmem:[%s6641_s7 + $0x90] sm:$0xf]  ;;  %v6404_v2 = vld [vmem:[%s6641_s7 + $0xa8] sm:$0xff]  }
 0x13b   : > { %v5555_v29 = vcombine.low %v8182_v5, %v8187_v55  ;;  %v2227_v52 = vrot.slane %v2226_v12, 4  ;;  %v2292_v23 = vshrl.u32 %v5248_v6, 16  ;;  %v2295_v25 = vshll.u32 %v5248_v6, 16 }
 0x13c   : > { %v2325_v12 = vshll.u32 %v6454_v60, 16 }
 0x13d   : > { %v2297_v14 = vrot.slane %v2295_v25, 5  ;;  %v6457_v25 = vld [vmem:[%s6641_s7 + $0xa4] sm:$0x1] }
 0x13e   : > { %6004 = vmatmul.mubr.msk.bf16.vlgmr.msra.gmra.mrb[0].mxu0 %vm657_vm3, %v5541_v46  ;;  %v2231_v46 = vrot.slane %v2229_v35, 5  ;;  %v5251_v35 = vld [vmem:[%s6641_s7 + $0x9c] sm:$0xf]  ;;  %v8229_v6 = vrot.slane %v2325_v12, 5 }
 0x13f   : > { %5850 = vmatmul.mubr.msk.bf16.gmra.mrb[16].mxu1 %vm657_vm3, %v6400_v30  ;;  %6007 = vmatprep.mubr.msk.bf16.mxu0 %vm657_vm3, %v5542_v9  ;;  %v2239_v30 = vshll.u32 %v6451_v17, 16  ;;  %v2268_v9 = vshrl.u32 %v5245_v47, 16  ;;  %v2319_v47 = vshll.u32 %v5251_v35, 16  ;;  %v6455_v17 = vld [vmem:[%s6641_s7 + $0x8c] sm:$0x1] }
 0x140   : > { %5853 = vmatprep.mubr.msk.bf16.mxu1 %vm657_vm3, %v6401_v11  ;;  %v2236_v13 = vor.u32 %v2235_v28, %v2231_v46  ;;  %v6452_v11 = vld [vmem:[%s6641_s7 + $0x88] sm:$0xf]  ;;  %v2232_v7 = vsel %vm6667_vm4, %v2227_v52, %v2231_v46 }
 0x141   : > { %v2277_v19 = vshll.u32 %v6452_v11, 16  ;;  %v2281_v41 = vshrl.u32 %v6452_v11, 16  ;;  %v2241_v0 = vrot.slane %v2239_v30, 5  ;;  %v2270_v36 = vrot.slane %v2268_v9, 4 }
 0x142   : > { %v2237_v39 = vrot.slane %v2236_v13, 4  ;;  %v2287_v30 = vshll.u32 %v6455_v17, 16  ;;  %v2294_v9 = vrot.slane %v2292_v23, 4  ;;  %v2321_v11 = vrot.slane %v2319_v47, 5 }
 0x143   : > { %v8206_v24 = vrot.slane %v2277_v19, 5  ;;  %v2283_v49 = vrot.slane %v2281_v41, 4  ;;  %v6406_v19 = vld [vmem:[%s6641_s7 + $0xc0] sm:$0xff]  }
 0x144   : > { %v2242_v46 = vsel %vm6667_vm4, %v2237_v39, %v2241_v0  ;;  %v5254_v39 = vld [vmem:[%s6641_s7 + $0xa8] sm:$0xf] }
 0x145   : > { %v2284_v13 = vor.u32 %v2283_v49, %v8206_v24  ;;  %v5272_v41 = vcombine.low %v2232_v7, %v2242_v46  ;;  %v2335_v7 = vshll.u32 %v6457_v25, 16  ;;  %v2343_v45 = vshll.u32 %v5254_v39, 16 }
 0x146   : > { %6008 = vmatmul.mubr.msk.bf16.gmra.mrb[4].mxu0 %vm657_vm3, %v5543_v61  ;;  %v6453_v61 = vld [vmem:[%s6641_s7 + $0x94] sm:$0xf] }
 0x147   : > { %5854 = vmatmul.mubr.msk.bf16.gmra.mrb[20].mxu1 %vm657_vm3, %v6402_v51  ;;  %6011 = vmatprep.mubr.msk.bf16.mxu0 %vm657_vm3, %v5544_v10  ;;  %v2273_v10 = vrot.slane %v2271_v18, 5  ;;  %v2301_v51 = vshll.u32 %v6453_v61, 16  ;;  %v2305_v28 = vshrl.u32 %v6453_v61, 16  ;;  %v2285_v0 = vrot.slane %v2284_v13, 4 }
 0x148   : > { %5857 = vmatprep.mubr.msk.bf16.mxu1 %vm657_vm3, %v6403_v21  ;;  %v2316_v21 = vshrl.u32 %v5251_v35, 16  ;;  %v6456_v35 = vld [vmem:[%s6641_s7 + $0x98] sm:$0x1]  ;;  %v2340_v61 = vshrl.u32 %v5254_v39, 16  ;;  %v5260_v39 = vld [vmem:[%s6641_s7 + $0xc0] sm:$0xf] }
 0x149   : > { %v2274_v15 = vor.u32 %v2273_v10, %v2270_v36  ;;  %v8226_v26 = vrot.slane %v2301_v51, 5  ;;  %v2289_v36 = vrot.slane %v2287_v30, 5  ;;  %v2298_v10 = vor.u32 %v2297_v14, %v2294_v9  ;;  %v5257_v51 = vld [vmem:[%s6641_s7 + $0xb4] sm:$0xf] }
 0x14a   : > { %v2318_v18 = vrot.slane %v2316_v21, 4  ;;  %v2353_v21 = vshrl.u32 %v6458_v27, 16  ;;  %v2364_v20 = vshrl.u32 %v5257_v51, 16  ;;  %v2367_v42 = vshll.u32 %v5257_v51, 16 }
 0x14b   : > { %v2275_v52 = vrot.slane %v2274_v15, 4  ;;  %v2290_v46 = vsel %vm6667_vm4, %v2285_v0, %v2289_v36  ;;  %v2299_v15 = vrot.slane %v2298_v10, 4  ;;  %v2337_v30 = vrot.slane %v2335_v7, 5 }
 0x14c   : > { %v2322_v23 = vor.u32 %v2321_v11, %v2318_v18  ;;  %v2342_v9 = vrot.slane %v2340_v61, 4  ;;  %v2355_v11 = vrot.slane %v2353_v21, 4  ;;  %v6462_v61 = vld [vmem:[%s6641_s7 + $0xbc] sm:$0x1] }
 0x14d   : > { %v2280_v47 = vsel %vm6667_vm4, %v2275_v52, %v8206_v24  ;;  %v2304_v0 = vsel %vm6667_vm4, %v2299_v15, %v8226_v26  ;;  %v2383_v22 = vshll.u32 %v6462_v61, 16 }
 0x14e   : > { %6012 = vmatmul.mubr.msk.bf16.gmra.mrb[8].mxu0 %vm657_vm3, %v5545_v40  ;;  %v2329_v40 = vshrl.u32 %v6454_v60, 16  ;;  %v2323_v17 = vrot.slane %v2322_v23, 4  ;;  %v5274_v24 = vcombine.low %v2280_v47, %v2290_v46 }
 0x14f   : > { %5858 = vmatmul.mubr.msk.bf16.gmra.mrb[24].mxu1 %vm657_vm3, %v6404_v2  ;;  %6015 = vmatprep.mubr.msk.bf16.mxu0 %vm657_vm3, %v5546_v54  ;;  %v2307_v54 = vrot.slane %v2305_v28, 4 }
 0x150   : > { %5861 = vmatprep.mubr.msk.bf16.mxu1 %vm657_vm3, %v6405_v34  ;;  %v2331_v2 = vrot.slane %v2329_v40, 4  ;;  %v2311_v34 = vshll.u32 %v6456_v35, 16  ;;  %v2328_v10 = vsel %vm6667_vm4, %v2323_v17, %v8229_v6  ;;  %v2409_v17 = vrot.slane %v2407_v57, 5 }
 0x151   : > { %v2308_v49 = vor.u32 %v2307_v54, %v8226_v26  ;;  %v2345_v54 = vrot.slane %v2343_v45, 5  ;;  %v6460_v26 = vld [vmem:[%s6641_s7 + $0xb0] sm:$0x1] }
 0x152   : > { %v2332_v28 = vor.u32 %v2331_v2, %v8229_v6  ;;  %v2313_v60 = vrot.slane %v2311_v34, 5  ;;  %v2359_v35 = vshll.u32 %v6460_v26, 16  ;;  %v2388_v34 = vshrl.u32 %v5260_v39, 16 }
 0x153   : > { %v2309_v13 = vrot.slane %v2308_v49, 4  ;;  %v2346_v38 = vor.u32 %v2345_v54, %v2342_v9  ;;  %v2391_v6 = vshll.u32 %v5260_v39, 16  ;;  %v6461_v49 = vld [vmem:[%s6641_s7 + $0xc4] sm:$0xf] }
 0x154   : > { %v2333_v14 = vrot.slane %v2332_v28, 4  ;;  %v2397_v23 = vshll.u32 %v6461_v49, 16  ;;  %v2401_v25 = vshrl.u32 %v6461_v49, 16  ;;  %v2361_v45 = vrot.slane %v2359_v35, 5 }
 0x155   : > { %v2314_v36 = vsel %vm6667_vm4, %v2309_v13, %v2313_v60  ;;  %v2347_v51 = vrot.slane %v2346_v38, 4  ;;  %v2385_v60 = vrot.slane %v2383_v22, 5 }
 0x156   : > { %6016 = vmatmul.mubr.msk.bf16.gmra.mrb[12].mxu0 %vm657_vm3, %v5547_v53  ;;  %v2349_v53 = vshll.u32 %v6458_v27, 16  ;;  %v2338_v59 = vsel %vm6667_vm4, %v2333_v14, %v2337_v30  ;;  %v5275_v44 = vcombine.low %v2304_v0, %v2314_v36  ;;  %v2390_v27 = vrot.slane %v2388_v34, 4 }
 0x157   : > { %5862 = vmatmul.mubr.msk.bf16.gmra.mrb[28].mxu1 %vm657_vm3, %v6406_v19  ;;  %6019 = vmatprep.mubr.msk.bf16.mxu0 %vm657_vm3, %v5548_v33  ;;  %v6459_v33 = vld [vmem:[%s6641_s7 + $0xb8] sm:$0xf]  ;;  %v2366_v19 = vrot.slane %v2364_v20, 4  ;;  %v2399_v21 = vrot.slane %v2397_v23, 5  ;;  %v2403_v47 = vrot.slane %v2401_v25, 4  ;;  %s5573_s7 = sshll.u32 %s6534_s12, 5 }
 0x158   : > { %5883 = vmatprep.mubr.msk.bf16.mxu1 %vm657_vm3, %v5272_v41  ;;  %v2373_v12 = vshll.u32 %v6459_v33, 16  ;;  %v2377_v40 = vshrl.u32 %v6459_v33, 16  ;;  %v2351_v18 = vrot.slane %v2349_v53, 5  ;;  %v2369_v41 = vrot.slane %v2367_v42, 5  ;;  %s8569_s18 = scalar_lea.hbm %s8622_s2, %s5573_s7  ;;  %s6544_s12 = smov [#allocation2]  }
 0x159   : > { %v2393_v53 = vrot.slane %v2391_v6, 5  ;;  %s6468_s24 = sshll.u32 %s6544_s12, 4  ;;  %s6469_s24 = int_to_ptr.vmem [resolvable:$false] %s6468_s24 }
 0x15a   : > { %v2375_v52 = vrot.slane %v2373_v12, 5  ;;  %v2379_v2 = vrot.slane %v2377_v40, 4  ;;  %v2352_v20 = vsel %vm6667_vm4, %v2347_v51, %v2351_v18  ;;  %v2404_v12 = vor.u32 %v2403_v47, %v2399_v21  ;;  %s6470_s25 = scalar_lea.vmem %s6469_s24, 64  ;;  %p6471_p1 = scmp.lt.s32.totalorder %s8571_s8, %s6469_s24 }
 0x15b   : > { %v2394_v33 = vor.u32 %v2393_v53, %v2390_v27  ;;  %p6472_p2 = scmp.lt.s32.totalorder %s6470_s25, %s6464_s23 }
 0x15c   : > { %v2380_v7 = vor.u32 %v2379_v2, %v2375_v52  ;;  %v2405_v13 = vrot.slane %v2404_v12, 4 }
 0x15d   : > { %v2395_v40 = vrot.slane %v2394_v33, 4  ;;  %p6473_p3 = por %p6472_p2, %p6471_p1 }
 0x15e   : > { %6020 = vmatmul.mubr.msk.bf16.gmra.mrb[16].mxu0 %vm657_vm3, %v5549_v37  ;;  %v2356_v37 = vor.u32 %v2355_v11, %v2351_v18  ;;  %v2381_v15 = vrot.slane %v2380_v7, 4  ;;  %v2410_v9 = vsel %vm6667_vm4, %v2405_v13, %v2409_v17 }
 0x15f   : > { %5884 = vmatmul.mubr.msk.bf16.vlgmr.msra.gmra.mrb[16].mxu1 %vm657_vm3, %v8035_v1  ;;  %6023 = vmatprep.mubr.msk.bf16.mxu0 %vm657_vm3, %v5550_v3  ;;  %v2370_v1 = vor.u32 %v2369_v41, %v2366_v19  ;;  %v5276_v3 = vcombine.low %v2328_v10, %v2338_v59  ;;  %v2400_v30 = vsel %vm6667_vm4, %v2395_v40, %v2399_v21  ;;  %p6474_p5 = pnand %p6473_p3, %p6467_p0 }
 0x160   : > { %5887 = vmatprep.mubr.msk.bf16.mxu1 %vm657_vm3, %v5274_v24  ;;  %v2357_v28 = vrot.slane %v2356_v37, 4  ;;  %v2386_v48 = vsel %vm6667_vm4, %v2381_v15, %v2385_v60  ;;  %v5279_v14 = vcombine.low %v2400_v30, %v2410_v9 }
 0x161   : > { %v2371_v46 = vrot.slane %v2370_v1, 4 }
 0x162   : > { %v2362_v42 = vsel %vm6667_vm4, %v2357_v28, %v2361_v45 }
 0x163   : > { %v5277_v62 = vcombine.low %v2352_v20, %v2362_v42 }
 0x166   : > { %6024 = vmatmul.mubr.msk.bf16.gmra.mrb[20].mxu0 %vm657_vm3, %v5551_v8  ;;  %v2376_v8 = vsel %vm6667_vm4, %v2371_v46, %v2375_v52 }
 0x167   : > { %5888 = vmatmul.mubr.msk.bf16.gmra.mrb[20].mxu1 %vm657_vm3, %v5275_v44  ;;  %6027 = vmatprep.mubr.msk.bf16.mxu0 %vm657_vm3, %v5552_v56  ;;  %v5278_v56 = vcombine.low %v2376_v8, %v2386_v48 }
 0x168   : > { %5891 = vmatprep.mubr.msk.bf16.mxu1 %vm657_vm3, %v5276_v3 }
 0x16e   : > { %6028 = vmatmul.mubr.msk.bf16.gmra.mrb[24].mxu0 %vm657_vm3, %v5553_v43 }
 0x16f   : > { %5892 = vmatmul.mubr.msk.bf16.gmra.mrb[24].mxu1 %vm657_vm3, %v5277_v62  ;;  %6031 = vmatprep.mubr.msk.bf16.mxu0 %vm657_vm3, %v5554_v50 }
 0x170   : > { %5895 = vmatprep.mubr.msk.bf16.mxu1 %vm657_vm3, %v5278_v56 }
 0x176   : > { %6032 = vmatmul.mubr.msk.bf16.gmra.mrb[28].mxu0 %vm657_vm3, %v5555_v29 }
 0x177   : > { %5896 = vmatmul.mubr.msk.bf16.gmra.mrb[28].mxu1 %vm657_vm3, %v5279_v14 }
 0x1f2   : > { %v5835_v63 = vpop.f32.mrb[0].mxu1 }
 0x1f3   : > { %v1820_v4 = vpop.f32.mrb[1].mxu1 }
 0x1f4   : > { %v5836_v43 = vpop.f32.mrb[2].mxu1 }
 0x1f5   : > { %v1823_v16 = vpop.f32.mrb[3].mxu1 }
 0x1fa   : > { %v5839_v58 = vpop.f32.mrb[4].mxu1 }
 0x1fb   : > { %v1836_v50 = vpop.f32.mrb[5].mxu1 }
 0x1fc   : > { %v5840_v54 = vpop.f32.mrb[6].mxu1 }
 0x1fd   : > { %v1839_v18 = vpop.f32.mrb[7].mxu1 }
 0x202   : > { %v5843_v11 = vpop.f32.mrb[8].mxu1 }
 0x203   : > { %v1852_v24 = vpop.f32.mrb[9].mxu1 }
 0x204   : > { %v5844_v32 = vpop.f32.mrb[10].mxu1 }
 0x205   : > { %v1855_v19 = vpop.f32.mrb[11].mxu1 }
 0x20a   : > { %v5847_v41 = vpop.f32.mrb[12].mxu1 }
 0x20b   : > { %v1868_v52 = vpop.f32.mrb[13].mxu1 }
 0x20c   : > { %v5848_v2 = vpop.f32.mrb[14].mxu1 }
 0x20d   : > { %v1871_v5 = vpop.f32.mrb[15].mxu1 }
 0x211   : > { %v6005_v55 = vpop.f32.mrb[0].mxu0 }
 0x212   : > { %v8317_v29 = vadd.f32 %v6005_v55, %v5835_v63  ;;  %v4571_v39 = vpop.f32.mrb[1].mxu0 }
 0x213   : > { %v8319_v0 = vadd.f32 %v4571_v39, %v1820_v4  ;;  %v6006_v36 = vpop.f32.mrb[2].mxu0 }
 0x214   : > { %v8321_v10 = vadd.f32 %v6006_v36, %v5836_v43  ;;  %v4574_v59 = vpop.f32.mrb[3].mxu0  ;;  %v4734_v34 = vsel %vm4730_vm8, %v8317_v29, 0.0 }
 0x215   : > { %v8323_v38 = vadd.f32 %v4574_v59, %v1823_v16  ;;  %v4731_v37 = vsel %vm4730_vm8, %v8319_v0, 0.0 }
 0x216   : > { %v4736_v1 = vsel %vm4730_vm8, %v8321_v10, 0.0 }
 0x217   : > { %v4732_v26 = vsel %vm4730_vm8, %v8323_v38, 0.0 }
 0x218   : > { %v4733_v35 = vadd.f32 %v4732_v26, %v4731_v37 }
 0x219   : > { %v6009_v6 = vpop.f32.mrb[4].mxu0 }
 0x21a   : > { %v4735_v49 = vadd.f32 %v4734_v34, %v4733_v35  ;;  %v8331_v23 = vadd.f32 %v6009_v6, %v5839_v58  ;;  %v4587_v25 = vpop.f32.mrb[5].mxu0 }
 0x21b   : > { %v8335_v7 = vadd.f32 %v4587_v25, %v1836_v50  ;;  %v6010_v61 = vpop.f32.mrb[6].mxu0 }
 0x21c   : > { %v4737_v22 = vadd.f32 %v4736_v1, %v4735_v49  ;;  %v8337_v44 = vadd.f32 %v6010_v61, %v5840_v54  ;;  %v4590_v3 = vpop.f32.mrb[7].mxu0  ;;  %v4742_v21 = vsel %vm4730_vm8, %v8331_v23, 0.0 }
 0x21d   : > { %v4738_v51 = vsel %vm4730_vm8, %v8335_v7, 0.0  ;;  %v8341_v28 = vadd.f32 %v4590_v3, %v1839_v18 }
 0x21e   : > { %v4739_v45 = vadd.f32 %v4738_v51, %v4737_v22  ;;  %v4744_v20 = vsel %vm4730_vm8, %v8337_v44, 0.0 }
 0x21f   : > { %v4740_v27 = vsel %vm4730_vm8, %v8341_v28, 0.0 }
 0x220   : > { %v4741_v53 = vadd.f32 %v4740_v27, %v4739_v45 }
 0x221   : > { %v6013_v47 = vpop.f32.mrb[8].mxu0 }
 0x222   : > { %v4743_v46 = vadd.f32 %v4742_v21, %v4741_v53  ;;  %v8347_v15 = vadd.f32 %v6013_v47, %v5843_v11  ;;  %v4603_v60 = vpop.f32.mrb[9].mxu0 }
 0x223   : > { %v8351_v42 = vadd.f32 %v4603_v60, %v1852_v24  ;;  %v6014_v33 = vpop.f32.mrb[10].mxu0 }
 0x224   : > { %v4745_v12 = vadd.f32 %v4744_v20, %v4743_v46  ;;  %v8353_v31 = vadd.f32 %v6014_v33, %v5844_v32  ;;  %v4606_v57 = vpop.f32.mrb[11].mxu0  ;;  %v4750_v13 = vsel %vm4730_vm8, %v8347_v15, 0.0 }
 0x225   : > { %v4746_v8 = vsel %vm4730_vm8, %v8351_v42, 0.0  ;;  %v8357_v48 = vadd.f32 %v4606_v57, %v1855_v19 }
 0x226   : > { %v4747_v62 = vadd.f32 %v4746_v8, %v4745_v12  ;;  %v4752_v63 = vsel %vm4730_vm8, %v8353_v31, 0.0 }
 0x227   : > { %v4748_v56 = vsel %vm4730_vm8, %v8357_v48, 0.0 }
 0x228   : > { %v4749_v40 = vadd.f32 %v4748_v56, %v4747_v62 }
 0x229   : > { %v6017_v17 = vpop.f32.mrb[12].mxu0 }
 0x22a   : > { %v4751_v30 = vadd.f32 %v4750_v13, %v4749_v40  ;;  %v8363_v9 = vadd.f32 %v6017_v17, %v5847_v41  ;;  %v4619_v14 = vpop.f32.mrb[13].mxu0 }
 0x22b   : > { %v8367_v4 = vadd.f32 %v4619_v14, %v1868_v52  ;;  %v6018_v43 = vpop.f32.mrb[14].mxu0 }
 0x22c   : > { %v4753_v16 = vadd.f32 %v4752_v63, %v4751_v30  ;;  %v8369_v58 = vadd.f32 %v6018_v43, %v5848_v2  ;;  %v4622_v50 = vpop.f32.mrb[15].mxu0  ;;  %v4758_v19 = vsel %vm4730_vm8, %v8363_v9, 0.0 }
 0x22d   : > { %v4754_v54 = vsel %vm4730_vm8, %v8367_v4, 0.0  ;;  %v8373_v18 = vadd.f32 %v4622_v50, %v1871_v5 }
 0x22e   : > { %v4755_v11 = vadd.f32 %v4754_v54, %v4753_v16  ;;  %v4760_v2 = vsel %vm4730_vm8, %v8369_v58, 0.0 }
 0x22f   : > { %v4756_v24 = vsel %vm4730_vm8, %v8373_v18, 0.0 }
 0x230   : > { %v4757_v32 = vadd.f32 %v4756_v24, %v4755_v11 }
 0x231   : > { %v6021_v41 = vpop.f32.mrb[16].mxu0 }
 0x232   : > { %v4759_v52 = vadd.f32 %v4758_v19, %v4757_v32  ;;  %v5885_v55 = vpop.f32.mrb[16].mxu1  ;;  %v4635_v39 = vpop.f32.mrb[17].mxu0 }
 0x233   : > { %v8381_v36 = vadd.f32 %v6021_v41, %v5885_v55  ;;  %v2610_v59 = vpop.f32.mrb[17].mxu1  ;;  %v6022_v5 = vpop.f32.mrb[18].mxu0 }
 0x234   : > { %v8383_v37 = vadd.f32 %v4635_v39, %v2610_v59  ;;  %v4761_v26 = vadd.f32 %v4760_v2, %v4759_v52  ;;  %v5886_v35 = vpop.f32.mrb[18].mxu1  ;;  %v4638_v34 = vpop.f32.mrb[19].mxu0 }
 0x235   : > { %v8385_v6 = vadd.f32 %v6022_v5, %v5886_v35  ;;  %v2613_v49 = vpop.f32.mrb[19].mxu1  ;;  %v4766_v45 = vsel %vm4730_vm8, %v8381_v36, 0.0 }
 0x236   : > { %v4762_v25 = vsel %vm4730_vm8, %v8383_v37, 0.0  ;;  %v8389_v1 = vadd.f32 %v4638_v34, %v2613_v49 }
 0x237   : > { %v4763_v61 = vadd.f32 %v4762_v25, %v4761_v26  ;;  %v4768_v20 = vsel %vm4730_vm8, %v8385_v6, 0.0 }
 0x238   : > { %v4764_v22 = vsel %vm4730_vm8, %v8389_v1, 0.0 }
 0x239   : > { %v4765_v3 = vadd.f32 %v4764_v22, %v4763_v61  ;;  %v6025_v51 = vpop.f32.mrb[20].mxu0 }
 0x23a   : > { %v5889_v27 = vpop.f32.mrb[20].mxu1  ;;  %v4651_v53 = vpop.f32.mrb[21].mxu0 }
 0x23b   : > { %v4767_v21 = vadd.f32 %v4766_v45, %v4765_v3  ;;  %v8395_v47 = vadd.f32 %v6025_v51, %v5889_v27  ;;  %v2626_v46 = vpop.f32.mrb[21].mxu1  ;;  %v6026_v60 = vpop.f32.mrb[22].mxu0 }
 0x23c   : > { %v8399_v33 = vadd.f32 %v4651_v53, %v2626_v46  ;;  %v5890_v12 = vpop.f32.mrb[22].mxu1  ;;  %v4654_v57 = vpop.f32.mrb[23].mxu0 }
 0x23d   : > { %v4769_v8 = vadd.f32 %v4768_v20, %v4767_v21  ;;  %v8401_v62 = vadd.f32 %v6026_v60, %v5890_v12  ;;  %v2629_v56 = vpop.f32.mrb[23].mxu1  ;;  %v4774_v43 = vsel %vm4730_vm8, %v8395_v47, 0.0 }
 0x23e   : > { %v4770_v40 = vsel %vm4730_vm8, %v8399_v33, 0.0  ;;  %v8405_v13 = vadd.f32 %v4654_v57, %v2629_v56 }
 0x23f   : > { %v4771_v17 = vadd.f32 %v4770_v40, %v4769_v8  ;;  %v4776_v19 = vsel %vm4730_vm8, %v8401_v62, 0.0 }
 0x240   : > { %v4772_v30 = vsel %vm4730_vm8, %v8405_v13, 0.0 }
 0x241   : > { %v4773_v14 = vadd.f32 %v4772_v30, %v4771_v17  ;;  %v6029_v63 = vpop.f32.mrb[24].mxu0 }
 0x242   : > { %v5893_v16 = vpop.f32.mrb[24].mxu1  ;;  %v4667_v50 = vpop.f32.mrb[25].mxu0 }
 0x243   : > { %v4775_v54 = vadd.f32 %v4774_v43, %v4773_v14  ;;  %v8411_v11 = vadd.f32 %v6029_v63, %v5893_v16  ;;  %v2642_v24 = vpop.f32.mrb[25].mxu1  ;;  %v6030_v32 = vpop.f32.mrb[26].mxu0 }
 0x244   : > { %v6062_v41 = vadd.f32 %v4667_v50, %v2642_v24  ;;  %v5894_v52 = vpop.f32.mrb[26].mxu1  ;;  %v4670_v55 = vpop.f32.mrb[27].mxu0 }
 0x245   : > { %v4777_v39 = vadd.f32 %v4776_v19, %v4775_v54  ;;  %v6063_v2 = vadd.f32 %v6030_v32, %v5894_v52  ;;  %v2645_v59 = vpop.f32.mrb[27].mxu1  ;;  %v4782_v61 = vsel %vm4730_vm8, %v8411_v11, 0.0 }
 0x246   : > { %v4778_v5 = vsel %vm4730_vm8, %v6062_v41, 0.0  ;;  %v6064_v26 = vadd.f32 %v4670_v55, %v2645_v59 }
 0x247   : > { %v4779_v35 = vadd.f32 %v4778_v5, %v4777_v39  ;;  %v4784_v21 = vsel %vm4730_vm8, %v6063_v2, 0.0 }
 0x248   : > { %v4780_v34 = vsel %vm4730_vm8, %v6064_v26, 0.0 }
 0x249   : > { %v4781_v49 = vadd.f32 %v4780_v34, %v4779_v35  ;;  %v6033_v25 = vpop.f32.mrb[28].mxu0 }
 0x24a   : > { %v5897_v22 = vpop.f32.mrb[28].mxu1  ;;  %v4683_v3 = vpop.f32.mrb[29].mxu0 }
 0x24b   : > { %v4783_v51 = vadd.f32 %v4782_v61, %v4781_v49  ;;  %v6065_v45 = vadd.f32 %v6033_v25, %v5897_v22  ;;  %v2658_v27 = vpop.f32.mrb[29].mxu1  ;;  %v6034_v53 = vpop.f32.mrb[30].mxu0 }
 0x24c   : > { %v6066_v46 = vadd.f32 %v4683_v3, %v2658_v27  ;;  %v5898_v60 = vpop.f32.mrb[30].mxu1  ;;  %v4686_v20 = vpop.f32.mrb[31].mxu0 }
 0x24d   : > { %v4785_v12 = vadd.f32 %v4784_v21, %v4783_v51  ;;  %v6067_v57 = vadd.f32 %v6034_v53, %v5898_v60  ;;  %v2661_v8 = vpop.f32.mrb[31].mxu1  ;;  %v4790_v63 = vsel %vm4730_vm8, %v6065_v45, 0.0 }
 0x24e   : > { %v4786_v56 = vsel %vm4730_vm8, %v6066_v46, 0.0  ;;  %v6068_v40 = vadd.f32 %v4686_v20, %v2661_v8 }
 0x24f   : > { %v4787_v17 = vadd.f32 %v4786_v56, %v4785_v12  ;;  %v4792_v16 = vsel %vm4730_vm8, %v6067_v57, 0.0 }
 0x250   : > { %v4788_v30 = vsel %vm4730_vm8, %v6068_v40, 0.0 }
 0x251   : > { %v4789_v14 = vadd.f32 %v4788_v30, %v4787_v17 }
 0x253   : > { %v4791_v43 = vadd.f32 %v4790_v63, %v4789_v14 }
 0x255   : > { %v4793_v50 = vadd.f32 %v4792_v16, %v4791_v43 }
 0x257   : > { %v4794_v54 = vrot.slane %v4793_v50, 4 }
 0x259   : > { %v4795_v24 = vadd.f32 %v4794_v54, %v4793_v50 }
 0x25b   : > { %v4796_v32 = vrot.slane %v4795_v24, 2 }
 0x25d   : > { %v4797_v19 = vadd.f32 %v4796_v32, %v4795_v24 }
 0x25f   : > { %v4798_v52 = vrot.slane %v4797_v19, 1 }
 0x261   : > { %v4799_v55 = vadd.f32 %v4798_v52, %v4797_v19 }
 0x263   : > { %v4800_v39 = vmul.f32 0.00390625, %v4799_v55  ;;  %4834 = vst.msk [vmem:[%s8427_s6] sm:$0x1] %vm4833_vm9, %v4799_v55 }
 0x265   : > { %v4810_v59 = vsub.f32 %v8357_v48, %v4800_v39  ;;  %v4813_v5 = vsub.f32 %v8367_v4, %v4800_v39  ;;  %v8434_v35 = vsub.f32 %v8373_v18, %v4800_v39  ;;  %v8437_v34 = vsub.f32 %v8363_v9, %v4800_v39 }
 0x266   : > { %v8440_v49 = vsub.f32 %v8369_v58, %v4800_v39  ;;  %v8443_v25 = vsub.f32 %v8383_v37, %v4800_v39  ;;  %v8446_v61 = vsub.f32 %v8389_v1, %v4800_v39  ;;  %v8449_v22 = vsub.f32 %v8381_v36, %v4800_v39 }
 0x267   : > { %v8452_v48 = vsub.f32 %v8385_v6, %v4800_v39  ;;  %v8455_v4 = vsub.f32 %v8399_v33, %v4800_v39  ;;  %v8458_v9 = vsub.f32 %v8405_v13, %v4800_v39  ;;  %v8461_v58 = vsub.f32 %v8395_v47, %v4800_v39 }
 0x268   : > { %v8464_v18 = vsub.f32 %v8401_v62, %v4800_v39  ;;  %v8466_v37 = vsub.f32 %v6062_v41, %v4800_v39  ;;  %v8468_v1 = vsub.f32 %v6064_v26, %v4800_v39  ;;  %v8471_v36 = vsub.f32 %v8411_v11, %v4800_v39 }
 0x269   : > { %v8473_v6 = vsub.f32 %v6063_v2, %v4800_v39  ;;  %v8475_v33 = vsub.f32 %v6066_v46, %v4800_v39  ;;  %v8477_v3 = vsub.f32 %v6068_v40, %v4800_v39  ;;  %v8479_v13 = vsub.f32 %v6065_v45, %v4800_v39 }
 0x26a   : > { %v8481_v47 = vsub.f32 %v6067_v57, %v4800_v39  ;;  %v4801_v62 = vsub.f32 %v8319_v0, %v4800_v39  ;;  %v4802_v41 = vsub.f32 %v8323_v38, %v4800_v39  ;;  %v4803_v26 = vsub.f32 %v8317_v29, %v4800_v39 }
 0x26b   : > { %v4804_v51 = vsub.f32 %v8321_v10, %v4800_v39  ;;  %v4805_v2 = vsub.f32 %v8335_v7, %v4800_v39  ;;  %v4806_v21 = vsub.f32 %v8341_v28, %v4800_v39  ;;  %v4807_v0 = vsub.f32 %v8331_v23, %v4800_v39 }
 0x26c   : > { %v4835_v11 = vmul.f32 %v4801_v62, %v4801_v62  ;;  %v4836_v27 = vmul.f32 %v4802_v41, %v4802_v41  ;;  %v4837_v53 = vmul.f32 %v4803_v26, %v4803_v26  ;;  %v4808_v10 = vsub.f32 %v8337_v44, %v4800_v39 }
 0x26d   : > { %v4838_v46 = vmul.f32 %v4804_v51, %v4804_v51  ;;  %v4839_v38 = vmul.f32 %v4805_v2, %v4805_v2  ;;  %v4840_v57 = vmul.f32 %v4806_v21, %v4806_v21  ;;  %v4809_v28 = vsub.f32 %v8351_v42, %v4800_v39 }
 0x26e   : > { %v4867_v45 = vsel %vm4730_vm8, %v4835_v11, 0.0  ;;  %v4868_v60 = vsel %vm4730_vm8, %v4836_v27, 0.0  ;;  %v4870_v29 = vsel %vm4730_vm8, %v4837_v53, 0.0  ;;  %v4841_v56 = vmul.f32 %v4807_v0, %v4807_v0 }
 0x26f   : > { %v4869_v20 = vadd.f32 %v4868_v60, %v4867_v45  ;;  %v4872_v7 = vsel %vm4730_vm8, %v4838_v46, 0.0  ;;  %v4874_v40 = vsel %vm4730_vm8, %v4839_v38, 0.0  ;;  %v4842_v30 = vmul.f32 %v4808_v10, %v4808_v10 }
 0x270   : > { %v4876_v14 = vsel %vm4730_vm8, %v4840_v57, 0.0  ;;  %v4811_v63 = vsub.f32 %v8347_v15, %v4800_v39  ;;  %v4843_v43 = vmul.f32 %v4809_v28, %v4809_v28  ;;  %v4878_v16 = vsel %vm4730_vm8, %v4841_v56, 0.0 }
 0x271   : > { %v4871_v12 = vadd.f32 %v4870_v29, %v4869_v20  ;;  %v4812_v50 = vsub.f32 %v8353_v31, %v4800_v39  ;;  %v4844_v54 = vmul.f32 %v4810_v59, %v4810_v59  ;;  %v4880_v24 = vsel %vm4730_vm8, %v4842_v30, 0.0 }
 0x272   : > { %v4845_v32 = vmul.f32 %v4811_v63, %v4811_v63  ;;  %v4882_v19 = vsel %vm4730_vm8, %v4843_v43, 0.0  ;;  %v4847_v26 = vmul.f32 %v4813_v5, %v4813_v5  ;;  %v4848_v11 = vmul.f32 %v8434_v35, %v8434_v35 }
 0x273   : > { %v4873_v8 = vadd.f32 %v4872_v7, %v4871_v12  ;;  %v4846_v55 = vmul.f32 %v4812_v50, %v4812_v50  ;;  %v4884_v62 = vsel %vm4730_vm8, %v4844_v54, 0.0  ;;  %v4849_v59 = vmul.f32 %v8437_v34, %v8437_v34 }
 0x274   : > { %v4886_v15 = vsel %vm4730_vm8, %v4845_v32, 0.0  ;;  %v4890_v27 = vsel %vm4730_vm8, %v4847_v26, 0.0  ;;  %v4850_v53 = vmul.f32 %v8440_v49, %v8440_v49  ;;  %v4892_v5 = vsel %vm4730_vm8, %v4848_v11, 0.0 }
 0x275   : > { %v4875_v17 = vadd.f32 %v4874_v40, %v4873_v8  ;;  %v4888_v31 = vsel %vm4730_vm8, %v4846_v55, 0.0  ;;  %v4851_v46 = vmul.f32 %v8443_v25, %v8443_v25  ;;  %v4894_v35 = vsel %vm4730_vm8, %v4849_v59, 0.0 }
 0x276   : > { %v4852_v60 = vmul.f32 %v8446_v61, %v8446_v61  ;;  %v4896_v34 = vsel %vm4730_vm8, %v4850_v53, 0.0  ;;  %v4853_v0 = vmul.f32 %v8449_v22, %v8449_v22  ;;  %v4854_v29 = vmul.f32 %v8452_v48, %v8452_v48 }
 0x277   : > { %v4877_v23 = vadd.f32 %v4876_v14, %v4875_v17  ;;  %v4898_v49 = vsel %vm4730_vm8, %v4851_v46, 0.0  ;;  %v4855_v10 = vmul.f32 %v8455_v4, %v8455_v4  ;;  %v4856_v7 = vmul.f32 %v8458_v9, %v8458_v9 }
 0x278   : > { %v4900_v25 = vsel %vm4730_vm8, %v4852_v60, 0.0  ;;  %v4902_v61 = vsel %vm4730_vm8, %v4853_v0, 0.0  ;;  %v4904_v22 = vsel %vm4730_vm8, %v4854_v29, 0.0  ;;  %v4857_v28 = vmul.f32 %v8461_v58, %v8461_v58 }
 0x279   : > { %v4879_v44 = vadd.f32 %v4878_v16, %v4877_v23  ;;  %v4906_v48 = vsel %vm4730_vm8, %v4855_v10, 0.0  ;;  %v4858_v40 = vmul.f32 %v8464_v18, %v8464_v18  ;;  %v4908_v4 = vsel %vm4730_vm8, %v4856_v7, 0.0 }
 0x27a   : > { %v4859_v30 = vmul.f32 %v8466_v37, %v8466_v37  ;;  %v4910_v9 = vsel %vm4730_vm8, %v4857_v28, 0.0  ;;  %v4860_v23 = vmul.f32 %v8468_v1, %v8468_v1  ;;  %v4861_v43 = vmul.f32 %v8471_v36, %v8471_v36 }
 0x27b   : > { %v4881_v42 = vadd.f32 %v4880_v24, %v4879_v44  ;;  %v4912_v58 = vsel %vm4730_vm8, %v4858_v40, 0.0  ;;  %v4862_v44 = vmul.f32 %v8473_v6, %v8473_v6  ;;  %v4863_v54 = vmul.f32 %v8475_v33, %v8475_v33 }
 0x27c   : > { %v4914_v18 = vsel %vm4730_vm8, %v4859_v30, 0.0  ;;  %v4916_v37 = vsel %vm4730_vm8, %v4860_v23, 0.0  ;;  %v4918_v1 = vsel %vm4730_vm8, %v4861_v43, 0.0  ;;  %v4865_v6 = vmul.f32 %v8479_v13, %v8479_v13 }
 0x27d   : > { %v4883_v52 = vadd.f32 %v4882_v19, %v4881_v42  ;;  %v4864_v42 = vmul.f32 %v8477_v3, %v8477_v3  ;;  %v4920_v36 = vsel %vm4730_vm8, %v4862_v44, 0.0  ;;  %v4922_v19 = vsel %vm4730_vm8, %v4863_v54, 0.0 }
 0x27e   : > { %v4866_v33 = vmul.f32 %v8481_v47, %v8481_v47  ;;  %v4926_v3 = vsel %vm4730_vm8, %v4865_v6, 0.0 }
 0x27f   : > { %v4885_v41 = vadd.f32 %v4884_v62, %v4883_v52  ;;  %v4924_v55 = vsel %vm4730_vm8, %v4864_v42, 0.0 }
 0x280   : > { %v4928_v26 = vsel %vm4730_vm8, %v4866_v33, 0.0 }
 0x281   : > { %v4887_v51 = vadd.f32 %v4886_v15, %v4885_v41 }
 0x283   : > { %v4889_v39 = vadd.f32 %v4888_v31, %v4887_v51 }
 0x285   : > { %v4891_v2 = vadd.f32 %v4890_v27, %v4889_v39 }
 0x287   : > { %v4893_v21 = vadd.f32 %v4892_v5, %v4891_v2 }
 0x289   : > { %v4895_v45 = vadd.f32 %v4894_v35, %v4893_v21 }
 0x28b   : > { %v4897_v20 = vadd.f32 %v4896_v34, %v4895_v45 }
 0x28d   : > { %v4899_v38 = vadd.f32 %v4898_v49, %v4897_v20 }
 0x28f   : > { %v4901_v12 = vadd.f32 %v4900_v25, %v4899_v38 }
 0x291   : > { %v4903_v57 = vadd.f32 %v4902_v61, %v4901_v12 }
 0x293   : > { %v4905_v8 = vadd.f32 %v4904_v22, %v4903_v57 }
 0x295   : > { %v4907_v56 = vadd.f32 %v4906_v48, %v4905_v8 }
 0x297   : > { %v4909_v17 = vadd.f32 %v4908_v4, %v4907_v56 }
 0x299   : > { %v4911_v14 = vadd.f32 %v4910_v9, %v4909_v17 }
 0x29b   : > { %v4913_v63 = vadd.f32 %v4912_v58, %v4911_v14 }
 0x29d   : > { %v4915_v16 = vadd.f32 %v4914_v18, %v4913_v63 }
 0x29f   : > { %v4917_v50 = vadd.f32 %v4916_v37, %v4915_v16 }
 0x2a1   : > { %v4919_v24 = vadd.f32 %v4918_v1, %v4917_v50 }
 0x2a3   : > { %v4921_v32 = vadd.f32 %v4920_v36, %v4919_v24 }
 0x2a5   : > { %v4923_v52 = vadd.f32 %v4922_v19, %v4921_v32 }
 0x2a7   : > { %v4925_v62 = vadd.f32 %v4924_v55, %v4923_v52 }
 0x2a9   : > { %v4927_v41 = vadd.f32 %v4926_v3, %v4925_v62 }
 0x2ab   : > { %v4929_v15 = vadd.f32 %v4928_v26, %v4927_v41 }
 0x2ad   : > { %v4930_v51 = vrot.slane %v4929_v15, 4 }
 0x2af   : > { %v4931_v13 = vadd.f32 %v4930_v51, %v4929_v15 }
 0x2b1   : > { %v4932_v11 = vrot.slane %v4931_v13, 2 }
 0x2b3   : > { %v4933_v31 = vadd.f32 %v4932_v11, %v4931_v13 }
 0x2b5   : > { %v4934_v39 = vrot.slane %v4933_v31, 1 }
 0x2b7   : > { %v4935_v47 = vadd.f32 %v4934_v39, %v4933_v31 }
 0x2b9   : > { %4936 = vst.msk [vmem:[%s8427_s6 + $0x1] sm:$0x1] %vm4833_vm9, %v4935_v47 }
 0x2ba   : > { %6477 = shalt.err (!%p6474_p5)
}
 0x2bb   : > { %s6478_s26 = scalar_lea.hbm %s8569_s18, 32  ;;  %s6482_s29 = scalar_lea.hbm %s8622_s2, 64 }
 0x2bc   : > { %p6479_p6 = scmp.ne.s32.totalorder %s8569_s18, %s6478_s26  ;;  %p6483_p10 = scmp.lt.u32.totalorder %s8569_s18, %s8622_s2 }
 0x2bd   : > { %p6484_p11 = scmp.lt.u32.totalorder %s6482_s29, %s6478_s26  ;;  %p6486_p13 = scmp.lt.u32.totalorder %s6478_s26, %s8569_s18 }
 0x2be   : > { %p6480_p7 = pnand %p6479_p6, %p6600_p4 }
 0x2bf   : > { %p6485_p12 = por %p6484_p11, %p6483_p10 }
 0x2c0   : > { %p6481_p9 = pneg %p6480_p7 }
 0x2c1   : > { %p6487_p0 = por %p6486_p13, %p6485_p12 }
 0x2c3   : > { %p6488_p1 = pnand %p6487_p0, %p6481_p9 }
 0x2c5   : > { %6491 = shalt.err (!%p6488_p1)
}
 0x2c6   : > { %6304 = dma.vmem_to_hbm [thread:$0]  (%p6600_p4), %s8571_s8, 32, %s8569_s18, %s4938_s20  }
 0x2c7 PF: > { %p6310_p2 = scmp.ge.s32.totalorder %s6542_s14, 2  ;;  %s4964_s4 = sand.u32 1, %s6522_s9  }
 0x2c8   : > { %s4965_s5 = scalar_lea.sflag [#allocation3], %s4964_s4 }
 0x2c9   : > { %p6307_p3 = pnand %p6310_p2, %p6607_p8 }
 0x2cb   : > { %6517 = dma.done.wait (!%p6307_p3), %s4965_s5, 32  }
 0x2cc   : > { %6519 = vsyncadd (!%p6307_p3), %s4965_s5, 4294967264  ;;  %s15_s14 = sadd.s32 1, %s6542_s14   ;;  %s8692_s9 = smov %s6526_s10 }
 0x2cd   : > { %p12_p5 = scmp.ge.s32.totalorder %s15_s14, 4   ;;  %s8693_s10 = smov %s6530_s11 }
 0x2ce   : > { %s8694_s11 = smov %s6613_s22  ;;  %s8695_s12 = smov %s6538_s13 }
 0x2cf   : > { %s8696_s13 = smov %s8698_s17  ;;  %14 = sbr.rel (!%p12_p5) target bundleno = 4 (0x4), region = 73 }
 0x2d6   :  { %4970 = vsyncpa [#allocation3], 1 }
 0x2d7   :  { %4972 = vsyncpa [#allocation3 + $0x1], 1 }

</bundles_post_ra>
